<compile_context>
chip_gen: v5e
topology: v5e:2x2
jax: 0.10.0
libtpu: 0.0.40
codegen_flags: <defaults>
</compile_context>

<pallas_src>
import functools

import jax
import jax.numpy as jnp
from jax import lax
from jax.experimental import pallas as pl
from jax.experimental.pallas import tpu as pltpu


# ----------------------------------------------------------------------------
# Shared math, used verbatim by the Pallas kernels and by the jnp reference
# (keeps the correctness comparison tight).
# ----------------------------------------------------------------------------
def _rmsnorm(x, w, eps=1e-6):
    var = jnp.mean(x * x, axis=-1, keepdims=True)
    return x * lax.rsqrt(var + eps) * w


def _mha_math(q, k, v, wo, bias, *, n_heads, head_dim):
    """q:(Tq,H*hd) f32, k/v:(Tk,H*hd) f32, wo:(H*hd,D) bf16, bias broadcastable to (Tq,Tk)."""
    ctx_parts = []
    for h in range(n_heads):
        sl = slice(h * head_dim, (h + 1) * head_dim)
        # T5/MT5 convention: no 1/sqrt(head_dim) scaling.
        s = jnp.einsum("qd,kd->qk",
                       q[:, sl].astype(jnp.bfloat16),
                       k[:, sl].astype(jnp.bfloat16),
                       preferred_element_type=jnp.float32) + bias
        m = jnp.max(s, axis=-1, keepdims=True)
        p = jnp.exp(s - m)
        p = p / jnp.sum(p, axis=-1, keepdims=True)            # exact division (parity)
        ctx_parts.append(jnp.dot(p.astype(jnp.bfloat16),
                                 v[:, sl].astype(jnp.bfloat16),
                                 preferred_element_type=jnp.float32))
    # Heads are adjacent lane slices: one full-K (H*hd) wo push instead of H K=32 pushes.
    ctx = jnp.concatenate(ctx_parts, axis=-1)                  # (Tq, H*hd) f32
    return jnp.dot(ctx.astype(jnp.bfloat16), wo, preferred_element_type=jnp.float32)


def _ffn_math(x, wi, wo_ff):
    d_ff = wo_ff.shape[0]
    wi_o = jnp.dot(x.astype(jnp.bfloat16), wi, preferred_element_type=jnp.float32)
    hidden = jax.nn.gelu(wi_o[:, :d_ff], approximate=True) * wi_o[:, d_ff:]  # MT5 gated-GELU
    return jnp.dot(hidden.astype(jnp.bfloat16), wo_ff, preferred_element_type=jnp.float32)


def _encoder_layer_math(h, bias, ln1, wqkv, wo, ln2, wi, wo_ff, ln_f, *, n_heads, head_dim):
    inner = n_heads * head_dim
    x = _rmsnorm(h, ln1)
    qkv = jnp.dot(x.astype(jnp.bfloat16), wqkv, preferred_element_type=jnp.float32)
    h = h + _mha_math(qkv[:, :inner], qkv[:, inner:2 * inner], qkv[:, 2 * inner:],
                      wo, bias, n_heads=n_heads, head_dim=head_dim)
    x = _rmsnorm(h, ln2)
    h = h + _ffn_math(x, wi, wo_ff)
    return _rmsnorm(h, ln_f)


def _decoder_layer_math(h, enc, src_bias, ln1, wqkv, wo_self, ln2, wq, wkv, wo_cross,
                        ln3, wi, wo_ff, ln_f, *, n_heads, head_dim):
    inner = n_heads * head_dim
    t_q = h.shape[0]
    # --- causal self-attention (target side is never padded in this forward) ---
    x = _rmsnorm(h, ln1)
    qkv = jnp.dot(x.astype(jnp.bfloat16), wqkv, preferred_element_type=jnp.float32)
    r = lax.broadcasted_iota(jnp.int32, (t_q, t_q), 0)
    c = lax.broadcasted_iota(jnp.int32, (t_q, t_q), 1)
    causal_bias = jnp.where(c <= r, 0.0, -1e9).astype(jnp.float32)
    h = h + _mha_math(qkv[:, :inner], qkv[:, inner:2 * inner], qkv[:, 2 * inner:],
                      wo_self, causal_bias, n_heads=n_heads, head_dim=head_dim)
    # --- cross-attention over encoder output with source key-padding bias ---
    x = _rmsnorm(h, ln2)
    q = jnp.dot(x.astype(jnp.bfloat16), wq, preferred_element_type=jnp.float32)
    kv = jnp.dot(enc.astype(jnp.bfloat16), wkv, preferred_element_type=jnp.float32)
    h = h + _mha_math(q, kv[:, :inner], kv[:, inner:], wo_cross, src_bias,
                      n_heads=n_heads, head_dim=head_dim)
    # --- gated-GELU FFN ---
    x = _rmsnorm(h, ln3)
    h = h + _ffn_math(x, wi, wo_ff)
    return _rmsnorm(h, ln_f)


# ----------------------------------------------------------------------------
# Pallas kernel 1: fused encoder layer (one launch, batch on a parallel grid axis)
# ----------------------------------------------------------------------------
def _encoder_layer_kernel(h_ref, bias_ref, ln1_ref, wqkv_ref, wo_ref, ln2_ref,
                          wi_ref, wo_ff_ref, lnf_ref, o_ref, *, n_heads, head_dim):
    o_ref[...] = _encoder_layer_math(
        h_ref[...], bias_ref[...], ln1_ref[...], wqkv_ref[...], wo_ref[...],
        ln2_ref[...], wi_ref[...], wo_ff_ref[...], lnf_ref[...],
        n_heads=n_heads, head_dim=head_dim).astype(o_ref.dtype)


def encoder_layer_pallas(h, src_bias, p, n_heads, head_dim):
    B, T, D = h.shape
    inner = n_heads * head_dim
    d_ff = p["wo_ff"].shape[0]
    kern = functools.partial(_encoder_layer_kernel, n_heads=n_heads, head_dim=head_dim)

    def full2d(shape):
        return pl.BlockSpec(shape, lambda b: (0, 0))

    return pl.pallas_call(
        kern,
        out_shape=jax.ShapeDtypeStruct((B, T, D), jnp.float32),
        grid_spec=pltpu.PrefetchScalarGridSpec(
            num_scalar_prefetch=0,
            grid=(B,),
            in_specs=[
                pl.BlockSpec((None, T, D), lambda b: (b, 0, 0)),   # h (batch squeezed)
                pl.BlockSpec((None, 1, T), lambda b: (b, 0, 0)),   # additive key bias
                full2d((1, D)),                                    # ln1
                full2d((D, 3 * inner)),                            # wqkv (fused Q|K|V)
                full2d((inner, D)),                                # wo
                full2d((1, D)),                                    # ln2
                full2d((D, 2 * d_ff)),                             # wi (fused wi0|wi1)
                full2d((d_ff, D)),                                 # wo_ff
                full2d((1, D)),                                    # ln_f
            ],
            out_specs=pl.BlockSpec((None, T, D), lambda b: (b, 0, 0))),
        compiler_params=pltpu.CompilerParams(
            dimension_semantics=("parallel",)),
    )(h, src_bias, p["ln1"], p["wqkv"], p["wo"], p["ln2"], p["wi"], p["wo_ff"], p["ln_f"])


# ----------------------------------------------------------------------------
# Pallas kernel 2: fused decoder layer (self-attn + cross-attn + FFN, one launch)
# ----------------------------------------------------------------------------
def _decoder_layer_kernel(h_ref, enc_ref, sbias_ref, ln1_ref, wqkv_ref, wo1_ref,
                          ln2_ref, wq_ref, wkv_ref, wo2_ref, ln3_ref, wi_ref,
                          wo_ff_ref, lnf_ref, o_ref, *, n_heads, head_dim):
    o_ref[...] = _decoder_layer_math(
        h_ref[...], enc_ref[...], sbias_ref[...], ln1_ref[...], wqkv_ref[...],
        wo1_ref[...], ln2_ref[...], wq_ref[...], wkv_ref[...], wo2_ref[...],
        ln3_ref[...], wi_ref[...], wo_ff_ref[...], lnf_ref[...],
        n_heads=n_heads, head_dim=head_dim).astype(o_ref.dtype)


def decoder_layer_pallas(h, enc_out, src_bias, p, n_heads, head_dim):
    B, Tt, D = h.shape
    Ts = enc_out.shape[1]
    inner = n_heads * head_dim
    d_ff = p["wo_ff"].shape[0]
    kern = functools.partial(_decoder_layer_kernel, n_heads=n_heads, head_dim=head_dim)

    def full2d(shape):
        return pl.BlockSpec(shape, lambda b: (0, 0))

    return pl.pallas_call(
        kern,
        out_shape=jax.ShapeDtypeStruct((B, Tt, D), jnp.float32),
        grid_spec=pltpu.PrefetchScalarGridSpec(
            num_scalar_prefetch=0,
            grid=(B,),
            in_specs=[
                pl.BlockSpec((None, Tt, D), lambda b: (b, 0, 0)),  # decoder stream
                pl.BlockSpec((None, Ts, D), lambda b: (b, 0, 0)),  # encoder output
                pl.BlockSpec((None, 1, Ts), lambda b: (b, 0, 0)),  # src key bias
                full2d((1, D)),            # ln1
                full2d((D, 3 * inner)),    # self wqkv
                full2d((inner, D)),        # self wo
                full2d((1, D)),            # ln2
                full2d((D, inner)),        # cross wq
                full2d((D, 2 * inner)),    # cross wkv (fused K|V)
                full2d((inner, D)),        # cross wo
                full2d((1, D)),            # ln3
                full2d((D, 2 * d_ff)),     # wi
                full2d((d_ff, D)),         # wo_ff
                full2d((1, D)),            # ln_f
            ],
            out_specs=pl.BlockSpec((None, Tt, D), lambda b: (b, 0, 0))),
        compiler_params=pltpu.CompilerParams(
            dimension_semantics=("parallel",)),
    )(h, enc_out, src_bias, p["ln1"], p["wqkv"], p["wo_self"], p["ln2"],
      p["wq"], p["wkv"], p["wo_cross"], p["ln3"], p["wi"], p["wo_ff"], p["ln_f"])


# ----------------------------------------------------------------------------
# Pallas kernel 3: fused LM head + cross-entropy with vocab-tiled online LSE
#   grid over vocab tiles ("arbitrary"); running max / sum-exp / gathered-logit
#   live in VMEM scratch; logits never leave VMEM; (1,1) mean NLL output.
# ----------------------------------------------------------------------------
def _lmhead_ce_kernel(x_ref, w_ref, labels_ref, out_ref, m_sc, l_sc, g_sc):
    j = pl.program_id(0)
    tv = w_ref.shape[1]

    @pl.when(j == 0)
    def _():
        m_sc[...] = jnp.full_like(m_sc, -jnp.inf)
        l_sc[...] = jnp.zeros_like(l_sc)
        g_sc[...] = jnp.zeros_like(g_sc)

    logits = jnp.dot(x_ref[...], w_ref[...],
                     preferred_element_type=jnp.float32)          # (N, tv) f32
    labels = labels_ref[...]                                      # (N, 1) i32
    col = lax.broadcasted_iota(jnp.int32, logits.shape, 1) + j * tv
    g_sc[...] = g_sc[...] + jnp.sum(jnp.where(col == labels, logits, 0.0),
                                    axis=-1, keepdims=True)
    m_new = jnp.maximum(m_sc[...], jnp.max(logits, axis=-1, keepdims=True))
    l_sc[...] = (l_sc[...] * jnp.exp(m_sc[...] - m_new)
                 + jnp.sum(jnp.exp(logits - m_new), axis=-1, keepdims=True))
    m_sc[...] = m_new

    @pl.when(j == pl.num_programs(0) - 1)
    def _():
        valid = labels != -100                                    # ignore_index
        lse = m_sc[...] + jnp.log(l_sc[...])
        loss = jnp.where(valid, lse - g_sc[...], 0.0)             # (N, 1)
        loss_sum = jnp.sum(loss, axis=0, keepdims=True)           # (1, 1)
        valid_sum = jnp.sum(valid.astype(jnp.float32), axis=0, keepdims=True)
        out_ref[...] = loss_sum / jnp.maximum(valid_sum, 1.0)


def lmhead_ce_pallas(x, w, labels):
    """x: (N, D) f32, w: (D, V) bf16, labels: (N,) -> scalar mean NLL over labels != -100."""
    n_rows, d = x.shape
    V = w.shape[1]
    tv = 256 if V % 256 == 0 else V                               # vocab tile
    return pl.pallas_call(
        _lmhead_ce_kernel,
        out_shape=jax.ShapeDtypeStruct((1, 1), jnp.float32),
        grid_spec=pltpu.PrefetchScalarGridSpec(
            num_scalar_prefetch=0,
            grid=(V // tv,),
            in_specs=[pl.BlockSpec((n_rows, d), lambda j: (0, 0)),   # activations resident
                      pl.BlockSpec((d, tv), lambda j: (0, j)),       # vocab tile streamed
                      pl.BlockSpec((n_rows, 1), lambda j: (0, 0))],  # labels resident
            out_specs=pl.BlockSpec((1, 1), lambda j: (0, 0)),
            scratch_shapes=[pltpu.VMEM((n_rows, 1), jnp.float32),    # running max
                            pltpu.VMEM((n_rows, 1), jnp.float32),    # running sum-exp
                            pltpu.VMEM((n_rows, 1), jnp.float32)]),  # gathered logit
        compiler_params=pltpu.CompilerParams(
            dimension_semantics=("arbitrary",),
            vmem_limit_bytes=32 * 1024 * 1024),
    )(x.astype(jnp.bfloat16), w, labels.reshape(n_rows, 1).astype(jnp.int32))[0, 0]


# ----------------------------------------------------------------------------
# Pure-JAX reference ops (same math, via vmap) for the correctness check
# ----------------------------------------------------------------------------
def encoder_layer_jnp(h, src_bias, p, n_heads, head_dim):
    def fn(hb, bb):
        return _encoder_layer_math(hb, bb, p["ln1"], p["wqkv"], p["wo"], p["ln2"],
                                   p["wi"], p["wo_ff"], p["ln_f"],
                                   n_heads=n_heads, head_dim=head_dim)
    return jax.vmap(fn)(h, src_bias)


def decoder_layer_jnp(h, enc_out, src_bias, p, n_heads, head_dim):
    def fn(hb, eb, bb):
        return _decoder_layer_math(hb, eb, bb, p["ln1"], p["wqkv"], p["wo_self"],
                                   p["ln2"], p["wq"], p["wkv"], p["wo_cross"],
                                   p["ln3"], p["wi"], p["wo_ff"], p["ln_f"],
                                   n_heads=n_heads, head_dim=head_dim)
    return jax.vmap(fn)(h, enc_out, src_bias)


def lmhead_ce_jnp(x, w, labels):
    logits = jnp.dot(x.astype(jnp.bfloat16), w, preferred_element_type=jnp.float32)
    valid = labels != -100
    safe = jnp.where(valid, labels, 0)
    logp = jax.nn.log_softmax(logits, axis=-1)
    nll = -jnp.take_along_axis(logp, safe[:, None], axis=-1)[:, 0]
    nll = jnp.where(valid, nll, 0.0)
    return jnp.sum(nll) / jnp.maximum(jnp.sum(valid.astype(jnp.float32)), 1.0)


PALLAS_OPS = {"enc": encoder_layer_pallas, "dec": decoder_layer_pallas, "lmce": lmhead_ce_pallas}
JNP_OPS = {"enc": encoder_layer_jnp, "dec": decoder_layer_jnp, "lmce": lmhead_ce_jnp}


# ----------------------------------------------------------------------------
# Model glue (embedding lookup + bias construction stay in XLA)
# ----------------------------------------------------------------------------
def generator_forward(params, src_input, src_mask, tgt_input, tgt_output, cfg, ops):
    """Equivalent of Generator.forward: returns the scalar cross-entropy loss."""
    H, hd, D = cfg["n_heads"], cfg["head_dim"], cfg["d_model"]
    enc_layer, dec_layer, lmce = ops["enc"], ops["dec"], ops["lmce"]

    src_mask = src_mask.astype(src_input.dtype)   # mirrors src_mask.type(src_input.type())
    # Precomputed additive key-padding bias (B, 1, Ts), hoisted out of the kernels.
    src_bias = jnp.where(src_mask[:, None, :] > 0, 0.0, -1e9).astype(jnp.float32)

    # ---- encoder (one fused Pallas launch) --------------------------------
    h_enc = params["embed"][src_input]            # (B, Ts, D) f32
    enc_out = enc_layer(h_enc, src_bias, params["enc"], H, hd)

    # ---- decoder (one fused Pallas launch) --------------------------------
    h_dec = params["embed"][tgt_input]            # (B, Tt, D) f32
    dec_out = dec_layer(h_dec, enc_out, src_bias, params["dec"], H, hd)

    # ---- fused LM head + cross-entropy (vocab-tiled online LSE) -----------
    labels = tgt_output.reshape(-1).astype(jnp.int32)
    return lmce(dec_out.reshape(-1, D), params["lm_head"], labels)


# ----------------------------------------------------------------------------
# Deterministic parameter init (matmul weights stored in bf16 once; ln / embed f32)
# ----------------------------------------------------------------------------
def init_params(key, vocab, d_model, d_ff, n_heads, head_dim):
    keys = iter(jax.random.split(key, 24))
    inner = n_heads * head_dim

    def w(shape, scale=0.02):
        return (jax.random.normal(next(keys), shape, jnp.float32) * scale).astype(jnp.bfloat16)

    def ln():
        return jnp.ones((1, d_model), jnp.float32)

    embed = jax.random.normal(next(keys), (vocab, d_model), jnp.float32)
    return {
        "embed": embed,
        "lm_head": w((d_model, vocab)),
        "enc": {"ln1": ln(), "ln2": ln(), "ln_f": ln(),
                "wqkv": w((d_model, 3 * inner)), "wo": w((inner, d_model)),
                "wi": w((d_model, 2 * d_ff)), "wo_ff": w((d_ff, d_model))},
        "dec": {"ln1": ln(), "ln2": ln(), "ln3": ln(), "ln_f": ln(),
                "wqkv": w((d_model, 3 * inner)), "wo_self": w((inner, d_model)),
                "wq": w((d_model, inner)), "wkv": w((d_model, 2 * inner)),
                "wo_cross": w((inner, d_model)),
                "wi": w((d_model, 2 * d_ff)), "wo_ff": w((d_ff, d_model))},
    }


# ----------------------------------------------------------------------------
if __name__ == "__main__":
    cfg = {"vocab": 512, "d_model": 128, "d_ff": 256, "n_heads": 4, "head_dim": 32}
    B, Ts, Tt = 2, 16, 8

    root = jax.random.PRNGKey(0)
    kp, k1, k2, k3 = jax.random.split(root, 4)
    params = init_params(kp, cfg["vocab"], cfg["d_model"], cfg["d_ff"],
                         cfg["n_heads"], cfg["head_dim"])

    src_input = jax.random.randint(k1, (B, Ts), 0, cfg["vocab"], dtype=jnp.int32)
    src_mask = jnp.ones((B, Ts), jnp.int32).at[:, 12:].set(0)   # last 4 src tokens padded
    tgt_input = jax.random.randint(k2, (B, Tt), 0, cfg["vocab"], dtype=jnp.int32)
    tgt_output = jax.random.randint(k3, (B, Tt), 0, cfg["vocab"], dtype=jnp.int32)
    tgt_output = tgt_output.at[:, -1].set(-100)                 # ignore_index positions

    pallas_fwd = jax.jit(functools.partial(generator_forward, cfg=cfg, ops=PALLAS_OPS))
    jnp_fwd = jax.jit(functools.partial(generator_forward, cfg=cfg, ops=JNP_OPS))

    loss = pallas_fwd(params, src_input, src_mask, tgt_input, tgt_output)
    jax.block_until_ready(loss)

    loss_ref = jnp_fwd(params, src_input, src_mask, tgt_input, tgt_output)
    jax.block_until_ready(loss_ref)

    assert loss.shape == () and loss.dtype == jnp.float32
    # bf16 matmul operands => compare at 1e-2.
    assert jnp.allclose(loss, loss_ref, rtol=1e-2, atol=1e-2), (loss, loss_ref)
    print("KERNEL_OK")
</pallas_src>

<mosaic_0001>
module attributes {stable_mosaic.version = 11 : i64} {
  func.func @_encoder_layer_kernel(%arg0: i32, %arg1: memref<1x16x128xf32, #tpu.memory_space<vmem>>, %arg2: memref<1x1x16xf32, #tpu.memory_space<vmem>>, %arg3: memref<1x128xf32, #tpu.memory_space<vmem>>, %arg4: memref<128x384xbf16, #tpu.memory_space<vmem>>, %arg5: memref<128x128xbf16, #tpu.memory_space<vmem>>, %arg6: memref<1x128xf32, #tpu.memory_space<vmem>>, %arg7: memref<128x512xbf16, #tpu.memory_space<vmem>>, %arg8: memref<256x128xbf16, #tpu.memory_space<vmem>>, %arg9: memref<1x128xf32, #tpu.memory_space<vmem>>, %arg10: memref<1x16x128xf32, #tpu.memory_space<vmem>>) attributes {dimension_semantics = [#tpu.dimension_semantics<parallel>], iteration_bounds = array<i64: 2>, scalar_prefetch = 0 : i64, scratch_operands = 0 : i64, tpu.core_type = #tpu.core_type<tc>, window_params = [{transform_indices = @transform_0, window_bounds = array<i64: 1, 16, 128>}, {transform_indices = @transform_1, window_bounds = array<i64: 1, 1, 16>}, {pipeline_mode = #tpu.pipeline_mode<synchronous>, transform_indices = @transform_2, window_bounds = array<i64: 1, 128>}, {pipeline_mode = #tpu.pipeline_mode<synchronous>, transform_indices = @transform_3, window_bounds = array<i64: 128, 384>}, {pipeline_mode = #tpu.pipeline_mode<synchronous>, transform_indices = @transform_4, window_bounds = array<i64: 128, 128>}, {pipeline_mode = #tpu.pipeline_mode<synchronous>, transform_indices = @transform_5, window_bounds = array<i64: 1, 128>}, {pipeline_mode = #tpu.pipeline_mode<synchronous>, transform_indices = @transform_6, window_bounds = array<i64: 128, 512>}, {pipeline_mode = #tpu.pipeline_mode<synchronous>, transform_indices = @transform_7, window_bounds = array<i64: 256, 128>}, {pipeline_mode = #tpu.pipeline_mode<synchronous>, transform_indices = @transform_8, window_bounds = array<i64: 1, 128>}, {transform_indices = @transform_9, window_bounds = array<i64: 1, 16, 128>}]} {
    %c0 = arith.constant 0 : index
    %c0_0 = arith.constant 0 : index
    %c0_1 = arith.constant 0 : index
    %0 = vector.load %arg1[%c0, %c0_0, %c0_1] : memref<1x16x128xf32, #tpu.memory_space<vmem>>, vector<1x16x128xf32>
    %1 = vector.shape_cast %0 : vector<1x16x128xf32> to vector<16x128xf32>
    %c0_2 = arith.constant 0 : index
    %c0_3 = arith.constant 0 : index
    %c0_4 = arith.constant 0 : index
    %2 = vector.load %arg2[%c0_2, %c0_3, %c0_4] : memref<1x1x16xf32, #tpu.memory_space<vmem>>, vector<1x1x16xf32>
    %3 = vector.shape_cast %2 : vector<1x1x16xf32> to vector<1x16xf32>
    %c0_5 = arith.constant 0 : index
    %c0_6 = arith.constant 0 : index
    %4 = vector.load %arg3[%c0_5, %c0_6] : memref<1x128xf32, #tpu.memory_space<vmem>>, vector<1x128xf32>
    %c0_7 = arith.constant 0 : index
    %c0_8 = arith.constant 0 : index
    %5 = vector.load %arg4[%c0_7, %c0_8] : memref<128x384xbf16, #tpu.memory_space<vmem>>, vector<128x384xbf16>
    %c0_9 = arith.constant 0 : index
    %c0_10 = arith.constant 0 : index
    %6 = vector.load %arg5[%c0_9, %c0_10] : memref<128x128xbf16, #tpu.memory_space<vmem>>, vector<128x128xbf16>
    %c0_11 = arith.constant 0 : index
    %c0_12 = arith.constant 0 : index
    %7 = vector.load %arg6[%c0_11, %c0_12] : memref<1x128xf32, #tpu.memory_space<vmem>>, vector<1x128xf32>
    %c0_13 = arith.constant 0 : index
    %c0_14 = arith.constant 0 : index
    %8 = vector.load %arg7[%c0_13, %c0_14] : memref<128x512xbf16, #tpu.memory_space<vmem>>, vector<128x512xbf16>
    %c0_15 = arith.constant 0 : index
    %c0_16 = arith.constant 0 : index
    %9 = vector.load %arg8[%c0_15, %c0_16] : memref<256x128xbf16, #tpu.memory_space<vmem>>, vector<256x128xbf16>
    %c0_17 = arith.constant 0 : index
    %c0_18 = arith.constant 0 : index
    %10 = vector.load %arg9[%c0_17, %c0_18] : memref<1x128xf32, #tpu.memory_space<vmem>>, vector<1x128xf32>
    %11 = arith.mulf %1, %1 : vector<16x128xf32>
    %cst = arith.constant dense<0.000000e+00> : vector<16xf32>
    %12 = vector.multi_reduction <add>, %11, %cst [1] : vector<16x128xf32> to vector<16xf32>
    %13 = vector.shape_cast %12 : vector<16xf32> to vector<16x1xf32>
    %cst_19 = arith.constant 1.280000e+02 : f32
    %14 = vector.broadcast %cst_19 : f32 to vector<16x1xf32>
    %15 = arith.divf %13, %14 : vector<16x1xf32>
    %cst_20 = arith.constant 9.99999997E-7 : f32
    %16 = vector.broadcast %cst_20 : f32 to vector<16x1xf32>
    %17 = arith.addf %15, %16 : vector<16x1xf32>
    %18 = math.rsqrt %17 : vector<16x1xf32>
    %19 = vector.broadcast %18 : vector<16x1xf32> to vector<16x128xf32>
    %20 = arith.mulf %1, %19 : vector<16x128xf32>
    %21 = vector.broadcast %4 : vector<1x128xf32> to vector<16x128xf32>
    %22 = arith.mulf %20, %21 : vector<16x128xf32>
    %23 = arith.truncf %22 : vector<16x128xf32> to vector<16x128xbf16>
    %cst_21 = arith.constant dense<0.000000e+00> : vector<16x384xf32>
    %24 = tpu.matmul %23, %5, %cst_21 {dimension_numbers = #tpu.dot_dimension_numbers<[1], [0], [0], [1], [0, 0, 1, 1], [], []>} : vector<16x128xbf16>, vector<128x384xbf16>, vector<16x384xf32> -> vector<16x384xf32>
    %25 = vector.extract_strided_slice %24 {offsets = [0, 0], sizes = [16, 128], strides = [1, 1]} : vector<16x384xf32> to vector<16x128xf32>
    %26 = vector.extract_strided_slice %24 {offsets = [0, 128], sizes = [16, 128], strides = [1, 1]} : vector<16x384xf32> to vector<16x128xf32>
    %27 = vector.extract_strided_slice %24 {offsets = [0, 256], sizes = [16, 128], strides = [1, 1]} : vector<16x384xf32> to vector<16x128xf32>
    %28 = vector.extract_strided_slice %25 {offsets = [0, 0], sizes = [16, 32], strides = [1, 1]} : vector<16x128xf32> to vector<16x32xf32>
    %29 = arith.truncf %28 : vector<16x32xf32> to vector<16x32xbf16>
    %30 = vector.extract_strided_slice %26 {offsets = [0, 0], sizes = [16, 32], strides = [1, 1]} : vector<16x128xf32> to vector<16x32xf32>
    %31 = arith.truncf %30 : vector<16x32xf32> to vector<16x32xbf16>
    "tpu.trace_start"() <{level = 10 : i32, message = "qd,kd->qk"}> : () -> ()
    %cst_22 = arith.constant dense<0.000000e+00> : vector<16x16xf32>
    %32 = tpu.matmul %29, %31, %cst_22 {dimension_numbers = #tpu.dot_dimension_numbers<[1], [1], [0], [0], [0, 0, 1, 0], [], []>} : vector<16x32xbf16>, vector<16x32xbf16>, vector<16x16xf32> -> vector<16x16xf32>
    "tpu.trace_stop"() : () -> ()
    %33 = vector.broadcast %3 : vector<1x16xf32> to vector<16x16xf32>
    %34 = arith.addf %32, %33 : vector<16x16xf32>
    %cst_23 = arith.constant dense<0xFF800000> : vector<16xf32>
    %35 = vector.multi_reduction <maximumf>, %34, %cst_23 [1] : vector<16x16xf32> to vector<16xf32>
    %36 = vector.shape_cast %35 : vector<16xf32> to vector<16x1xf32>
    %37 = vector.broadcast %36 : vector<16x1xf32> to vector<16x16xf32>
    %38 = arith.subf %34, %37 : vector<16x16xf32>
    %39 = math.exp %38 : vector<16x16xf32>
    %cst_24 = arith.constant dense<0.000000e+00> : vector<16xf32>
    %40 = vector.multi_reduction <add>, %39, %cst_24 [1] : vector<16x16xf32> to vector<16xf32>
    %41 = vector.shape_cast %40 : vector<16xf32> to vector<16x1xf32>
    %42 = vector.broadcast %41 : vector<16x1xf32> to vector<16x16xf32>
    %43 = arith.divf %39, %42 : vector<16x16xf32>
    %44 = arith.truncf %43 : vector<16x16xf32> to vector<16x16xbf16>
    %45 = vector.extract_strided_slice %27 {offsets = [0, 0], sizes = [16, 32], strides = [1, 1]} : vector<16x128xf32> to vector<16x32xf32>
    %46 = arith.truncf %45 : vector<16x32xf32> to vector<16x32xbf16>
    %cst_25 = arith.constant dense<0.000000e+00> : vector<16x32xf32>
    %47 = tpu.matmul %44, %46, %cst_25 {dimension_numbers = #tpu.dot_dimension_numbers<[1], [0], [0], [1], [0, 0, 1, 1], [], []>} : vector<16x16xbf16>, vector<16x32xbf16>, vector<16x32xf32> -> vector<16x32xf32>
    %48 = vector.extract_strided_slice %25 {offsets = [0, 32], sizes = [16, 32], strides = [1, 1]} : vector<16x128xf32> to vector<16x32xf32>
    %49 = arith.truncf %48 : vector<16x32xf32> to vector<16x32xbf16>
    %50 = vector.extract_strided_slice %26 {offsets = [0, 32], sizes = [16, 32], strides = [1, 1]} : vector<16x128xf32> to vector<16x32xf32>
    %51 = arith.truncf %50 : vector<16x32xf32> to vector<16x32xbf16>
    "tpu.trace_start"() <{level = 10 : i32, message = "qd,kd->qk"}> : () -> ()
    %cst_26 = arith.constant dense<0.000000e+00> : vector<16x16xf32>
    %52 = tpu.matmul %49, %51, %cst_26 {dimension_numbers = #tpu.dot_dimension_numbers<[1], [1], [0], [0], [0, 0, 1, 0], [], []>} : vector<16x32xbf16>, vector<16x32xbf16>, vector<16x16xf32> -> vector<16x16xf32>
    "tpu.trace_stop"() : () -> ()
    %53 = vector.broadcast %3 : vector<1x16xf32> to vector<16x16xf32>
    %54 = arith.addf %52, %53 : vector<16x16xf32>
    %cst_27 = arith.constant dense<0xFF800000> : vector<16xf32>
    %55 = vector.multi_reduction <maximumf>, %54, %cst_27 [1] : vector<16x16xf32> to vector<16xf32>
    %56 = vector.shape_cast %55 : vector<16xf32> to vector<16x1xf32>
    %57 = vector.broadcast %56 : vector<16x1xf32> to vector<16x16xf32>
    %58 = arith.subf %54, %57 : vector<16x16xf32>
    %59 = math.exp %58 : vector<16x16xf32>
    %cst_28 = arith.constant dense<0.000000e+00> : vector<16xf32>
    %60 = vector.multi_reduction <add>, %59, %cst_28 [1] : vector<16x16xf32> to vector<16xf32>
    %61 = vector.shape_cast %60 : vector<16xf32> to vector<16x1xf32>
    %62 = vector.broadcast %61 : vector<16x1xf32> to vector<16x16xf32>
    %63 = arith.divf %59, %62 : vector<16x16xf32>
    %64 = arith.truncf %63 : vector<16x16xf32> to vector<16x16xbf16>
    %65 = vector.extract_strided_slice %27 {offsets = [0, 32], sizes = [16, 32], strides = [1, 1]} : vector<16x128xf32> to vector<16x32xf32>
    %66 = arith.truncf %65 : vector<16x32xf32> to vector<16x32xbf16>
    %cst_29 = arith.constant dense<0.000000e+00> : vector<16x32xf32>
    %67 = tpu.matmul %64, %66, %cst_29 {dimension_numbers = #tpu.dot_dimension_numbers<[1], [0], [0], [1], [0, 0, 1, 1], [], []>} : vector<16x16xbf16>, vector<16x32xbf16>, vector<16x32xf32> -> vector<16x32xf32>
    %68 = vector.extract_strided_slice %25 {offsets = [0, 64], sizes = [16, 32], strides = [1, 1]} : vector<16x128xf32> to vector<16x32xf32>
    %69 = arith.truncf %68 : vector<16x32xf32> to vector<16x32xbf16>
    %70 = vector.extract_strided_slice %26 {offsets = [0, 64], sizes = [16, 32], strides = [1, 1]} : vector<16x128xf32> to vector<16x32xf32>
    %71 = arith.truncf %70 : vector<16x32xf32> to vector<16x32xbf16>
    "tpu.trace_start"() <{level = 10 : i32, message = "qd,kd->qk"}> : () -> ()
    %cst_30 = arith.constant dense<0.000000e+00> : vector<16x16xf32>
    %72 = tpu.matmul %69, %71, %cst_30 {dimension_numbers = #tpu.dot_dimension_numbers<[1], [1], [0], [0], [0, 0, 1, 0], [], []>} : vector<16x32xbf16>, vector<16x32xbf16>, vector<16x16xf32> -> vector<16x16xf32>
    "tpu.trace_stop"() : () -> ()
    %73 = vector.broadcast %3 : vector<1x16xf32> to vector<16x16xf32>
    %74 = arith.addf %72, %73 : vector<16x16xf32>
    %cst_31 = arith.constant dense<0xFF800000> : vector<16xf32>
    %75 = vector.multi_reduction <maximumf>, %74, %cst_31 [1] : vector<16x16xf32> to vector<16xf32>
    %76 = vector.shape_cast %75 : vector<16xf32> to vector<16x1xf32>
    %77 = vector.broadcast %76 : vector<16x1xf32> to vector<16x16xf32>
    %78 = arith.subf %74, %77 : vector<16x16xf32>
    %79 = math.exp %78 : vector<16x16xf32>
    %cst_32 = arith.constant dense<0.000000e+00> : vector<16xf32>
    %80 = vector.multi_reduction <add>, %79, %cst_32 [1] : vector<16x16xf32> to vector<16xf32>
    %81 = vector.shape_cast %80 : vector<16xf32> to vector<16x1xf32>
    %82 = vector.broadcast %81 : vector<16x1xf32> to vector<16x16xf32>
    %83 = arith.divf %79, %82 : vector<16x16xf32>
    %84 = arith.truncf %83 : vector<16x16xf32> to vector<16x16xbf16>
    %85 = vector.extract_strided_slice %27 {offsets = [0, 64], sizes = [16, 32], strides = [1, 1]} : vector<16x128xf32> to vector<16x32xf32>
    %86 = arith.truncf %85 : vector<16x32xf32> to vector<16x32xbf16>
    %cst_33 = arith.constant dense<0.000000e+00> : vector<16x32xf32>
    %87 = tpu.matmul %84, %86, %cst_33 {dimension_numbers = #tpu.dot_dimension_numbers<[1], [0], [0], [1], [0, 0, 1, 1], [], []>} : vector<16x16xbf16>, vector<16x32xbf16>, vector<16x32xf32> -> vector<16x32xf32>
    %88 = vector.extract_strided_slice %25 {offsets = [0, 96], sizes = [16, 32], strides = [1, 1]} : vector<16x128xf32> to vector<16x32xf32>
    %89 = arith.truncf %88 : vector<16x32xf32> to vector<16x32xbf16>
    %90 = vector.extract_strided_slice %26 {offsets = [0, 96], sizes = [16, 32], strides = [1, 1]} : vector<16x128xf32> to vector<16x32xf32>
    %91 = arith.truncf %90 : vector<16x32xf32> to vector<16x32xbf16>
    "tpu.trace_start"() <{level = 10 : i32, message = "qd,kd->qk"}> : () -> ()
    %cst_34 = arith.constant dense<0.000000e+00> : vector<16x16xf32>
    %92 = tpu.matmul %89, %91, %cst_34 {dimension_numbers = #tpu.dot_dimension_numbers<[1], [1], [0], [0], [0, 0, 1, 0], [], []>} : vector<16x32xbf16>, vector<16x32xbf16>, vector<16x16xf32> -> vector<16x16xf32>
    "tpu.trace_stop"() : () -> ()
    %93 = vector.broadcast %3 : vector<1x16xf32> to vector<16x16xf32>
    %94 = arith.addf %92, %93 : vector<16x16xf32>
    %cst_35 = arith.constant dense<0xFF800000> : vector<16xf32>
    %95 = vector.multi_reduction <maximumf>, %94, %cst_35 [1] : vector<16x16xf32> to vector<16xf32>
    %96 = vector.shape_cast %95 : vector<16xf32> to vector<16x1xf32>
    %97 = vector.broadcast %96 : vector<16x1xf32> to vector<16x16xf32>
    %98 = arith.subf %94, %97 : vector<16x16xf32>
    %99 = math.exp %98 : vector<16x16xf32>
    %cst_36 = arith.constant dense<0.000000e+00> : vector<16xf32>
    %100 = vector.multi_reduction <add>, %99, %cst_36 [1] : vector<16x16xf32> to vector<16xf32>
    %101 = vector.shape_cast %100 : vector<16xf32> to vector<16x1xf32>
    %102 = vector.broadcast %101 : vector<16x1xf32> to vector<16x16xf32>
    %103 = arith.divf %99, %102 : vector<16x16xf32>
    %104 = arith.truncf %103 : vector<16x16xf32> to vector<16x16xbf16>
    %105 = vector.extract_strided_slice %27 {offsets = [0, 96], sizes = [16, 32], strides = [1, 1]} : vector<16x128xf32> to vector<16x32xf32>
    %106 = arith.truncf %105 : vector<16x32xf32> to vector<16x32xbf16>
    %cst_37 = arith.constant dense<0.000000e+00> : vector<16x32xf32>
    %107 = tpu.matmul %104, %106, %cst_37 {dimension_numbers = #tpu.dot_dimension_numbers<[1], [0], [0], [1], [0, 0, 1, 1], [], []>} : vector<16x16xbf16>, vector<16x32xbf16>, vector<16x32xf32> -> vector<16x32xf32>
    %108 = tpu.concatenate %47, %67, %87, %107 in 1 : vector<16x32xf32>, vector<16x32xf32>, vector<16x32xf32>, vector<16x32xf32> -> vector<16x128xf32>
    %109 = arith.truncf %108 : vector<16x128xf32> to vector<16x128xbf16>
    %cst_38 = arith.constant dense<0.000000e+00> : vector<16x128xf32>
    %110 = tpu.matmul %109, %6, %cst_38 {dimension_numbers = #tpu.dot_dimension_numbers<[1], [0], [0], [1], [0, 0, 1, 1], [], []>} : vector<16x128xbf16>, vector<128x128xbf16>, vector<16x128xf32> -> vector<16x128xf32>
    %111 = arith.addf %1, %110 : vector<16x128xf32>
    %112 = arith.mulf %111, %111 : vector<16x128xf32>
    %cst_39 = arith.constant dense<0.000000e+00> : vector<16xf32>
    %113 = vector.multi_reduction <add>, %112, %cst_39 [1] : vector<16x128xf32> to vector<16xf32>
    %114 = vector.shape_cast %113 : vector<16xf32> to vector<16x1xf32>
    %cst_40 = arith.constant 1.280000e+02 : f32
    %115 = vector.broadcast %cst_40 : f32 to vector<16x1xf32>
    %116 = arith.divf %114, %115 : vector<16x1xf32>
    %cst_41 = arith.constant 9.99999997E-7 : f32
    %117 = vector.broadcast %cst_41 : f32 to vector<16x1xf32>
    %118 = arith.addf %116, %117 : vector<16x1xf32>
    %119 = math.rsqrt %118 : vector<16x1xf32>
    %120 = vector.broadcast %119 : vector<16x1xf32> to vector<16x128xf32>
    %121 = arith.mulf %111, %120 : vector<16x128xf32>
    %122 = vector.broadcast %7 : vector<1x128xf32> to vector<16x128xf32>
    %123 = arith.mulf %121, %122 : vector<16x128xf32>
    %124 = arith.truncf %123 : vector<16x128xf32> to vector<16x128xbf16>
    %cst_42 = arith.constant dense<0.000000e+00> : vector<16x512xf32>
    %125 = tpu.matmul %124, %8, %cst_42 {dimension_numbers = #tpu.dot_dimension_numbers<[1], [0], [0], [1], [0, 0, 1, 1], [], []>} : vector<16x128xbf16>, vector<128x512xbf16>, vector<16x512xf32> -> vector<16x512xf32>
    %126 = vector.extract_strided_slice %125 {offsets = [0, 0], sizes = [16, 256], strides = [1, 1]} : vector<16x512xf32> to vector<16x256xf32>
    %127 = arith.mulf %126, %126 : vector<16x256xf32>
    %128 = arith.mulf %126, %127 : vector<16x256xf32>
    %cst_43 = arith.constant 4.471500e-02 : f32
    %129 = vector.broadcast %cst_43 : f32 to vector<16x256xf32>
    %130 = arith.mulf %129, %128 : vector<16x256xf32>
    %131 = arith.addf %126, %130 : vector<16x256xf32>
    %cst_44 = arith.constant 0.797884583 : f32
    %132 = vector.broadcast %cst_44 : f32 to vector<16x256xf32>
    %133 = arith.mulf %132, %131 : vector<16x256xf32>
    %134 = math.tanh %133 : vector<16x256xf32>
    %cst_45 = arith.constant 1.000000e+00 : f32
    %135 = vector.broadcast %cst_45 : f32 to vector<16x256xf32>
    %136 = arith.addf %135, %134 : vector<16x256xf32>
    %cst_46 = arith.constant 5.000000e-01 : f32
    %137 = vector.broadcast %cst_46 : f32 to vector<16x256xf32>
    %138 = arith.mulf %137, %136 : vector<16x256xf32>
    %139 = arith.mulf %126, %138 : vector<16x256xf32>
    %140 = vector.extract_strided_slice %125 {offsets = [0, 256], sizes = [16, 256], strides = [1, 1]} : vector<16x512xf32> to vector<16x256xf32>
    %141 = arith.mulf %139, %140 : vector<16x256xf32>
    %142 = arith.truncf %141 : vector<16x256xf32> to vector<16x256xbf16>
    %cst_47 = arith.constant dense<0.000000e+00> : vector<16x128xf32>
    %143 = tpu.matmul %142, %9, %cst_47 {dimension_numbers = #tpu.dot_dimension_numbers<[1], [0], [0], [1], [0, 0, 1, 1], [], []>} : vector<16x256xbf16>, vector<256x128xbf16>, vector<16x128xf32> -> vector<16x128xf32>
    %144 = arith.addf %111, %143 : vector<16x128xf32>
    %145 = arith.mulf %144, %144 : vector<16x128xf32>
    %cst_48 = arith.constant dense<0.000000e+00> : vector<16xf32>
    %146 = vector.multi_reduction <add>, %145, %cst_48 [1] : vector<16x128xf32> to vector<16xf32>
    %147 = vector.shape_cast %146 : vector<16xf32> to vector<16x1xf32>
    %cst_49 = arith.constant 1.280000e+02 : f32
    %148 = vector.broadcast %cst_49 : f32 to vector<16x1xf32>
    %149 = arith.divf %147, %148 : vector<16x1xf32>
    %cst_50 = arith.constant 9.99999997E-7 : f32
    %150 = vector.broadcast %cst_50 : f32 to vector<16x1xf32>
    %151 = arith.addf %149, %150 : vector<16x1xf32>
    %152 = math.rsqrt %151 : vector<16x1xf32>
    %153 = vector.broadcast %152 : vector<16x1xf32> to vector<16x128xf32>
    %154 = arith.mulf %144, %153 : vector<16x128xf32>
    %155 = vector.broadcast %10 : vector<1x128xf32> to vector<16x128xf32>
    %156 = arith.mulf %154, %155 : vector<16x128xf32>
    %c0_51 = arith.constant 0 : index
    %c0_52 = arith.constant 0 : index
    %c0_53 = arith.constant 0 : index
    %157 = vector.load %arg10[%c0_51, %c0_52, %c0_53] : memref<1x16x128xf32, #tpu.memory_space<vmem>>, vector<1x16x128xf32>
    %158 = vector.shape_cast %157 : vector<1x16x128xf32> to vector<16x128xf32>
    %159 = vector.shape_cast %156 : vector<16x128xf32> to vector<1x16x128xf32>
    tpu.vector_store %arg10[%c0_51, %c0_52, %c0_53], %159 {strides = array<i32>} : memref<1x16x128xf32, #tpu.memory_space<vmem>>, vector<1x16x128xf32>,
    return
  }
  func.func @transform_0(%arg0: i32) -> (i32, i32, i32) {
    %c0_i32 = arith.constant 0 : i32
    %c0_i32_0 = arith.constant 0 : i32
    %c0_i32_1 = arith.constant 0 : i32
    return %arg0, %c0_i32, %c0_i32_0 : i32, i32, i32
  }
  func.func @transform_1(%arg0: i32) -> (i32, i32, i32) {
    %c0_i32 = arith.constant 0 : i32
    %c0_i32_0 = arith.constant 0 : i32
    %c0_i32_1 = arith.constant 0 : i32
    return %arg0, %c0_i32, %c0_i32_0 : i32, i32, i32
  }
  func.func @transform_2(%arg0: i32) -> (i32, i32) {
    %c0_i32 = arith.constant 0 : i32
    %c0_i32_0 = arith.constant 0 : i32
    %c0_i32_1 = arith.constant 0 : i32
    return %c0_i32, %c0_i32_0 : i32, i32
  }
  func.func @transform_3(%arg0: i32) -> (i32, i32) {
    %c0_i32 = arith.constant 0 : i32
    %c0_i32_0 = arith.constant 0 : i32
    %c0_i32_1 = arith.constant 0 : i32
    return %c0_i32, %c0_i32_0 : i32, i32
  }
  func.func @transform_4(%arg0: i32) -> (i32, i32) {
    %c0_i32 = arith.constant 0 : i32
    %c0_i32_0 = arith.constant 0 : i32
    %c0_i32_1 = arith.constant 0 : i32
    return %c0_i32, %c0_i32_0 : i32, i32
  }
  func.func @transform_5(%arg0: i32) -> (i32, i32) {
    %c0_i32 = arith.constant 0 : i32
    %c0_i32_0 = arith.constant 0 : i32
    %c0_i32_1 = arith.constant 0 : i32
    return %c0_i32, %c0_i32_0 : i32, i32
  }
  func.func @transform_6(%arg0: i32) -> (i32, i32) {
    %c0_i32 = arith.constant 0 : i32
    %c0_i32_0 = arith.constant 0 : i32
    %c0_i32_1 = arith.constant 0 : i32
    return %c0_i32, %c0_i32_0 : i32, i32
  }
  func.func @transform_7(%arg0: i32) -> (i32, i32) {
    %c0_i32 = arith.constant 0 : i32
    %c0_i32_0 = arith.constant 0 : i32
    %c0_i32_1 = arith.constant 0 : i32
    return %c0_i32, %c0_i32_0 : i32, i32
  }
  func.func @transform_8(%arg0: i32) -> (i32, i32) {
    %c0_i32 = arith.constant 0 : i32
    %c0_i32_0 = arith.constant 0 : i32
    %c0_i32_1 = arith.constant 0 : i32
    return %c0_i32, %c0_i32_0 : i32, i32
  }
  func.func @transform_9(%arg0: i32) -> (i32, i32, i32) {
    %c0_i32 = arith.constant 0 : i32
    %c0_i32_0 = arith.constant 0 : i32
    %c0_i32_1 = arith.constant 0 : i32
    return %arg0, %c0_i32, %c0_i32_0 : i32, i32, i32
  }
}

module attributes {stable_mosaic.version = 11 : i64} {
  func.func @_lmhead_ce_kernel(%arg0: i32, %arg1: memref<16x128xbf16, #tpu.memory_space<vmem>>, %arg2: memref<128x256xbf16, #tpu.memory_space<vmem>>, %arg3: memref<16x1xi32, #tpu.memory_space<vmem>>, %arg4: memref<1x1xf32, #tpu.memory_space<vmem>>, %arg5: memref<16x1xf32, #tpu.memory_space<vmem>>, %arg6: memref<16x1xf32, #tpu.memory_space<vmem>>, %arg7: memref<16x1xf32, #tpu.memory_space<vmem>>) attributes {dimension_semantics = [#tpu.dimension_semantics<arbitrary>], iteration_bounds = array<i64: 2>, scalar_prefetch = 0 : i64, scratch_operands = 3 : i64, tpu.core_type = #tpu.core_type<tc>, window_params = [{pipeline_mode = #tpu.pipeline_mode<synchronous>, transform_indices = @transform_0, window_bounds = array<i64: 16, 128>}, {transform_indices = @transform_1, window_bounds = array<i64: 128, 256>}, {pipeline_mode = #tpu.pipeline_mode<synchronous>, transform_indices = @transform_2, window_bounds = array<i64: 16, 1>}, {pipeline_mode = #tpu.pipeline_mode<synchronous>, transform_indices = @transform_3, window_bounds = array<i64: 1, 1>}]} {
    %c0_i32 = arith.constant 0 : i32
    %0 = arith.cmpi eq, %arg0, %c0_i32 : i32
    %1 = arith.extui %0 : i1 to i32
    %c0_i32_0 = arith.constant 0 : i32
    %2 = arith.cmpi ne, %1, %c0_i32_0 : i32
    scf.if %2 {
      %cst_25 = arith.constant 0xFF800000 : f32
      %40 = vector.broadcast %cst_25 : f32 to vector<16x1xf32>
      %c0_26 = arith.constant 0 : index
      %c0_27 = arith.constant 0 : index
      %41 = vector.load %arg5[%c0_26, %c0_27] : memref<16x1xf32, #tpu.memory_space<vmem>>, vector<16x1xf32>
      tpu.vector_store %arg5[%c0_26, %c0_27], %40 {strides = array<i32>} : memref<16x1xf32, #tpu.memory_space<vmem>>, vector<16x1xf32>,
      %cst_28 = arith.constant 0.000000e+00 : f32
      %42 = vector.broadcast %cst_28 : f32 to vector<16x1xf32>
      %c0_29 = arith.constant 0 : index
      %c0_30 = arith.constant 0 : index
      %43 = vector.load %arg6[%c0_29, %c0_30] : memref<16x1xf32, #tpu.memory_space<vmem>>, vector<16x1xf32>
      tpu.vector_store %arg6[%c0_29, %c0_30], %42 {strides = array<i32>} : memref<16x1xf32, #tpu.memory_space<vmem>>, vector<16x1xf32>,
      %cst_31 = arith.constant 0.000000e+00 : f32
      %44 = vector.broadcast %cst_31 : f32 to vector<16x1xf32>
      %c0_32 = arith.constant 0 : index
      %c0_33 = arith.constant 0 : index
      %45 = vector.load %arg7[%c0_32, %c0_33] : memref<16x1xf32, #tpu.memory_space<vmem>>, vector<16x1xf32>
      tpu.vector_store %arg7[%c0_32, %c0_33], %44 {strides = array<i32>} : memref<16x1xf32, #tpu.memory_space<vmem>>, vector<16x1xf32>,
    } else {
    }
    %c0 = arith.constant 0 : index
    %c0_1 = arith.constant 0 : index
    %3 = vector.load %arg1[%c0, %c0_1] : memref<16x128xbf16, #tpu.memory_space<vmem>>, vector<16x128xbf16>
    %c0_2 = arith.constant 0 : index
    %c0_3 = arith.constant 0 : index
    %4 = vector.load %arg2[%c0_2, %c0_3] : memref<128x256xbf16, #tpu.memory_space<vmem>>, vector<128x256xbf16>
    %cst = arith.constant dense<0.000000e+00> : vector<16x256xf32>
    %5 = tpu.matmul %3, %4, %cst {dimension_numbers = #tpu.dot_dimension_numbers<[1], [0], [0], [1], [0, 0, 1, 1], [], []>} : vector<16x128xbf16>, vector<128x256xbf16>, vector<16x256xf32> -> vector<16x256xf32>
    %c0_4 = arith.constant 0 : index
    %c0_5 = arith.constant 0 : index
    %6 = vector.load %arg3[%c0_4, %c0_5] : memref<16x1xi32, #tpu.memory_space<vmem>>, vector<16x1xi32>
    %7 = tpu.iota {dimensions = array<i32: 1>} : vector<16x256xi32>
    %c256_i32 = arith.constant 256 : i32
    %8 = arith.muli %arg0, %c256_i32 : i32
    %9 = vector.broadcast %8 : i32 to vector<16x256xi32>
    %10 = arith.addi %7, %9 : vector<16x256xi32>
    %c0_6 = arith.constant 0 : index
    %c0_7 = arith.constant 0 : index
    %11 = vector.load %arg7[%c0_6, %c0_7] : memref<16x1xf32, #tpu.memory_space<vmem>>, vector<16x1xf32>
    %12 = vector.broadcast %6 : vector<16x1xi32> to vector<16x256xi32>
    %13 = arith.cmpi eq, %10, %12 : vector<16x256xi32>
    %cst_8 = arith.constant 0.000000e+00 : f32
    %14 = vector.broadcast %cst_8 : f32 to vector<16x256xf32>
    %15 = arith.select %13, %5, %14 : vector<16x256xi1>, vector<16x256xf32>
    %cst_9 = arith.constant dense<0.000000e+00> : vector<16xf32>
    %16 = vector.multi_reduction <add>, %15, %cst_9 [1] : vector<16x256xf32> to vector<16xf32>
    %17 = vector.shape_cast %16 : vector<16xf32> to vector<16x1xf32>
    %18 = arith.addf %11, %17 : vector<16x1xf32>
    %c0_10 = arith.constant 0 : index
    %c0_11 = arith.constant 0 : index
    %19 = vector.load %arg7[%c0_10, %c0_11] : memref<16x1xf32, #tpu.memory_space<vmem>>, vector<16x1xf32>
    tpu.vector_store %arg7[%c0_10, %c0_11], %18 {strides = array<i32>} : memref<16x1xf32, #tpu.memory_space<vmem>>, vector<16x1xf32>,
    %c0_12 = arith.constant 0 : index
    %c0_13 = arith.constant 0 : index
    %20 = vector.load %arg5[%c0_12, %c0_13] : memref<16x1xf32, #tpu.memory_space<vmem>>, vector<16x1xf32>
    %cst_14 = arith.constant dense<0xFF800000> : vector<16xf32>
    %21 = vector.multi_reduction <maximumf>, %5, %cst_14 [1] : vector<16x256xf32> to vector<16xf32>
    %22 = vector.shape_cast %21 : vector<16xf32> to vector<16x1xf32>
    %23 = arith.maximumf %20, %22 : vector<16x1xf32>
    %c0_15 = arith.constant 0 : index
    %c0_16 = arith.constant 0 : index
    %24 = vector.load %arg6[%c0_15, %c0_16] : memref<16x1xf32, #tpu.memory_space<vmem>>, vector<16x1xf32>
    %c0_17 = arith.constant 0 : index
    %c0_18 = arith.constant 0 : index
    %25 = vector.load %arg5[%c0_17, %c0_18] : memref<16x1xf32, #tpu.memory_space<vmem>>, vector<16x1xf32>
    %26 = arith.subf %25, %23 : vector<16x1xf32>
    %27 = math.exp %26 : vector<16x1xf32>
    %28 = arith.mulf %24, %27 : vector<16x1xf32>
    %29 = vector.broadcast %23 : vector<16x1xf32> to vector<16x256xf32>
    %30 = arith.subf %5, %29 : vector<16x256xf32>
    %31 = math.exp %30 : vector<16x256xf32>
    %cst_19 = arith.constant dense<0.000000e+00> : vector<16xf32>
    %32 = vector.multi_reduction <add>, %31, %cst_19 [1] : vector<16x256xf32> to vector<16xf32>
    %33 = vector.shape_cast %32 : vector<16xf32> to vector<16x1xf32>
    %34 = arith.addf %28, %33 : vector<16x1xf32>
    %c0_20 = arith.constant 0 : index
    %c0_21 = arith.constant 0 : index
    %35 = vector.load %arg6[%c0_20, %c0_21] : memref<16x1xf32, #tpu.memory_space<vmem>>, vector<16x1xf32>
    tpu.vector_store %arg6[%c0_20, %c0_21], %34 {strides = array<i32>} : memref<16x1xf32, #tpu.memory_space<vmem>>, vector<16x1xf32>,
    %c0_22 = arith.constant 0 : index
    %c0_23 = arith.constant 0 : index
    %36 = vector.load %arg5[%c0_22, %c0_23] : memref<16x1xf32, #tpu.memory_space<vmem>>, vector<16x1xf32>
    tpu.vector_store %arg5[%c0_22, %c0_23], %23 {strides = array<i32>} : memref<16x1xf32, #tpu.memory_space<vmem>>, vector<16x1xf32>,
    %c1_i32 = arith.constant 1 : i32
    %37 = arith.cmpi eq, %arg0, %c1_i32 : i32
    %38 = arith.extui %37 : i1 to i32
    %c0_i32_24 = arith.constant 0 : i32
    %39 = arith.cmpi ne, %38, %c0_i32_24 : i32
    scf.if %39 {
      %c-100_i32 = arith.constant -100 : i32
      %40 = vector.broadcast %c-100_i32 : i32 to vector<16x1xi32>
      %41 = arith.cmpi ne, %6, %40 : vector<16x1xi32>
      %c0_25 = arith.constant 0 : index
      %c0_26 = arith.constant 0 : index
      %42 = vector.load %arg5[%c0_25, %c0_26] : memref<16x1xf32, #tpu.memory_space<vmem>>, vector<16x1xf32>
      %c0_27 = arith.constant 0 : index
      %c0_28 = arith.constant 0 : index
      %43 = vector.load %arg6[%c0_27, %c0_28] : memref<16x1xf32, #tpu.memory_space<vmem>>, vector<16x1xf32>
      %44 = math.log %43 : vector<16x1xf32>
      %45 = arith.addf %42, %44 : vector<16x1xf32>
      %c0_29 = arith.constant 0 : index
      %c0_30 = arith.constant 0 : index
      %46 = vector.load %arg7[%c0_29, %c0_30] : memref<16x1xf32, #tpu.memory_space<vmem>>, vector<16x1xf32>
      %47 = arith.subf %45, %46 : vector<16x1xf32>
      %cst_31 = arith.constant 0.000000e+00 : f32
      %48 = vector.broadcast %cst_31 : f32 to vector<16x1xf32>
      %49 = arith.select %41, %47, %48 : vector<16x1xi1>, vector<16x1xf32>
      %cst_32 = arith.constant dense<0.000000e+00> : vector<1xf32>
      %50 = vector.multi_reduction <add>, %49, %cst_32 [0] : vector<16x1xf32> to vector<1xf32>
      %51 = vector.shape_cast %50 : vector<1xf32> to vector<1x1xf32>
      %52 = arith.extui %41 : vector<16x1xi1> to vector<16x1xi32>
      %53 = arith.sitofp %52 : vector<16x1xi32> to vector<16x1xf32>
      %cst_33 = arith.constant dense<0.000000e+00> : vector<1xf32>
      %54 = vector.multi_reduction <add>, %53, %cst_33 [0] : vector<16x1xf32> to vector<1xf32>
      %55 = vector.shape_cast %54 : vector<1xf32> to vector<1x1xf32>
      %cst_34 = arith.constant 1.000000e+00 : f32
      %56 = vector.broadcast %cst_34 : f32 to vector<1x1xf32>
      %57 = arith.maximumf %55, %56 : vector<1x1xf32>
      %58 = arith.divf %51, %57 : vector<1x1xf32>
      %c0_35 = arith.constant 0 : index
      %c0_36 = arith.constant 0 : index
      %59 = vector.load %arg4[%c0_35, %c0_36] : memref<1x1xf32, #tpu.memory_space<vmem>>, vector<1x1xf32>
      tpu.vector_store %arg4[%c0_35, %c0_36], %58 {strides = array<i32>} : memref<1x1xf32, #tpu.memory_space<vmem>>, vector<1x1xf32>,
    } else {
    }
    return
  }
  func.func @transform_0(%arg0: i32) -> (i32, i32) {
    %c0_i32 = arith.constant 0 : i32
    %c0_i32_0 = arith.constant 0 : i32
    %c0_i32_1 = arith.constant 0 : i32
    return %c0_i32, %c0_i32_0 : i32, i32
  }
  func.func @transform_1(%arg0: i32) -> (i32, i32) {
    %c0_i32 = arith.constant 0 : i32
    %c0_i32_0 = arith.constant 0 : i32
    return %c0_i32, %arg0 : i32, i32
  }
  func.func @transform_2(%arg0: i32) -> (i32, i32) {
    %c0_i32 = arith.constant 0 : i32
    %c0_i32_0 = arith.constant 0 : i32
    %c0_i32_1 = arith.constant 0 : i32
    return %c0_i32, %c0_i32_0 : i32, i32
  }
  func.func @transform_3(%arg0: i32) -> (i32, i32) {
    %c0_i32 = arith.constant 0 : i32
    %c0_i32_0 = arith.constant 0 : i32
    %c0_i32_1 = arith.constant 0 : i32
    return %c0_i32, %c0_i32_0 : i32, i32
  }
}

module attributes {stable_mosaic.version = 11 : i64} {
  func.func @_decoder_layer_kernel(%arg0: i32, %arg1: memref<1x8x128xf32, #tpu.memory_space<vmem>>, %arg2: memref<1x16x128xf32, #tpu.memory_space<vmem>>, %arg3: memref<1x1x16xf32, #tpu.memory_space<vmem>>, %arg4: memref<1x128xf32, #tpu.memory_space<vmem>>, %arg5: memref<128x384xbf16, #tpu.memory_space<vmem>>, %arg6: memref<128x128xbf16, #tpu.memory_space<vmem>>, %arg7: memref<1x128xf32, #tpu.memory_space<vmem>>, %arg8: memref<128x128xbf16, #tpu.memory_space<vmem>>, %arg9: memref<128x256xbf16, #tpu.memory_space<vmem>>, %arg10: memref<128x128xbf16, #tpu.memory_space<vmem>>, %arg11: memref<1x128xf32, #tpu.memory_space<vmem>>, %arg12: memref<128x512xbf16, #tpu.memory_space<vmem>>, %arg13: memref<256x128xbf16, #tpu.memory_space<vmem>>, %arg14: memref<1x128xf32, #tpu.memory_space<vmem>>, %arg15: memref<1x8x128xf32, #tpu.memory_space<vmem>>) attributes {dimension_semantics = [#tpu.dimension_semantics<parallel>], iteration_bounds = array<i64: 2>, scalar_prefetch = 0 : i64, scratch_operands = 0 : i64, tpu.core_type = #tpu.core_type<tc>, window_params = [{transform_indices = @transform_0, window_bounds = array<i64: 1, 8, 128>}, {transform_indices = @transform_1, window_bounds = array<i64: 1, 16, 128>}, {transform_indices = @transform_2, window_bounds = array<i64: 1, 1, 16>}, {pipeline_mode = #tpu.pipeline_mode<synchronous>, transform_indices = @transform_3, window_bounds = array<i64: 1, 128>}, {pipeline_mode = #tpu.pipeline_mode<synchronous>, transform_indices = @transform_4, window_bounds = array<i64: 128, 384>}, {pipeline_mode = #tpu.pipeline_mode<synchronous>, transform_indices = @transform_5, window_bounds = array<i64: 128, 128>}, {pipeline_mode = #tpu.pipeline_mode<synchronous>, transform_indices = @transform_6, window_bounds = array<i64: 1, 128>}, {pipeline_mode = #tpu.pipeline_mode<synchronous>, transform_indices = @transform_7, window_bounds = array<i64: 128, 128>}, {pipeline_mode = #tpu.pipeline_mode<synchronous>, transform_indices = @transform_8, window_bounds = array<i64: 128, 256>}, {pipeline_mode = #tpu.pipeline_mode<synchronous>, transform_indices = @transform_9, window_bounds = array<i64: 128, 128>}, {pipeline_mode = #tpu.pipeline_mode<synchronous>, transform_indices = @transform_10, window_bounds = array<i64: 1, 128>}, {pipeline_mode = #tpu.pipeline_mode<synchronous>, transform_indices = @transform_11, window_bounds = array<i64: 128, 512>}, {pipeline_mode = #tpu.pipeline_mode<synchronous>, transform_indices = @transform_12, window_bounds = array<i64: 256, 128>}, {pipeline_mode = #tpu.pipeline_mode<synchronous>, transform_indices = @transform_13, window_bounds = array<i64: 1, 128>}, {transform_indices = @transform_14, window_bounds = array<i64: 1, 8, 128>}]} {
    %c0 = arith.constant 0 : index
    %c0_0 = arith.constant 0 : index
    %c0_1 = arith.constant 0 : index
    %0 = vector.load %arg1[%c0, %c0_0, %c0_1] : memref<1x8x128xf32, #tpu.memory_space<vmem>>, vector<1x8x128xf32>
    %1 = vector.shape_cast %0 : vector<1x8x128xf32> to vector<8x128xf32>
    %c0_2 = arith.constant 0 : index
    %c0_3 = arith.constant 0 : index
    %c0_4 = arith.constant 0 : index
    %2 = vector.load %arg2[%c0_2, %c0_3, %c0_4] : memref<1x16x128xf32, #tpu.memory_space<vmem>>, vector<1x16x128xf32>
    %3 = vector.shape_cast %2 : vector<1x16x128xf32> to vector<16x128xf32>
    %c0_5 = arith.constant 0 : index
    %c0_6 = arith.constant 0 : index
    %c0_7 = arith.constant 0 : index
    %4 = vector.load %arg3[%c0_5, %c0_6, %c0_7] : memref<1x1x16xf32, #tpu.memory_space<vmem>>, vector<1x1x16xf32>
    %5 = vector.shape_cast %4 : vector<1x1x16xf32> to vector<1x16xf32>
    %c0_8 = arith.constant 0 : index
    %c0_9 = arith.constant 0 : index
    %6 = vector.load %arg4[%c0_8, %c0_9] : memref<1x128xf32, #tpu.memory_space<vmem>>, vector<1x128xf32>
    %c0_10 = arith.constant 0 : index
    %c0_11 = arith.constant 0 : index
    %7 = vector.load %arg5[%c0_10, %c0_11] : memref<128x384xbf16, #tpu.memory_space<vmem>>, vector<128x384xbf16>
    %c0_12 = arith.constant 0 : index
    %c0_13 = arith.constant 0 : index
    %8 = vector.load %arg6[%c0_12, %c0_13] : memref<128x128xbf16, #tpu.memory_space<vmem>>, vector<128x128xbf16>
    %c0_14 = arith.constant 0 : index
    %c0_15 = arith.constant 0 : index
    %9 = vector.load %arg7[%c0_14, %c0_15] : memref<1x128xf32, #tpu.memory_space<vmem>>, vector<1x128xf32>
    %c0_16 = arith.constant 0 : index
    %c0_17 = arith.constant 0 : index
    %10 = vector.load %arg8[%c0_16, %c0_17] : memref<128x128xbf16, #tpu.memory_space<vmem>>, vector<128x128xbf16>
    %c0_18 = arith.constant 0 : index
    %c0_19 = arith.constant 0 : index
    %11 = vector.load %arg9[%c0_18, %c0_19] : memref<128x256xbf16, #tpu.memory_space<vmem>>, vector<128x256xbf16>
    %c0_20 = arith.constant 0 : index
    %c0_21 = arith.constant 0 : index
    %12 = vector.load %arg10[%c0_20, %c0_21] : memref<128x128xbf16, #tpu.memory_space<vmem>>, vector<128x128xbf16>
    %c0_22 = arith.constant 0 : index
    %c0_23 = arith.constant 0 : index
    %13 = vector.load %arg11[%c0_22, %c0_23] : memref<1x128xf32, #tpu.memory_space<vmem>>, vector<1x128xf32>
    %c0_24 = arith.constant 0 : index
    %c0_25 = arith.constant 0 : index
    %14 = vector.load %arg12[%c0_24, %c0_25] : memref<128x512xbf16, #tpu.memory_space<vmem>>, vector<128x512xbf16>
    %c0_26 = arith.constant 0 : index
    %c0_27 = arith.constant 0 : index
    %15 = vector.load %arg13[%c0_26, %c0_27] : memref<256x128xbf16, #tpu.memory_space<vmem>>, vector<256x128xbf16>
    %c0_28 = arith.constant 0 : index
    %c0_29 = arith.constant 0 : index
    %16 = vector.load %arg14[%c0_28, %c0_29] : memref<1x128xf32, #tpu.memory_space<vmem>>, vector<1x128xf32>
    %17 = arith.mulf %1, %1 : vector<8x128xf32>
    %cst = arith.constant dense<0.000000e+00> : vector<8xf32>
    %18 = vector.multi_reduction <add>, %17, %cst [1] : vector<8x128xf32> to vector<8xf32>
    %19 = vector.shape_cast %18 : vector<8xf32> to vector<8x1xf32>
    %cst_30 = arith.constant 1.280000e+02 : f32
    %20 = vector.broadcast %cst_30 : f32 to vector<8x1xf32>
    %21 = arith.divf %19, %20 : vector<8x1xf32>
    %cst_31 = arith.constant 9.99999997E-7 : f32
    %22 = vector.broadcast %cst_31 : f32 to vector<8x1xf32>
    %23 = arith.addf %21, %22 : vector<8x1xf32>
    %24 = math.rsqrt %23 : vector<8x1xf32>
    %25 = vector.broadcast %24 : vector<8x1xf32> to vector<8x128xf32>
    %26 = arith.mulf %1, %25 : vector<8x128xf32>
    %27 = vector.broadcast %6 : vector<1x128xf32> to vector<8x128xf32>
    %28 = arith.mulf %26, %27 : vector<8x128xf32>
    %29 = arith.truncf %28 : vector<8x128xf32> to vector<8x128xbf16>
    %cst_32 = arith.constant dense<0.000000e+00> : vector<8x384xf32>
    %30 = tpu.matmul %29, %7, %cst_32 {dimension_numbers = #tpu.dot_dimension_numbers<[1], [0], [0], [1], [0, 0, 1, 1], [], []>} : vector<8x128xbf16>, vector<128x384xbf16>, vector<8x384xf32> -> vector<8x384xf32>
    %31 = tpu.iota {dimensions = array<i32: 0>} : vector<8x8xi32>
    %32 = tpu.iota {dimensions = array<i32: 1>} : vector<8x8xi32>
    %33 = arith.cmpi sle, %32, %31 : vector<8x8xi32>
    %cst_33 = arith.constant 0.000000e+00 : f32
    %cst_34 = arith.constant -1.000000e+09 : f32
    %34 = vector.broadcast %cst_33 : f32 to vector<8x8xf32>
    %35 = vector.broadcast %cst_34 : f32 to vector<8x8xf32>
    %36 = arith.select %33, %34, %35 : vector<8x8xi1>, vector<8x8xf32>
    %37 = vector.extract_strided_slice %30 {offsets = [0, 0], sizes = [8, 128], strides = [1, 1]} : vector<8x384xf32> to vector<8x128xf32>
    %38 = vector.extract_strided_slice %30 {offsets = [0, 128], sizes = [8, 128], strides = [1, 1]} : vector<8x384xf32> to vector<8x128xf32>
    %39 = vector.extract_strided_slice %30 {offsets = [0, 256], sizes = [8, 128], strides = [1, 1]} : vector<8x384xf32> to vector<8x128xf32>
    %40 = vector.extract_strided_slice %37 {offsets = [0, 0], sizes = [8, 32], strides = [1, 1]} : vector<8x128xf32> to vector<8x32xf32>
    %41 = arith.truncf %40 : vector<8x32xf32> to vector<8x32xbf16>
    %42 = vector.extract_strided_slice %38 {offsets = [0, 0], sizes = [8, 32], strides = [1, 1]} : vector<8x128xf32> to vector<8x32xf32>
    %43 = arith.truncf %42 : vector<8x32xf32> to vector<8x32xbf16>
    "tpu.trace_start"() <{level = 10 : i32, message = "qd,kd->qk"}> : () -> ()
    %cst_35 = arith.constant dense<0.000000e+00> : vector<8x8xf32>
    %44 = tpu.matmul %41, %43, %cst_35 {dimension_numbers = #tpu.dot_dimension_numbers<[1], [1], [0], [0], [0, 0, 1, 0], [], []>} : vector<8x32xbf16>, vector<8x32xbf16>, vector<8x8xf32> -> vector<8x8xf32>
    "tpu.trace_stop"() : () -> ()
    %45 = arith.addf %44, %36 : vector<8x8xf32>
    %cst_36 = arith.constant dense<0xFF800000> : vector<8xf32>
    %46 = vector.multi_reduction <maximumf>, %45, %cst_36 [1] : vector<8x8xf32> to vector<8xf32>
    %47 = vector.shape_cast %46 : vector<8xf32> to vector<8x1xf32>
    %48 = vector.broadcast %47 : vector<8x1xf32> to vector<8x8xf32>
    %49 = arith.subf %45, %48 : vector<8x8xf32>
    %50 = math.exp %49 : vector<8x8xf32>
    %cst_37 = arith.constant dense<0.000000e+00> : vector<8xf32>
    %51 = vector.multi_reduction <add>, %50, %cst_37 [1] : vector<8x8xf32> to vector<8xf32>
    %52 = vector.shape_cast %51 : vector<8xf32> to vector<8x1xf32>
    %53 = vector.broadcast %52 : vector<8x1xf32> to vector<8x8xf32>
    %54 = arith.divf %50, %53 : vector<8x8xf32>
    %55 = arith.truncf %54 : vector<8x8xf32> to vector<8x8xbf16>
    %56 = vector.extract_strided_slice %39 {offsets = [0, 0], sizes = [8, 32], strides = [1, 1]} : vector<8x128xf32> to vector<8x32xf32>
    %57 = arith.truncf %56 : vector<8x32xf32> to vector<8x32xbf16>
    %cst_38 = arith.constant dense<0.000000e+00> : vector<8x32xf32>
    %58 = tpu.matmul %55, %57, %cst_38 {dimension_numbers = #tpu.dot_dimension_numbers<[1], [0], [0], [1], [0, 0, 1, 1], [], []>} : vector<8x8xbf16>, vector<8x32xbf16>, vector<8x32xf32> -> vector<8x32xf32>
    %59 = vector.extract_strided_slice %37 {offsets = [0, 32], sizes = [8, 32], strides = [1, 1]} : vector<8x128xf32> to vector<8x32xf32>
    %60 = arith.truncf %59 : vector<8x32xf32> to vector<8x32xbf16>
    %61 = vector.extract_strided_slice %38 {offsets = [0, 32], sizes = [8, 32], strides = [1, 1]} : vector<8x128xf32> to vector<8x32xf32>
    %62 = arith.truncf %61 : vector<8x32xf32> to vector<8x32xbf16>
    "tpu.trace_start"() <{level = 10 : i32, message = "qd,kd->qk"}> : () -> ()
    %cst_39 = arith.constant dense<0.000000e+00> : vector<8x8xf32>
    %63 = tpu.matmul %60, %62, %cst_39 {dimension_numbers = #tpu.dot_dimension_numbers<[1], [1], [0], [0], [0, 0, 1, 0], [], []>} : vector<8x32xbf16>, vector<8x32xbf16>, vector<8x8xf32> -> vector<8x8xf32>
    "tpu.trace_stop"() : () -> ()
    %64 = arith.addf %63, %36 : vector<8x8xf32>
    %cst_40 = arith.constant dense<0xFF800000> : vector<8xf32>
    %65 = vector.multi_reduction <maximumf>, %64, %cst_40 [1] : vector<8x8xf32> to vector<8xf32>
    %66 = vector.shape_cast %65 : vector<8xf32> to vector<8x1xf32>
    %67 = vector.broadcast %66 : vector<8x1xf32> to vector<8x8xf32>
    %68 = arith.subf %64, %67 : vector<8x8xf32>
    %69 = math.exp %68 : vector<8x8xf32>
    %cst_41 = arith.constant dense<0.000000e+00> : vector<8xf32>
    %70 = vector.multi_reduction <add>, %69, %cst_41 [1] : vector<8x8xf32> to vector<8xf32>
    %71 = vector.shape_cast %70 : vector<8xf32> to vector<8x1xf32>
    %72 = vector.broadcast %71 : vector<8x1xf32> to vector<8x8xf32>
    %73 = arith.divf %69, %72 : vector<8x8xf32>
    %74 = arith.truncf %73 : vector<8x8xf32> to vector<8x8xbf16>
    %75 = vector.extract_strided_slice %39 {offsets = [0, 32], sizes = [8, 32], strides = [1, 1]} : vector<8x128xf32> to vector<8x32xf32>
    %76 = arith.truncf %75 : vector<8x32xf32> to vector<8x32xbf16>
    %cst_42 = arith.constant dense<0.000000e+00> : vector<8x32xf32>
    %77 = tpu.matmul %74, %76, %cst_42 {dimension_numbers = #tpu.dot_dimension_numbers<[1], [0], [0], [1], [0, 0, 1, 1], [], []>} : vector<8x8xbf16>, vector<8x32xbf16>, vector<8x32xf32> -> vector<8x32xf32>
    %78 = vector.extract_strided_slice %37 {offsets = [0, 64], sizes = [8, 32], strides = [1, 1]} : vector<8x128xf32> to vector<8x32xf32>
    %79 = arith.truncf %78 : vector<8x32xf32> to vector<8x32xbf16>
    %80 = vector.extract_strided_slice %38 {offsets = [0, 64], sizes = [8, 32], strides = [1, 1]} : vector<8x128xf32> to vector<8x32xf32>
    %81 = arith.truncf %80 : vector<8x32xf32> to vector<8x32xbf16>
    "tpu.trace_start"() <{level = 10 : i32, message = "qd,kd->qk"}> : () -> ()
    %cst_43 = arith.constant dense<0.000000e+00> : vector<8x8xf32>
    %82 = tpu.matmul %79, %81, %cst_43 {dimension_numbers = #tpu.dot_dimension_numbers<[1], [1], [0], [0], [0, 0, 1, 0], [], []>} : vector<8x32xbf16>, vector<8x32xbf16>, vector<8x8xf32> -> vector<8x8xf32>
    "tpu.trace_stop"() : () -> ()
    %83 = arith.addf %82, %36 : vector<8x8xf32>
    %cst_44 = arith.constant dense<0xFF800000> : vector<8xf32>
    %84 = vector.multi_reduction <maximumf>, %83, %cst_44 [1] : vector<8x8xf32> to vector<8xf32>
    %85 = vector.shape_cast %84 : vector<8xf32> to vector<8x1xf32>
    %86 = vector.broadcast %85 : vector<8x1xf32> to vector<8x8xf32>
    %87 = arith.subf %83, %86 : vector<8x8xf32>
    %88 = math.exp %87 : vector<8x8xf32>
    %cst_45 = arith.constant dense<0.000000e+00> : vector<8xf32>
    %89 = vector.multi_reduction <add>, %88, %cst_45 [1] : vector<8x8xf32> to vector<8xf32>
    %90 = vector.shape_cast %89 : vector<8xf32> to vector<8x1xf32>
    %91 = vector.broadcast %90 : vector<8x1xf32> to vector<8x8xf32>
    %92 = arith.divf %88, %91 : vector<8x8xf32>
    %93 = arith.truncf %92 : vector<8x8xf32> to vector<8x8xbf16>
    %94 = vector.extract_strided_slice %39 {offsets = [0, 64], sizes = [8, 32], strides = [1, 1]} : vector<8x128xf32> to vector<8x32xf32>
    %95 = arith.truncf %94 : vector<8x32xf32> to vector<8x32xbf16>
    %cst_46 = arith.constant dense<0.000000e+00> : vector<8x32xf32>
    %96 = tpu.matmul %93, %95, %cst_46 {dimension_numbers = #tpu.dot_dimension_numbers<[1], [0], [0], [1], [0, 0, 1, 1], [], []>} : vector<8x8xbf16>, vector<8x32xbf16>, vector<8x32xf32> -> vector<8x32xf32>
    %97 = vector.extract_strided_slice %37 {offsets = [0, 96], sizes = [8, 32], strides = [1, 1]} : vector<8x128xf32> to vector<8x32xf32>
    %98 = arith.truncf %97 : vector<8x32xf32> to vector<8x32xbf16>
    %99 = vector.extract_strided_slice %38 {offsets = [0, 96], sizes = [8, 32], strides = [1, 1]} : vector<8x128xf32> to vector<8x32xf32>
    %100 = arith.truncf %99 : vector<8x32xf32> to vector<8x32xbf16>
    "tpu.trace_start"() <{level = 10 : i32, message = "qd,kd->qk"}> : () -> ()
    %cst_47 = arith.constant dense<0.000000e+00> : vector<8x8xf32>
    %101 = tpu.matmul %98, %100, %cst_47 {dimension_numbers = #tpu.dot_dimension_numbers<[1], [1], [0], [0], [0, 0, 1, 0], [], []>} : vector<8x32xbf16>, vector<8x32xbf16>, vector<8x8xf32> -> vector<8x8xf32>
    "tpu.trace_stop"() : () -> ()
    %102 = arith.addf %101, %36 : vector<8x8xf32>
    %cst_48 = arith.constant dense<0xFF800000> : vector<8xf32>
    %103 = vector.multi_reduction <maximumf>, %102, %cst_48 [1] : vector<8x8xf32> to vector<8xf32>
    %104 = vector.shape_cast %103 : vector<8xf32> to vector<8x1xf32>
    %105 = vector.broadcast %104 : vector<8x1xf32> to vector<8x8xf32>
    %106 = arith.subf %102, %105 : vector<8x8xf32>
    %107 = math.exp %106 : vector<8x8xf32>
    %cst_49 = arith.constant dense<0.000000e+00> : vector<8xf32>
    %108 = vector.multi_reduction <add>, %107, %cst_49 [1] : vector<8x8xf32> to vector<8xf32>
    %109 = vector.shape_cast %108 : vector<8xf32> to vector<8x1xf32>
    %110 = vector.broadcast %109 : vector<8x1xf32> to vector<8x8xf32>
    %111 = arith.divf %107, %110 : vector<8x8xf32>
    %112 = arith.truncf %111 : vector<8x8xf32> to vector<8x8xbf16>
    %113 = vector.extract_strided_slice %39 {offsets = [0, 96], sizes = [8, 32], strides = [1, 1]} : vector<8x128xf32> to vector<8x32xf32>
    %114 = arith.truncf %113 : vector<8x32xf32> to vector<8x32xbf16>
    %cst_50 = arith.constant dense<0.000000e+00> : vector<8x32xf32>
    %115 = tpu.matmul %112, %114, %cst_50 {dimension_numbers = #tpu.dot_dimension_numbers<[1], [0], [0], [1], [0, 0, 1, 1], [], []>} : vector<8x8xbf16>, vector<8x32xbf16>, vector<8x32xf32> -> vector<8x32xf32>
    %116 = tpu.concatenate %58, %77, %96, %115 in 1 : vector<8x32xf32>, vector<8x32xf32>, vector<8x32xf32>, vector<8x32xf32> -> vector<8x128xf32>
    %117 = arith.truncf %116 : vector<8x128xf32> to vector<8x128xbf16>
    %cst_51 = arith.constant dense<0.000000e+00> : vector<8x128xf32>
    %118 = tpu.matmul %117, %8, %cst_51 {dimension_numbers = #tpu.dot_dimension_numbers<[1], [0], [0], [1], [0, 0, 1, 1], [], []>} : vector<8x128xbf16>, vector<128x128xbf16>, vector<8x128xf32> -> vector<8x128xf32>
    %119 = arith.addf %1, %118 : vector<8x128xf32>
    %120 = arith.mulf %119, %119 : vector<8x128xf32>
    %cst_52 = arith.constant dense<0.000000e+00> : vector<8xf32>
    %121 = vector.multi_reduction <add>, %120, %cst_52 [1] : vector<8x128xf32> to vector<8xf32>
    %122 = vector.shape_cast %121 : vector<8xf32> to vector<8x1xf32>
    %cst_53 = arith.constant 1.280000e+02 : f32
    %123 = vector.broadcast %cst_53 : f32 to vector<8x1xf32>
    %124 = arith.divf %122, %123 : vector<8x1xf32>
    %cst_54 = arith.constant 9.99999997E-7 : f32
    %125 = vector.broadcast %cst_54 : f32 to vector<8x1xf32>
    %126 = arith.addf %124, %125 : vector<8x1xf32>
    %127 = math.rsqrt %126 : vector<8x1xf32>
    %128 = vector.broadcast %127 : vector<8x1xf32> to vector<8x128xf32>
    %129 = arith.mulf %119, %128 : vector<8x128xf32>
    %130 = vector.broadcast %9 : vector<1x128xf32> to vector<8x128xf32>
    %131 = arith.mulf %129, %130 : vector<8x128xf32>
    %132 = arith.truncf %131 : vector<8x128xf32> to vector<8x128xbf16>
    %cst_55 = arith.constant dense<0.000000e+00> : vector<8x128xf32>
    %133 = tpu.matmul %132, %10, %cst_55 {dimension_numbers = #tpu.dot_dimension_numbers<[1], [0], [0], [1], [0, 0, 1, 1], [], []>} : vector<8x128xbf16>, vector<128x128xbf16>, vector<8x128xf32> -> vector<8x128xf32>
    %134 = arith.truncf %3 : vector<16x128xf32> to vector<16x128xbf16>
    %cst_56 = arith.constant dense<0.000000e+00> : vector<16x256xf32>
    %135 = tpu.matmul %134, %11, %cst_56 {dimension_numbers = #tpu.dot_dimension_numbers<[1], [0], [0], [1], [0, 0, 1, 1], [], []>} : vector<16x128xbf16>, vector<128x256xbf16>, vector<16x256xf32> -> vector<16x256xf32>
    %136 = vector.extract_strided_slice %135 {offsets = [0, 0], sizes = [16, 128], strides = [1, 1]} : vector<16x256xf32> to vector<16x128xf32>
    %137 = vector.extract_strided_slice %135 {offsets = [0, 128], sizes = [16, 128], strides = [1, 1]} : vector<16x256xf32> to vector<16x128xf32>
    %138 = vector.extract_strided_slice %133 {offsets = [0, 0], sizes = [8, 32], strides = [1, 1]} : vector<8x128xf32> to vector<8x32xf32>
    %139 = arith.truncf %138 : vector<8x32xf32> to vector<8x32xbf16>
    %140 = vector.extract_strided_slice %136 {offsets = [0, 0], sizes = [16, 32], strides = [1, 1]} : vector<16x128xf32> to vector<16x32xf32>
    %141 = arith.truncf %140 : vector<16x32xf32> to vector<16x32xbf16>
    "tpu.trace_start"() <{level = 10 : i32, message = "qd,kd->qk"}> : () -> ()
    %cst_57 = arith.constant dense<0.000000e+00> : vector<8x16xf32>
    %142 = tpu.matmul %139, %141, %cst_57 {dimension_numbers = #tpu.dot_dimension_numbers<[1], [1], [0], [0], [0, 0, 1, 0], [], []>} : vector<8x32xbf16>, vector<16x32xbf16>, vector<8x16xf32> -> vector<8x16xf32>
    "tpu.trace_stop"() : () -> ()
    %143 = vector.broadcast %5 : vector<1x16xf32> to vector<8x16xf32>
    %144 = arith.addf %142, %143 : vector<8x16xf32>
    %cst_58 = arith.constant dense<0xFF800000> : vector<8xf32>
    %145 = vector.multi_reduction <maximumf>, %144, %cst_58 [1] : vector<8x16xf32> to vector<8xf32>
    %146 = vector.shape_cast %145 : vector<8xf32> to vector<8x1xf32>
    %147 = vector.broadcast %146 : vector<8x1xf32> to vector<8x16xf32>
    %148 = arith.subf %144, %147 : vector<8x16xf32>
    %149 = math.exp %148 : vector<8x16xf32>
    %cst_59 = arith.constant dense<0.000000e+00> : vector<8xf32>
    %150 = vector.multi_reduction <add>, %149, %cst_59 [1] : vector<8x16xf32> to vector<8xf32>
    %151 = vector.shape_cast %150 : vector<8xf32> to vector<8x1xf32>
    %152 = vector.broadcast %151 : vector<8x1xf32> to vector<8x16xf32>
    %153 = arith.divf %149, %152 : vector<8x16xf32>
    %154 = arith.truncf %153 : vector<8x16xf32> to vector<8x16xbf16>
    %155 = vector.extract_strided_slice %137 {offsets = [0, 0], sizes = [16, 32], strides = [1, 1]} : vector<16x128xf32> to vector<16x32xf32>
    %156 = arith.truncf %155 : vector<16x32xf32> to vector<16x32xbf16>
    %cst_60 = arith.constant dense<0.000000e+00> : vector<8x32xf32>
    %157 = tpu.matmul %154, %156, %cst_60 {dimension_numbers = #tpu.dot_dimension_numbers<[1], [0], [0], [1], [0, 0, 1, 1], [], []>} : vector<8x16xbf16>, vector<16x32xbf16>, vector<8x32xf32> -> vector<8x32xf32>
    %158 = vector.extract_strided_slice %133 {offsets = [0, 32], sizes = [8, 32], strides = [1, 1]} : vector<8x128xf32> to vector<8x32xf32>
    %159 = arith.truncf %158 : vector<8x32xf32> to vector<8x32xbf16>
    %160 = vector.extract_strided_slice %136 {offsets = [0, 32], sizes = [16, 32], strides = [1, 1]} : vector<16x128xf32> to vector<16x32xf32>
    %161 = arith.truncf %160 : vector<16x32xf32> to vector<16x32xbf16>
    "tpu.trace_start"() <{level = 10 : i32, message = "qd,kd->qk"}> : () -> ()
    %cst_61 = arith.constant dense<0.000000e+00> : vector<8x16xf32>
    %162 = tpu.matmul %159, %161, %cst_61 {dimension_numbers = #tpu.dot_dimension_numbers<[1], [1], [0], [0], [0, 0, 1, 0], [], []>} : vector<8x32xbf16>, vector<16x32xbf16>, vector<8x16xf32> -> vector<8x16xf32>
    "tpu.trace_stop"() : () -> ()
    %163 = vector.broadcast %5 : vector<1x16xf32> to vector<8x16xf32>
    %164 = arith.addf %162, %163 : vector<8x16xf32>
    %cst_62 = arith.constant dense<0xFF800000> : vector<8xf32>
    %165 = vector.multi_reduction <maximumf>, %164, %cst_62 [1] : vector<8x16xf32> to vector<8xf32>
    %166 = vector.shape_cast %165 : vector<8xf32> to vector<8x1xf32>
    %167 = vector.broadcast %166 : vector<8x1xf32> to vector<8x16xf32>
    %168 = arith.subf %164, %167 : vector<8x16xf32>
    %169 = math.exp %168 : vector<8x16xf32>
    %cst_63 = arith.constant dense<0.000000e+00> : vector<8xf32>
    %170 = vector.multi_reduction <add>, %169, %cst_63 [1] : vector<8x16xf32> to vector<8xf32>
    %171 = vector.shape_cast %170 : vector<8xf32> to vector<8x1xf32>
    %172 = vector.broadcast %171 : vector<8x1xf32> to vector<8x16xf32>
    %173 = arith.divf %169, %172 : vector<8x16xf32>
    %174 = arith.truncf %173 : vector<8x16xf32> to vector<8x16xbf16>
    %175 = vector.extract_strided_slice %137 {offsets = [0, 32], sizes = [16, 32], strides = [1, 1]} : vector<16x128xf32> to vector<16x32xf32>
    %176 = arith.truncf %175 : vector<16x32xf32> to vector<16x32xbf16>
    %cst_64 = arith.constant dense<0.000000e+00> : vector<8x32xf32>
    %177 = tpu.matmul %174, %176, %cst_64 {dimension_numbers = #tpu.dot_dimension_numbers<[1], [0], [0], [1], [0, 0, 1, 1], [], []>} : vector<8x16xbf16>, vector<16x32xbf16>, vector<8x32xf32> -> vector<8x32xf32>
    %178 = vector.extract_strided_slice %133 {offsets = [0, 64], sizes = [8, 32], strides = [1, 1]} : vector<8x128xf32> to vector<8x32xf32>
    %179 = arith.truncf %178 : vector<8x32xf32> to vector<8x32xbf16>
    %180 = vector.extract_strided_slice %136 {offsets = [0, 64], sizes = [16, 32], strides = [1, 1]} : vector<16x128xf32> to vector<16x32xf32>
    %181 = arith.truncf %180 : vector<16x32xf32> to vector<16x32xbf16>
    "tpu.trace_start"() <{level = 10 : i32, message = "qd,kd->qk"}> : () -> ()
    %cst_65 = arith.constant dense<0.000000e+00> : vector<8x16xf32>
    %182 = tpu.matmul %179, %181, %cst_65 {dimension_numbers = #tpu.dot_dimension_numbers<[1], [1], [0], [0], [0, 0, 1, 0], [], []>} : vector<8x32xbf16>, vector<16x32xbf16>, vector<8x16xf32> -> vector<8x16xf32>
    "tpu.trace_stop"() : () -> ()
    %183 = vector.broadcast %5 : vector<1x16xf32> to vector<8x16xf32>
    %184 = arith.addf %182, %183 : vector<8x16xf32>
    %cst_66 = arith.constant dense<0xFF800000> : vector<8xf32>
    %185 = vector.multi_reduction <maximumf>, %184, %cst_66 [1] : vector<8x16xf32> to vector<8xf32>
    %186 = vector.shape_cast %185 : vector<8xf32> to vector<8x1xf32>
    %187 = vector.broadcast %186 : vector<8x1xf32> to vector<8x16xf32>
    %188 = arith.subf %184, %187 : vector<8x16xf32>
    %189 = math.exp %188 : vector<8x16xf32>
    %cst_67 = arith.constant dense<0.000000e+00> : vector<8xf32>
    %190 = vector.multi_reduction <add>, %189, %cst_67 [1] : vector<8x16xf32> to vector<8xf32>
    %191 = vector.shape_cast %190 : vector<8xf32> to vector<8x1xf32>
    %192 = vector.broadcast %191 : vector<8x1xf32> to vector<8x16xf32>
    %193 = arith.divf %189, %192 : vector<8x16xf32>
    %194 = arith.truncf %193 : vector<8x16xf32> to vector<8x16xbf16>
    %195 = vector.extract_strided_slice %137 {offsets = [0, 64], sizes = [16, 32], strides = [1, 1]} : vector<16x128xf32> to vector<16x32xf32>
    %196 = arith.truncf %195 : vector<16x32xf32> to vector<16x32xbf16>
    %cst_68 = arith.constant dense<0.000000e+00> : vector<8x32xf32>
    %197 = tpu.matmul %194, %196, %cst_68 {dimension_numbers = #tpu.dot_dimension_numbers<[1], [0], [0], [1], [0, 0, 1, 1], [], []>} : vector<8x16xbf16>, vector<16x32xbf16>, vector<8x32xf32> -> vector<8x32xf32>
    %198 = vector.extract_strided_slice %133 {offsets = [0, 96], sizes = [8, 32], strides = [1, 1]} : vector<8x128xf32> to vector<8x32xf32>
    %199 = arith.truncf %198 : vector<8x32xf32> to vector<8x32xbf16>
    %200 = vector.extract_strided_slice %136 {offsets = [0, 96], sizes = [16, 32], strides = [1, 1]} : vector<16x128xf32> to vector<16x32xf32>
    %201 = arith.truncf %200 : vector<16x32xf32> to vector<16x32xbf16>
    "tpu.trace_start"() <{level = 10 : i32, message = "qd,kd->qk"}> : () -> ()
    %cst_69 = arith.constant dense<0.000000e+00> : vector<8x16xf32>
    %202 = tpu.matmul %199, %201, %cst_69 {dimension_numbers = #tpu.dot_dimension_numbers<[1], [1], [0], [0], [0, 0, 1, 0], [], []>} : vector<8x32xbf16>, vector<16x32xbf16>, vector<8x16xf32> -> vector<8x16xf32>
    "tpu.trace_stop"() : () -> ()
    %203 = vector.broadcast %5 : vector<1x16xf32> to vector<8x16xf32>
    %204 = arith.addf %202, %203 : vector<8x16xf32>
    %cst_70 = arith.constant dense<0xFF800000> : vector<8xf32>
    %205 = vector.multi_reduction <maximumf>, %204, %cst_70 [1] : vector<8x16xf32> to vector<8xf32>
    %206 = vector.shape_cast %205 : vector<8xf32> to vector<8x1xf32>
    %207 = vector.broadcast %206 : vector<8x1xf32> to vector<8x16xf32>
    %208 = arith.subf %204, %207 : vector<8x16xf32>
    %209 = math.exp %208 : vector<8x16xf32>
    %cst_71 = arith.constant dense<0.000000e+00> : vector<8xf32>
    %210 = vector.multi_reduction <add>, %209, %cst_71 [1] : vector<8x16xf32> to vector<8xf32>
    %211 = vector.shape_cast %210 : vector<8xf32> to vector<8x1xf32>
    %212 = vector.broadcast %211 : vector<8x1xf32> to vector<8x16xf32>
    %213 = arith.divf %209, %212 : vector<8x16xf32>
    %214 = arith.truncf %213 : vector<8x16xf32> to vector<8x16xbf16>
    %215 = vector.extract_strided_slice %137 {offsets = [0, 96], sizes = [16, 32], strides = [1, 1]} : vector<16x128xf32> to vector<16x32xf32>
    %216 = arith.truncf %215 : vector<16x32xf32> to vector<16x32xbf16>
    %cst_72 = arith.constant dense<0.000000e+00> : vector<8x32xf32>
    %217 = tpu.matmul %214, %216, %cst_72 {dimension_numbers = #tpu.dot_dimension_numbers<[1], [0], [0], [1], [0, 0, 1, 1], [], []>} : vector<8x16xbf16>, vector<16x32xbf16>, vector<8x32xf32> -> vector<8x32xf32>
    %218 = tpu.concatenate %157, %177, %197, %217 in 1 : vector<8x32xf32>, vector<8x32xf32>, vector<8x32xf32>, vector<8x32xf32> -> vector<8x128xf32>
    %219 = arith.truncf %218 : vector<8x128xf32> to vector<8x128xbf16>
    %cst_73 = arith.constant dense<0.000000e+00> : vector<8x128xf32>
    %220 = tpu.matmul %219, %12, %cst_73 {dimension_numbers = #tpu.dot_dimension_numbers<[1], [0], [0], [1], [0, 0, 1, 1], [], []>} : vector<8x128xbf16>, vector<128x128xbf16>, vector<8x128xf32> -> vector<8x128xf32>
    %221 = arith.addf %119, %220 : vector<8x128xf32>
    %222 = arith.mulf %221, %221 : vector<8x128xf32>
    %cst_74 = arith.constant dense<0.000000e+00> : vector<8xf32>
    %223 = vector.multi_reduction <add>, %222, %cst_74 [1] : vector<8x128xf32> to vector<8xf32>
    %224 = vector.shape_cast %223 : vector<8xf32> to vector<8x1xf32>
    %cst_75 = arith.constant 1.280000e+02 : f32
    %225 = vector.broadcast %cst_75 : f32 to vector<8x1xf32>
    %226 = arith.divf %224, %225 : vector<8x1xf32>
    %cst_76 = arith.constant 9.99999997E-7 : f32
    %227 = vector.broadcast %cst_76 : f32 to vector<8x1xf32>
    %228 = arith.addf %226, %227 : vector<8x1xf32>
    %229 = math.rsqrt %228 : vector<8x1xf32>
    %230 = vector.broadcast %229 : vector<8x1xf32> to vector<8x128xf32>
    %231 = arith.mulf %221, %230 : vector<8x128xf32>
    %232 = vector.broadcast %13 : vector<1x128xf32> to vector<8x128xf32>
    %233 = arith.mulf %231, %232 : vector<8x128xf32>
    %234 = arith.truncf %233 : vector<8x128xf32> to vector<8x128xbf16>
    %cst_77 = arith.constant dense<0.000000e+00> : vector<8x512xf32>
    %235 = tpu.matmul %234, %14, %cst_77 {dimension_numbers = #tpu.dot_dimension_numbers<[1], [0], [0], [1], [0, 0, 1, 1], [], []>} : vector<8x128xbf16>, vector<128x512xbf16>, vector<8x512xf32> -> vector<8x512xf32>
    %236 = vector.extract_strided_slice %235 {offsets = [0, 0], sizes = [8, 256], strides = [1, 1]} : vector<8x512xf32> to vector<8x256xf32>
    %237 = arith.mulf %236, %236 : vector<8x256xf32>
    %238 = arith.mulf %236, %237 : vector<8x256xf32>
    %cst_78 = arith.constant 4.471500e-02 : f32
    %239 = vector.broadcast %cst_78 : f32 to vector<8x256xf32>
    %240 = arith.mulf %239, %238 : vector<8x256xf32>
    %241 = arith.addf %236, %240 : vector<8x256xf32>
    %cst_79 = arith.constant 0.797884583 : f32
    %242 = vector.broadcast %cst_79 : f32 to vector<8x256xf32>
    %243 = arith.mulf %242, %241 : vector<8x256xf32>
    %244 = math.tanh %243 : vector<8x256xf32>
    %cst_80 = arith.constant 1.000000e+00 : f32
    %245 = vector.broadcast %cst_80 : f32 to vector<8x256xf32>
    %246 = arith.addf %245, %244 : vector<8x256xf32>
    %cst_81 = arith.constant 5.000000e-01 : f32
    %247 = vector.broadcast %cst_81 : f32 to vector<8x256xf32>
    %248 = arith.mulf %247, %246 : vector<8x256xf32>
    %249 = arith.mulf %236, %248 : vector<8x256xf32>
    %250 = vector.extract_strided_slice %235 {offsets = [0, 256], sizes = [8, 256], strides = [1, 1]} : vector<8x512xf32> to vector<8x256xf32>
    %251 = arith.mulf %249, %250 : vector<8x256xf32>
    %252 = arith.truncf %251 : vector<8x256xf32> to vector<8x256xbf16>
    %cst_82 = arith.constant dense<0.000000e+00> : vector<8x128xf32>
    %253 = tpu.matmul %252, %15, %cst_82 {dimension_numbers = #tpu.dot_dimension_numbers<[1], [0], [0], [1], [0, 0, 1, 1], [], []>} : vector<8x256xbf16>, vector<256x128xbf16>, vector<8x128xf32> -> vector<8x128xf32>
    %254 = arith.addf %221, %253 : vector<8x128xf32>
    %255 = arith.mulf %254, %254 : vector<8x128xf32>
    %cst_83 = arith.constant dense<0.000000e+00> : vector<8xf32>
    %256 = vector.multi_reduction <add>, %255, %cst_83 [1] : vector<8x128xf32> to vector<8xf32>
    %257 = vector.shape_cast %256 : vector<8xf32> to vector<8x1xf32>
    %cst_84 = arith.constant 1.280000e+02 : f32
    %258 = vector.broadcast %cst_84 : f32 to vector<8x1xf32>
    %259 = arith.divf %257, %258 : vector<8x1xf32>
    %cst_85 = arith.constant 9.99999997E-7 : f32
    %260 = vector.broadcast %cst_85 : f32 to vector<8x1xf32>
    %261 = arith.addf %259, %260 : vector<8x1xf32>
    %262 = math.rsqrt %261 : vector<8x1xf32>
    %263 = vector.broadcast %262 : vector<8x1xf32> to vector<8x128xf32>
    %264 = arith.mulf %254, %263 : vector<8x128xf32>
    %265 = vector.broadcast %16 : vector<1x128xf32> to vector<8x128xf32>
    %266 = arith.mulf %264, %265 : vector<8x128xf32>
    %c0_86 = arith.constant 0 : index
    %c0_87 = arith.constant 0 : index
    %c0_88 = arith.constant 0 : index
    %267 = vector.load %arg15[%c0_86, %c0_87, %c0_88] : memref<1x8x128xf32, #tpu.memory_space<vmem>>, vector<1x8x128xf32>
    %268 = vector.shape_cast %267 : vector<1x8x128xf32> to vector<8x128xf32>
    %269 = vector.shape_cast %266 : vector<8x128xf32> to vector<1x8x128xf32>
    tpu.vector_store %arg15[%c0_86, %c0_87, %c0_88], %269 {strides = array<i32>} : memref<1x8x128xf32, #tpu.memory_space<vmem>>, vector<1x8x128xf32>,
    return
  }
  func.func @transform_0(%arg0: i32) -> (i32, i32, i32) {
    %c0_i32 = arith.constant 0 : i32
    %c0_i32_0 = arith.constant 0 : i32
    %c0_i32_1 = arith.constant 0 : i32
    return %arg0, %c0_i32, %c0_i32_0 : i32, i32, i32
  }
  func.func @transform_1(%arg0: i32) -> (i32, i32, i32) {
    %c0_i32 = arith.constant 0 : i32
    %c0_i32_0 = arith.constant 0 : i32
    %c0_i32_1 = arith.constant 0 : i32
    return %arg0, %c0_i32, %c0_i32_0 : i32, i32, i32
  }
  func.func @transform_2(%arg0: i32) -> (i32, i32, i32) {
    %c0_i32 = arith.constant 0 : i32
    %c0_i32_0 = arith.constant 0 : i32
    %c0_i32_1 = arith.constant 0 : i32
    return %arg0, %c0_i32, %c0_i32_0 : i32, i32, i32
  }
  func.func @transform_3(%arg0: i32) -> (i32, i32) {
    %c0_i32 = arith.constant 0 : i32
    %c0_i32_0 = arith.constant 0 : i32
    %c0_i32_1 = arith.constant 0 : i32
    return %c0_i32, %c0_i32_0 : i32, i32
  }
  func.func @transform_4(%arg0: i32) -> (i32, i32) {
    %c0_i32 = arith.constant 0 : i32
    %c0_i32_0 = arith.constant 0 : i32
    %c0_i32_1 = arith.constant 0 : i32
    return %c0_i32, %c0_i32_0 : i32, i32
  }
  func.func @transform_5(%arg0: i32) -> (i32, i32) {
    %c0_i32 = arith.constant 0 : i32
    %c0_i32_0 = arith.constant 0 : i32
    %c0_i32_1 = arith.constant 0 : i32
    return %c0_i32, %c0_i32_0 : i32, i32
  }
  func.func @transform_6(%arg0: i32) -> (i32, i32) {
    %c0_i32 = arith.constant 0 : i32
    %c0_i32_0 = arith.constant 0 : i32
    %c0_i32_1 = arith.constant 0 : i32
    return %c0_i32, %c0_i32_0 : i32, i32
  }
  func.func @transform_7(%arg0: i32) -> (i32, i32) {
    %c0_i32 = arith.constant 0 : i32
    %c0_i32_0 = arith.constant 0 : i32
    %c0_i32_1 = arith.constant 0 : i32
    return %c0_i32, %c0_i32_0 : i32, i32
  }
  func.func @transform_8(%arg0: i32) -> (i32, i32) {
    %c0_i32 = arith.constant 0 : i32
    %c0_i32_0 = arith.constant 0 : i32
    %c0_i32_1 = arith.constant 0 : i32
    return %c0_i32, %c0_i32_0 : i32, i32
  }
  func.func @transform_9(%arg0: i32) -> (i32, i32) {
    %c0_i32 = arith.constant 0 : i32
    %c0_i32_0 = arith.constant 0 : i32
    %c0_i32_1 = arith.constant 0 : i32
    return %c0_i32, %c0_i32_0 : i32, i32
  }
  func.func @transform_10(%arg0: i32) -> (i32, i32) {
    %c0_i32 = arith.constant 0 : i32
    %c0_i32_0 = arith.constant 0 : i32
    %c0_i32_1 = arith.constant 0 : i32
    return %c0_i32, %c0_i32_0 : i32, i32
  }
  func.func @transform_11(%arg0: i32) -> (i32, i32) {
    %c0_i32 = arith.constant 0 : i32
    %c0_i32_0 = arith.constant 0 : i32
    %c0_i32_1 = arith.constant 0 : i32
    return %c0_i32, %c0_i32_0 : i32, i32
  }
  func.func @transform_12(%arg0: i32) -> (i32, i32) {
    %c0_i32 = arith.constant 0 : i32
    %c0_i32_0 = arith.constant 0 : i32
    %c0_i32_1 = arith.constant 0 : i32
    return %c0_i32, %c0_i32_0 : i32, i32
  }
  func.func @transform_13(%arg0: i32) -> (i32, i32) {
    %c0_i32 = arith.constant 0 : i32
    %c0_i32_0 = arith.constant 0 : i32
    %c0_i32_1 = arith.constant 0 : i32
    return %c0_i32, %c0_i32_0 : i32, i32
  }
  func.func @transform_14(%arg0: i32) -> (i32, i32, i32) {
    %c0_i32 = arith.constant 0 : i32
    %c0_i32_0 = arith.constant 0 : i32
    %c0_i32_1 = arith.constant 0 : i32
    return %arg0, %c0_i32, %c0_i32_0 : i32, i32, i32
  }
}

</mosaic_0001>

<bundles_post_ra>
// kernel: generator_forward.5
= control target key start
LH: loop header
LB: loop body
LE: loop exit
PB: predicated region body
PF: predicated region fallthrough
CT: control target
= control target key end

     0   :  { %8 = vsyncpa [#allocation6], 0  ;;  %s998_s0 = inlined_call_operand.vmem [shape: bf16[16,128], index: 0, kind: input, shape index: {}]   ;;  %s999_s1 = inlined_call_operand.hbm [shape: bf16[128,512], index: 1, kind: input, shape index: {}]   ;;  %s1000_s2 = inlined_call_operand.vmem [shape: s32[16,1], index: 2, kind: input, shape index: {}]   ;;  %s1001_s3 = inlined_call_operand.hbm [shape: f32[1,1], index: 3, kind: output, shape index: {}]  }
   0x1   :  { %10 = vsyncpa [#allocation6 + $0x1], 0 }
   0x2   :  { %11 = vsyncpa [#allocation7], 0  ;;  %s837_s12 = smov 0   ;;  %s839_s13 = smov 0  }
   0x3   :  { %s841_s14 = smov 0   ;;  %s843_s15 = smov 0  }
   0x4 LB: > { %s856_s16 = sadd.s32 4294967295, %s807_s15   ;;  %s859_s17 = sadd.s32 1, %s807_s15   ;;  %s807_s15 = sphi %s843_s15, %s1008_s15   ;;  %s803_s14 = sphi %s841_s14, %s1007_s14   ;;  %s799_s13 = sphi %s839_s13, %s1006_s13   ;;  %s795_s12 = sphi %s837_s12, %s1005_s12  }
   0x5   : > { %s42_s18 = ssub.s32 %s807_s15, %s859_s17  ;;  %s45_s19 = sadd.s32 1, %s803_s14 }
   0x6   : > { %p43_p0 = scmp.eq.s32.totalorder %s42_s18, 0  ;;  %p52_p1 = scmp.ne.s32.totalorder %s803_s14, %s799_s13 }
   0x7   : > { %p53_p2 = scmp.eq.s32.totalorder %s807_s15, 0  ;;  %p58_p3 = scmp.ne.s32.totalorder %s799_s13, %s795_s12 }
   0x8   : > { %s869_s20 = scalar_select %p43_p0, %s803_s14, %s45_s19  }
   0x9   : > { %p871_p4 = por %p53_p2, %p52_p1  ;;  %p59_p5 = scmp.eq.s32.totalorder %s856_s16, 0 }
   0xa   : > { %p647_p6 = scmp.lt.s32.totalorder %s807_s15, 2  ;;  %s130_s23 = sand.u32 1, %s803_s14  }
   0xb   : > { %p877_p7 = por %p59_p5, %p58_p3  ;;  %s537_s24 = sshll.u32 %s130_s23, 7 }
   0xc   : > { %s619_s25 = sshll.u32 %s807_s15, 3  ;;  %s134_s29 = scalar_lea.vmem [#allocation5], %s537_s24 }
   0xd   : > { %s139_s28 = scalar_lea.hbm %s999_s1, %s619_s25  ;;  %s142_s30 = sshll.u32 %s134_s29, 4  ;;  %s143_s30 = int_to_ptr.vmem [resolvable:$true] %s142_s30 }
   0xe   : > { %s140_s4 = sshll.u32 %s139_s28, 4  ;;  %p888_p8 = pnand %p647_p6, %p871_p4  ;;  %s141_s4 = int_to_ptr.hbm [resolvable:$true] %s140_s4 }
   0xf   : > { %s131_s6 = scalar_lea.sflag [#allocation6], %s130_s23  ;;  %s711_s7 = sshra.s32 %s141_s4, 4  ;;  %s712_s7 = int_to_ptr.hbm [resolvable:$true] %s711_s7 }
  0x10   : > { %s713_s8 = scalar_lea.hbm %s712_s7, 128  ;;  %p715_p10 = pneg %p888_p8 }
  0x11   : > { %p714_p9 = scmp.ne.s32.totalorder %s712_s7, %s713_s8  ;;  %s718_s11 = scalar_lea.hbm %s999_s1, 256 }
  0x12   : > { %p719_p13 = scmp.lt.s32.totalorder %s712_s7, %s999_s1  ;;  %p720_p0 = scmp.lt.s32.totalorder %s718_s11, %s713_s8 }
  0x13   : > { %p716_p11 = pnand %p715_p10, %p714_p9 }
  0x14   : > { %p721_p1 = por %p720_p0, %p719_p13 }
  0x15   : > { %p717_p12 = pneg %p716_p11 }
  0x17   : > { %p722_p2 = pnand %p721_p1, %p717_p12 }
  0x19   : > { %725 = shalt.err (!%p722_p2)
}
  0x1a   : > { %s809_s19 = smov 256   ;;  %s810_s21 = smov 128  }
  0x1b   : > { %s811_s23 = smov 8   ;;  %p540_p3 = scmp.ge.s32.totalorder %s807_s15, 1 }
  0x1c   : > { %646 = dma.hbm_to_vmem [thread:$0]  (!%p888_p8), %s141_s4, 2048, %s143_s30, %s131_s6, %s809_s19, %s810_s21, %s811_s23  }
  0x1d   : > { %p150_p4 = scmp.lt.s32.totalorder %s807_s15, 3 }
  0x1f   : > { %p151_p5 = pnand %p540_p3, %p150_p4 }
  0x20   : > { %s156_s24 = sand.u32 (!%p151_p5), 1, %s799_s13  }
  0x21   : > { %154 = sbr.rel (%p151_p5) target bundleno = 634 (0x27a), region = 32  ;;  %s541_s25 = sshll.u32 (!%p151_p5), %s156_s24, 7 }
  0x22   : > { %s157_s26 = scalar_lea.sflag (!%p151_p5), [#allocation6], %s156_s24  ;;  %s905_s27 = scalar_lea.vmem (!%p151_p5), [#allocation5], %s541_s25 }
  0x26   : > { %786 = dma.done.wait (%p877_p7), %s157_s26, 2048  }
  0x27   : > { %788 = vsyncadd (%p877_p7), %s157_s26, 4294965248  ;;  %p542_p6 = scmp.ne.s32.totalorder %s856_s16, 0 }
  0x29   : > { %183 = sbr.rel (%p542_p6) target bundleno = 53 (0x35), region = 40 }
  0x2e   : > { %vm184_vm0 = vcmask 7168   ;;  %v812_v0 = vmov -inf   ;;  %v813_v1 = vmov 0.0  }
  0x2f   : > { %185 = vst.msk [vmem:[#allocation2] sm:$0xff] %vm184_vm0, %v812_v0 }
  0x30   : > { %186 = vst.msk [vmem:[#allocation2 + $0x8] sm:$0xff] %vm184_vm0, %v812_v0 }
  0x31   : > { %187 = vst.msk [vmem:[#allocation3] sm:$0xff] %vm184_vm0, %v813_v1 }
  0x32   : > { %188 = vst.msk [vmem:[#allocation3 + $0x8] sm:$0xff] %vm184_vm0, %v813_v1 }
  0x33   : > { %189 = vst.msk [vmem:[#allocation4] sm:$0xff] %vm184_vm0, %v813_v1 }
  0x34   : > { %190 = vst.msk [vmem:[#allocation4 + $0x8] sm:$0xff] %vm184_vm0, %v813_v1 }
  0x35 PF: > { %v605_v2 = vld [vmem:[%s905_s27 + $0x70] sm:$0xf]  ;;  %v636_v3 = vld [vmem:[%s905_s27 + $0x74] sm:$0xf0]  ;;  %v635_v4 = vld [vmem:[%s905_s27 + $0x74] sm:$0xf]  ;;  %v325_v54 = vlaneseq }
  0x36   : > { %v606_v5 = vor.u32 %v636_v3, %v605_v2  ;;  %v607_v6 = vld [vmem:[%s905_s27 + $0x78] sm:$0xf0]  ;;  %v597_v7 = vld [vmem:[%s905_s27 + $0x60] sm:$0xf]  ;;  %v634_v8 = vld [vmem:[%s905_s27 + $0x64] sm:$0xf0] }
  0x37   : > { %v610_v9 = vor.u32 %v635_v4, %v607_v6  ;;  %v633_v10 = vld [vmem:[%s905_s27 + $0x64] sm:$0xf]  ;;  %v599_v11 = vld [vmem:[%s905_s27 + $0x68] sm:$0xf0]  ;;  %v598_v12 = vor.u32 %v634_v8, %v597_v7  ;;  %v589_v14 = vld [vmem:[%s905_s27 + $0x50] sm:$0xf] }
  0x38   : > { %295 = vmatpush.bf16.msra.mxu0 %v606_v5  ;;  %v602_v13 = vor.u32 %v633_v10, %v599_v11  ;;  %v632_v15 = vld [vmem:[%s905_s27 + $0x54] sm:$0xf0]  ;;  %v631_v16 = vld [vmem:[%s905_s27 + $0x54] sm:$0xf]  ;;  %v591_v17 = vld [vmem:[%s905_s27 + $0x58] sm:$0xf0] }
  0x39   : > { %309 = vmatpush.bf16.msra.mxu1 %v610_v9  ;;  %v590_v18 = vor.u32 %v632_v15, %v589_v14  ;;  %v594_v19 = vor.u32 %v631_v16, %v591_v17  ;;  %v581_v20 = vld [vmem:[%s905_s27 + $0x40] sm:$0xf]  ;;  %v630_v21 = vld [vmem:[%s905_s27 + $0x44] sm:$0xf0]  ;;  %v629_v22 = vld [vmem:[%s905_s27 + $0x44] sm:$0xf] }
  0x3a   : > { %v583_v23 = vld [vmem:[%s905_s27 + $0x48] sm:$0xf0]  ;;  %v582_v24 = vor.u32 %v630_v21, %v581_v20  ;;  %v814_v25 = vmov 0   ;;  %v931_v26 = vld [vmem:[%s1000_s2] sm:$0xff]  ;;  %v628_v29 = vld [vmem:[%s905_s27 + $0x34] sm:$0xf0] }
  0x3b   : > { %691 = vset.pattern.permute.xlu2 %v814_v25  ;;  %v586_v27 = vor.u32 %v629_v22, %v583_v23  ;;  %v573_v28 = vld [vmem:[%s905_s27 + $0x30] sm:$0xf]  ;;  %v627_v30 = vld [vmem:[%s905_s27 + $0x34] sm:$0xf]  ;;  %v575_v31 = vld [vmem:[%s905_s27 + $0x38] sm:$0xf0]  ;;  %690 = vset.pattern.permute.xlu1 %v814_v25 }
  0x3c   : > { %296 = vmatpush.bf16.msra.mxu0 %v598_v12  ;;  %335 = vperm.xlu2 %691, %v931_v26   ;;  %v574_v32 = vor.u32 %v628_v29, %v573_v28  ;;  %v578_v33 = vor.u32 %v627_v30, %v575_v31  ;;  %v565_v34 = vld [vmem:[%s905_s27 + $0x20] sm:$0xf]  ;;  %v626_v35 = vld [vmem:[%s905_s27 + $0x24] sm:$0xf0]  ;;  %v625_v36 = vld [vmem:[%s905_s27 + $0x24] sm:$0xf] }
  0x3d   : > { %310 = vmatpush.bf16.msra.mxu1 %v602_v13  ;;  %692 = vset.pattern.permute.xlu0 %v814_v25  ;;  %v567_v37 = vld [vmem:[%s905_s27 + $0x28] sm:$0xf0]  ;;  %v945_v38 = vld [vmem:[%s1000_s2 + $0x8] sm:$0xff]  ;;  %v566_v39 = vor.u32 %v626_v35, %v565_v34  ;;  %v557_v41 = vld [vmem:[%s905_s27 + $0x10] sm:$0xf]  ;;  %v326_v56 = vand.u32 127, %v325_v54 }
  0x3e   : > { %v570_v40 = vor.u32 %v625_v36, %v567_v37  ;;  %v624_v42 = vld [vmem:[%s905_s27 + $0x14] sm:$0xf0]  ;;  %v623_v43 = vld [vmem:[%s905_s27 + $0x14] sm:$0xf]  ;;  %v559_v44 = vld [vmem:[%s905_s27 + $0x18] sm:$0xf0] }
  0x3f   : > { %v558_v45 = vor.u32 %v624_v42, %v557_v41  ;;  %v562_v46 = vor.u32 %v623_v43, %v559_v44  ;;  %v549_v47 = vld [vmem:[%s905_s27] sm:$0xf]  ;;  %v622_v48 = vld [vmem:[%s905_s27 + $0x4] sm:$0xf0]  ;;  %v621_v49 = vld [vmem:[%s905_s27 + $0x4] sm:$0xf] }
  0x40   : > { %297 = vmatpush.bf16.msra.mxu0 %v590_v18  ;;  %v551_v50 = vld [vmem:[%s905_s27 + $0x8] sm:$0xf0]  ;;  %v550_v51 = vor.u32 %v622_v48, %v549_v47  ;;  %v620_v53 = vld [vmem:[%s998_s0] sm:$0xff]  ;;  %s611_s5 = sshll.u32 %s856_s16, 8  ;;  %v327_v58 = vadd.s32 128, %v326_v56  ;;  %vm356_vm5 = vcmask 7168  }
  0x41   : > { %311 = vmatpush.bf16.msra.mxu1 %v594_v19  ;;  %v554_v52 = vor.u32 %v621_v49, %v551_v50  ;;  %v329_v59 = vstv %s611_s5  ;;  %v359_v10 = vld [vmem:[#allocation2] sm:$0xff]  ;;  %v360_v14 = vld [vmem:[#allocation2 + $0x8] sm:$0xff]  ;;  %v370_v50 = vld [vmem:[#allocation3 + $0x8] sm:$0xff]  ;;  %p612_p7 = scmp.ne.s32.totalorder %s856_s16, 1 }
  0x42   : > { %v330_v63 = vadd.s32 %v329_v59, %v326_v56  ;;  %v331_v0 = vadd.s32 %v329_v59, %v327_v58  ;;  %v332_v18 = vld [vmem:[#allocation4] sm:$0xff] }
  0x44   : > { %298 = vmatpush.bf16.msra.mxu0 %v582_v24  ;;  %338 = vperm.xlu2 %691, %v945_v38  }
  0x45   : > { %312 = vmatpush.bf16.msra.mxu1 %v586_v27 }
  0x48   : > { %299 = vmatpush.bf16.msra.mxu0 %v574_v32 }
  0x49   : > { %313 = vmatpush.bf16.msra.mxu1 %v578_v33 }
  0x4c   : > { %300 = vmatpush.bf16.msra.mxu0 %v566_v39  ;;  %v333_v39 = vld [vmem:[#allocation4 + $0x8] sm:$0xff] }
  0x4d   : > { %314 = vmatpush.bf16.msra.mxu1 %v570_v40 }
  0x50   : > { %301 = vmatpush.bf16.msra.mxu0 %v558_v45  ;;  %v369_v45 = vld [vmem:[#allocation3] sm:$0xff] }
  0x51   : > { %315 = vmatpush.bf16.msra.mxu1 %v562_v46 }
  0x54   : > { %302 = vmatpush.bf16.msra.mxu0 %v550_v51 }
  0x55   : > { %316 = vmatpush.bf16.msra.mxu1 %v554_v52 }
  0x57   : > { %303 = vmatmul.bf16.vlgmr.msra.gmra.mxu0 %v620_v53 }
  0x58   : > { %317 = vmatmul.bf16.vlgmr.msra.gmra.mxu1 %v620_v53 }
  0x96   : > { %v336_v55 = vpop.permute.xlu2 %335 }
  0x97   : > { %vm340_vm3 = vcmp.eq.s32.totalorder %v330_v63, %v336_v55  ;;  %vm341_vm4 = vcmp.eq.s32.totalorder %v331_v0, %v336_v55 }
  0x9e   : > { %v339_v62 = vpop.permute.xlu2 %338 }
  0x9f   : > { %vm342_vm1 = vcmp.eq.s32.totalorder %v330_v63, %v339_v62  ;;  %vm343_vm2 = vcmp.eq.s32.totalorder %v331_v0, %v339_v62 }
  0xd4   : > { %v304_v57 = vpop.f32.mrf.mxu0 }
  0xd5   : > { %v318_v60 = vpop.f32.mrf.mxu1  ;;  %v344_v7 = vsel %vm340_vm3, %v304_v57, 0.0 }
  0xd6   : > { %v361_v61 = vmax.f32 %v304_v57, %v318_v60  ;;  %v345_v8 = vsel %vm341_vm4, %v318_v60, 0.0 }
  0xd7   : > { %v348_v9 = vadd.f32 %v345_v8, %v344_v7 }
  0xd8   : > { %362 = vmax.xlane.f32.xlu0 %v361_v61 }
  0xdc   : > { %v306_v1 = vpop.f32.mrf.mxu0 }
  0xdd   : > { %v346_v2 = vsel %vm342_vm1, %v306_v1, 0.0  ;;  %v320_v3 = vpop.f32.mrf.mxu1 }
  0xde   : > { %v347_v4 = vsel %vm343_vm2, %v320_v3, 0.0  ;;  %v364_v5 = vmax.f32 %v306_v1, %v320_v3 }
  0xdf   : > { %v351_v6 = vadd.f32 %v347_v4, %v346_v2 }
  0xe0   : > { %365 = vmax.xlane.f32.xlu0 %v364_v5 }
  0xe8   : > { %349 = vadd.xlane.f32.xlu0 %v348_v9 }
 0x14b   : > { %v363_v11 = vpop.xlane.xlu0 %362 }
 0x14c   : > { %v367_v12 = vmax.f32 %v359_v10, %v363_v11 }
 0x14e   : > { %v371_v13 = vsub.f32 %v359_v10, %v367_v12  ;;  %411 = vst.msk [vmem:[#allocation2] sm:$0xff] %vm356_vm5, %v367_v12  ;;  %381 = vperm.xlu1 %690, %v367_v12  }
 0x150   : > { %v373_v42 = vmul.f32 1.442695, %v371_v13 }
 0x153   : > { %v366_v15 = vpop.xlane.xlu0 %365 }
 0x154   : > { %v368_v16 = vmax.f32 %v360_v14, %v366_v15 }
 0x156   : > { %v372_v17 = vsub.f32 %v360_v14, %v368_v16  ;;  %412 = vst.msk [vmem:[#allocation2 + $0x8] sm:$0xff] %vm356_vm5, %v368_v16  ;;  %386 = vperm.xlu1 %690, %v368_v16  }
 0x158   : > { %v375_v43 = vmul.f32 1.442695, %v372_v17 }
 0x15b   : > { %v350_v19 = vpop.xlane.xlu0 %349 }
 0x15c   : > { %v354_v20 = vadd.f32 %v350_v19, %v332_v18 }
 0x15e   : > { %357 = vst.msk [vmem:[#allocation4] sm:$0xff] %vm356_vm5, %v354_v20 }
 0x180   : > { %352 = vadd.xlane.f32.xlu1 %v351_v6 }
 0x1c0   : > { %v382_v21 = vpop.permute.xlu1 %381 }
 0x1c1   : > { %v389_v22 = vsub.f32 %v304_v57, %v382_v21  ;;  %v390_v23 = vsub.f32 %v318_v60, %v382_v21 }
 0x1c3   : > { %v393_v24 = vmul.f32 1.442695, %v389_v22  ;;  %v395_v25 = vmul.f32 1.442695, %v390_v23 }
 0x1c5   : > { %693 = vpow2.f32 %v393_v24 }
 0x1c6   : > { %695 = vpow2.f32 %v395_v25 }
 0x1c8   : > { %v387_v27 = vpop.permute.xlu1 %386 }
 0x1c9   : > { %v391_v28 = vsub.f32 %v306_v1, %v387_v27  ;;  %v392_v29 = vsub.f32 %v320_v3, %v387_v27 }
 0x1cb   : > { %v694_v30 = vpop.eup %693  ;;  %v397_v31 = vmul.f32 1.442695, %v391_v28  ;;  %v399_v32 = vmul.f32 1.442695, %v392_v29 }
 0x1cc   : > { %v696_v33 = vpop.eup %695 }
 0x1cd   : > { %697 = vpow2.f32 %v397_v31  ;;  %v401_v34 = vadd.f32 %v696_v33, %v694_v30 }
 0x1ce   : > { %699 = vpow2.f32 %v399_v32 }
 0x1cf   : > { %402 = vadd.xlane.f32.xlu2 %v401_v34  ;;  %701 = vpow2.f32 %v373_v42 }
 0x1d0   : > { %703 = vpow2.f32 %v375_v43 }
 0x1d3   : > { %v698_v35 = vpop.eup %697 }
 0x1d4   : > { %v700_v36 = vpop.eup %699 }
 0x1d5   : > { %v404_v37 = vadd.f32 %v700_v36, %v698_v35  ;;  %v702_v44 = vpop.eup %701 }
 0x1d6   : > { %v377_v46 = vmul.f32 %v702_v44, %v369_v45  ;;  %v704_v49 = vpop.eup %703 }
 0x1d7   : > { %405 = vadd.xlane.f32.xlu0 %v404_v37  ;;  %v378_v51 = vmul.f32 %v704_v49, %v370_v50 }
 0x1f3   : > { %v353_v40 = vpop.xlane.xlu1 %352 }
 0x1f4   : > { %v355_v41 = vadd.f32 %v353_v40, %v333_v39 }
 0x1f6   : > { %358 = vst.msk [vmem:[#allocation4 + $0x8] sm:$0xff] %vm356_vm5, %v355_v41 }
 0x242   : > { %v403_v47 = vpop.xlane.xlu2 %402 }
 0x243   : > { %v407_v48 = vadd.f32 %v403_v47, %v377_v46 }
 0x245   : > { %409 = vst.msk [vmem:[#allocation3] sm:$0xff] %vm356_vm5, %v407_v48 }
 0x249   : > { %416 = sbr.rel (%p612_p7) target bundleno = 629 (0x275), region = 44 }
 0x24a   : > { %v406_v52 = vpop.xlane.xlu0 %405 }
 0x24b   : > { %v408_v53 = vadd.f32 %v406_v52, %v378_v51 }
 0x24d   : > { %410 = vst.msk [vmem:[#allocation3 + $0x8] sm:$0xff] %vm356_vm5, %v408_v53 }
 0x24e   : > { %vm417_vm6 = vcmp.ne.s32.totalorder %v931_v26, 4294967196  ;;  %vm418_vm7 = vcmp.ne.s32.totalorder %v945_v38, 4294967196  ;;  %v421_v54 = vld [vmem:[#allocation3] sm:$0xff]  ;;  %v815_v56 = vmov 0.0   ;;  %v419_v0 = vld [vmem:[#allocation2] sm:$0xff]  ;;  %v420_v3 = vld [vmem:[#allocation2 + $0x8] sm:$0xff] }
 0x24f   : > { %705 = vlog2.f32 %v421_v54  ;;  %v613_v57 = vsel %vm417_vm6, 1.0, %v815_v56  ;;  %v614_v58 = vsel %vm418_vm7, 1.0, %v815_v56  ;;  %v429_v6 = vld [vmem:[#allocation4] sm:$0xff]  ;;  %v430_v9 = vld [vmem:[#allocation4 + $0x8] sm:$0xff]  ;;  %vm473_vm12 = vcmask 0  }
 0x250   : > { %v448_v59 = vsel %vm356_vm5, %v613_v57, 0.0  ;;  %v449_v60 = vsel %vm356_vm5, %v614_v58, 0.0 }
 0x251   : > { %v450_v61 = vadd.f32 %v449_v60, %v448_v59 }
 0x253   : > { %v451_v62 = vrot.slane %v450_v61, 4 }
 0x254   : > { %v422_v55 = vld [vmem:[#allocation3 + $0x8] sm:$0xff] }
 0x255   : > { %707 = vlog2.f32 %v422_v55  ;;  %v706_v63 = vpop.eup %705  ;;  %v452_v1 = vadd.f32 %v451_v62, %v450_v61 }
 0x256   : > { %v424_v4 = vmul.f32 0.6931472, %v706_v63 }
 0x257   : > { %v453_v7 = vrot.slane %v452_v1, 2 }
 0x258   : > { %v427_v8 = vadd.f32 %v424_v4, %v419_v0 }
 0x259   : > { %v454_v11 = vadd.f32 %v453_v7, %v452_v1 }
 0x25a   : > { %v431_v12 = vsub.f32 %v427_v8, %v429_v6 }
 0x25b   : > { %v708_v2 = vpop.eup %707  ;;  %v455_v14 = vrot.slane %v454_v11, 1 }
 0x25c   : > { %v426_v5 = vmul.f32 0.6931472, %v708_v2  ;;  %v433_v15 = vsel %vm417_vm6, %v431_v12, 0.0 }
 0x25d   : > { %v435_v17 = vsel %vm356_vm5, %v433_v15, 0.0  ;;  %v456_v18 = vadd.f32 %v455_v14, %v454_v11 }
 0x25e   : > { %v428_v10 = vadd.f32 %v426_v5, %v420_v3 }
 0x25f   : > { %v457_v21 = vmax.f32 %v456_v18, 1.0 }
 0x260   : > { %v432_v13 = vsub.f32 %v428_v10, %v430_v9 }
 0x261   : > { %709 = vrcp.f32 %v457_v21  ;;  %vm463_vm8 = vweird.f32 %v457_v21  ;;  %v469_v26 = vand.u32 2147483648, %v457_v21  ;;  %v467_v38 = vand.u32 2147483647, %v457_v21 }
 0x262   : > { %v434_v16 = vsel %vm418_vm7, %v432_v13, 0.0 }
 0x263   : > { %v436_v19 = vsel %vm356_vm5, %v434_v16, 0.0  ;;  %v470_v32 = vor.u32 1.1754944e-38, %v469_v26  ;;  %vm468_vm11 = vcmp.eq.f32.partialorder %v467_v38, 8.507059e+37 }
 0x264   : > { %v437_v20 = vadd.f32 %v436_v19, %v435_v17 }
 0x266   : > { %v438_v22 = vrot.slane %v437_v20, 4 }
 0x267   : > { %v710_v25 = vpop.eup %709 }
 0x268   : > { %v439_v23 = vadd.f32 %v438_v22, %v437_v20  ;;  %v459_v28 = vmul.f32 %v710_v25, %v457_v21  ;;  %vm464_vm9 = vweird.f32 %v710_v25 }
 0x269   : > { %vm465_vm10 = vmor %vm463_vm8, %vm464_vm9 }
 0x26a   : > { %v440_v24 = vrot.slane %v439_v23, 2  ;;  %v460_v30 = vsub.f32 1.0, %v459_v28 }
 0x26c   : > { %v441_v27 = vadd.f32 %v440_v24, %v439_v23  ;;  %v461_v31 = vmul.f32 %v710_v25, %v460_v30 }
 0x26e   : > { %v442_v29 = vrot.slane %v441_v27, 1  ;;  %v462_v34 = vadd.f32 %v710_v25, %v461_v31 }
 0x270   : > { %v443_v33 = vadd.f32 %v442_v29, %v441_v27  ;;  %v466_v35 = vsel %vm465_vm10, %v710_v25, %v462_v34 }
 0x271   : > { %v471_v36 = vsel %vm468_vm11, %v470_v32, %v466_v35 }
 0x272   : > { %v472_v37 = vmul.f32 %v471_v36, %v443_v33 }
 0x274   : > { %474 = vst.msk [vmem:[#allocation8] sm:$0x1] %vm473_vm12, %v472_v37 }
 0x275 PF: > { %p648_p8 = scmp.eq.s32.totalorder %s856_s16, 1  ;;  %s816_s6 = smov [#allocation8]  }
 0x276   : > { %s481_s7 = sshll.u32 %s816_s6, 4  ;;  %s483_s10 = sshll.u32 %s1001_s3, 4  ;;  %s482_s7 = int_to_ptr.vmem [resolvable:$true] %s481_s7  ;;  %s484_s10 = int_to_ptr.hbm [resolvable:$true] %s483_s10 }
 0x277   : > { %640 = dma.vmem_to_hbm [thread:$0]  (%p648_p8), %s482_s7, 16, %s484_s10, [#allocation7]  }
 0x278   : > { %790 = dma.done.wait (%p648_p8), [#allocation7], 16  }
 0x279   : > { %792 = vsyncadd (%p648_p8), [#allocation7], 4294967280 }
 0x27a PF: > { %p14_p9 = scmp.ge.s32.totalorder %s859_s17, 4   ;;  %s1005_s12 = smov %s799_s13 }
 0x27b   : > { %s1006_s13 = smov %s803_s14  ;;  %s1007_s14 = smov %s869_s20 }
 0x27c   : > { %s1008_s15 = smov %s859_s17  ;;  %16 = sbr.rel (!%p14_p9) target bundleno = 4 (0x4), region = 77 }
 0x281   :  { %497 = vsyncpa [#allocation6], 1 }
 0x282   :  { %499 = vsyncpa [#allocation6 + $0x1], 1 }
 0x283   :  { %500 = vsyncpa [#allocation7], 1 }
 0x284   :  { %502 = vsyncpa [#allocation7 + $0x1], 1 }

// kernel: generator_forward.3
= control target key start
LH: loop header
LB: loop body
LE: loop exit
PB: predicated region body
PF: predicated region fallthrough
CT: control target
= control target key end

     0   :  { %14 = vsyncpa [#allocation3], 0  ;;  %s2909_s0 = inlined_call_operand.vmem [shape: f32[2,16,128], index: 0, kind: input, shape index: {}]   ;;  %s2910_s1 = inlined_call_operand.vmem [shape: f32[2,1,16], index: 1, kind: input, shape index: {}]   ;;  %s2911_s2 = inlined_call_operand.vmem [shape: f32[1,128], index: 2, kind: input, shape index: {}]   ;;  %s2912_s3 = inlined_call_operand.hbm [shape: bf16[128,384], index: 3, kind: input, shape index: {}]   ;;  %s2913_s4 = inlined_call_operand.hbm [shape: bf16[128,128], index: 4, kind: input, shape index: {}]   ;;  %s2914_s5 = inlined_call_operand.vmem [shape: f32[1,128], index: 5, kind: input, shape index: {}]   ;;  %s2915_s6 = inlined_call_operand.vmem [shape: bf16[128,512], index: 6, kind: input, shape index: {}]   ;;  %s2916_s7 = inlined_call_operand.hbm [shape: bf16[256,128], index: 7, kind: input, shape index: {}]   ;;  %s2917_s8 = inlined_call_operand.vmem [shape: f32[1,128], index: 8, kind: input, shape index: {}]   ;;  %s2918_s9 = inlined_call_operand.vmem [shape: f32[2,16,128], index: 9, kind: output, shape index: {}]  }
   0x1   :  { %15 = vsyncpa [#allocation5], 0  ;;  %s2474_s30 = smov 0  }
   0x2 LB: > { %s279_s12 = sshll.u32 %s2913_s4, 4  ;;  %s2483_s13 = sadd.s32 4294967295, %s2411_s30   ;;  %s2411_s30 = sphi %s2474_s30, %s21_s30   ;;  %s280_s12 = int_to_ptr.hbm [resolvable:$true] %s279_s12 }
   0x3   : > { %p1762_p0 = scmp.ge.s32.totalorder %s2411_s30, 1  ;;  %p251_p1 = scmp.lt.s32.totalorder %s2411_s30, 3 }
   0x4   : > { %p2209_p2 = scmp.eq.s32.totalorder %s2483_s13, 0  ;;  %s2413_s15 = smov [#allocation4]  }
   0x5   : > { %p2488_p3 = pnand %p1762_p0, %p251_p1  ;;  %s281_s16 = sshll.u32 %s2413_s15, 4  ;;  %s282_s16 = int_to_ptr.vmem [resolvable:$true] %s281_s16 }
   0x6   : > { %s265_s19 = sshll.u32 %s2912_s3, 4  ;;  %s2414_s21 = smov [#allocation2]   ;;  %s266_s19 = int_to_ptr.hbm [resolvable:$true] %s265_s19 }
   0x7   : > { %p2199_p4 = pneg %p2488_p3  ;;  %s267_s22 = sshll.u32 %s2414_s21, 4  ;;  %s268_s22 = int_to_ptr.vmem [resolvable:$true] %s267_s22 }
   0x8   : > { %s2415_s23 = smov 64   ;;  %s2416_s24 = smov 4  }
   0x9   : > { %p2499_p5 = pnand %p2209_p2, %p2199_p4  ;;  %s299_s27 = sshll.u32 %s2916_s7, 4  ;;  %s300_s27 = int_to_ptr.hbm [resolvable:$true] %s299_s27 }
   0xa   : > { %s2417_s28 = smov 192   ;;  %s2418_s29 = smov 12  }
   0xb   : > { %2205 = dma.hbm_to_vmem [thread:$0]  (!%p2499_p5), %s280_s12, 1024, %s282_s16, [#allocation5], %s2415_s23, %s2415_s23, %s2416_s24  }
   0xc   : > { %2202 = dma.hbm_to_vmem [thread:$0]  (!%p2499_p5), %s266_s19, 3072, %s268_s22, [#allocation3], %s2417_s28, %s2417_s28, %s2418_s29  }
   0xd   : > { %s2419_s10 = smov [#allocation6]   ;;  %334 = sbr.rel (%p2488_p3) target bundleno = 2172 (0x87c), region = 56 }
   0xe   : > { %s301_s11 = sshll.u32 %s2419_s10, 4  ;;  %s302_s11 = int_to_ptr.vmem [resolvable:$true] %s301_s11 }
   0xf   : > { %2208 = dma.hbm_to_vmem [thread:$0]  (!%p2499_p5), %s300_s27, 2048, %s302_s11, [#allocation5], %s2415_s23, %s2415_s23, %s2416_s24  }
  0x12   : > { %2402 = dma.done.wait (%p2209_p2), [#allocation3], 3072  }
  0x13   : > { %2404 = vsyncadd (%p2209_p2), [#allocation3], 4294964224 }
  0x14   : > { %2406 = dma.done.wait (%p2209_p2), [#allocation5], 3072  }
  0x15   : > { %2408 = vsyncadd (%p2209_p2), [#allocation5], 4294964224  ;;  %p384_p6 = scmp.lt.s32.totalorder %s2483_s13, 1  ;;  %v1861_v4 = vld [vmem:[#allocation2 + $0xa8] sm:$0xf]  ;;  %v2420_v11 = vmov 128.0  }
  0x16   : > { %v2129_v5 = vld [vmem:[#allocation2 + $0xb0] sm:$0xf0]  ;;  %v2128_v6 = vld [vmem:[#allocation2 + $0xac] sm:$0xf]  ;;  %v1863_v8 = vld [vmem:[#allocation2 + $0xb4] sm:$0xf0]  ;;  %2253 = vrcp.f32 %v2420_v11 }
  0x17   : > { %s2928_s13 = smov (!%p384_p6, %s2483_s13), 1  ;;  %v1862_v7 = vor.u32 %v2129_v5, %v1861_v4  ;;  %v1869_v9 = vld [vmem:[#allocation2 + $0xb0] sm:$0xf]  ;;  %v2130_v10 = vld [vmem:[#allocation2 + $0xb8] sm:$0xf0]  ;;  %v1866_v12 = vor.u32 %v2128_v6, %v1863_v8  ;;  %vm736_vm7 = vcmask 261120  }
  0x18   : > { %s2105_s12 = sshll.u32 %s2928_s13, 4  ;;  %s391_s19 = scalar_lea.vmem %s2910_s1, %s2928_s13  ;;  %v1870_v13 = vor.u32 %v2130_v10, %v1869_v9  ;;  %v1849_v14 = vld [vmem:[#allocation2 + $0x90] sm:$0xf]  ;;  %v2126_v15 = vld [vmem:[#allocation2 + $0x98] sm:$0xf0]  ;;  %vm757_vm8 = vcmask 130048  }
  0x19   : > { %s388_s16 = scalar_lea.vmem %s2909_s0, %s2105_s12  ;;  %689 = vmatpush.bf16.msra.mxu0 %v1862_v7  ;;  %703 = vmatpush.bf16.msra.mxu1 %v1866_v12  ;;  %v2125_v16 = vld [vmem:[#allocation2 + $0x94] sm:$0xf]  ;;  %v1850_v17 = vor.u32 %v2126_v15, %v1849_v14  ;;  %v1851_v18 = vld [vmem:[#allocation2 + $0x9c] sm:$0xf0]  ;;  %v1857_v19 = vld [vmem:[#allocation2 + $0x98] sm:$0xf]  ;;  %s396_s17 = scalar_lea.vmem %s2918_s9, %s2105_s12 }
  0x1a   : > { %v2536_v0 = vld [vmem:[%s388_s16] sm:$0xff]  ;;  %v2540_v2 = vld [vmem:[%s388_s16 + $0x8] sm:$0xff]  ;;  %717 = vmatpush.bf16.msra.mxu2 %v1870_v13  ;;  %v1854_v21 = vor.u32 %v2125_v16, %v1851_v18  ;;  %v1837_v24 = vld [vmem:[#allocation2 + $0x78] sm:$0xf]  ;;  %s2421_s22 = smov 96   ;;  %s2422_s23 = smov 32  }
  0x1b   : > { %v516_v1 = vmul.f32 %v2536_v0, %v2536_v0  ;;  %v517_v3 = vmul.f32 %v2540_v2, %v2540_v2  ;;  %v2127_v20 = vld [vmem:[#allocation2 + $0xa0] sm:$0xf0]  ;;  %v2122_v26 = vld [vmem:[#allocation2 + $0x7c] sm:$0xf]  ;;  %v1839_v28 = vld [vmem:[#allocation2 + $0x84] sm:$0xf0] }
  0x1c   : > { %v1858_v22 = vor.u32 %v2127_v20, %v1857_v19  ;;  %v2544_v23 = vpop.eup %2253  ;;  %v2123_v25 = vld [vmem:[#allocation2 + $0x80] sm:$0xf0]  ;;  %v1845_v29 = vld [vmem:[#allocation2 + $0x80] sm:$0xf]  ;;  %v2124_v30 = vld [vmem:[#allocation2 + $0x88] sm:$0xf0]  ;;  %v1842_v31 = vor.u32 %v2122_v26, %v1839_v28 }
  0x1d   : > { %518 = vadd.xlane.f32.xlu0 %v516_v1  ;;  %690 = vmatpush.bf16.msra.mxu0 %v1850_v17  ;;  %v1838_v27 = vor.u32 %v2123_v25, %v1837_v24  ;;  %v1846_v32 = vor.u32 %v2124_v30, %v1845_v29  ;;  %v523_v33 = vmul.f32 128.0, %v2544_v23  ;;  %v1825_v34 = vld [vmem:[#allocation2 + $0x60] sm:$0xf]  ;;  %v2120_v35 = vld [vmem:[#allocation2 + $0x68] sm:$0xf0]  ;;  %vm527_vm0 = vweird.f32 %v2544_v23  ;;  %s2423_s26 = smov 64  }
  0x1e   : > { %704 = vmatpush.bf16.msra.mxu1 %v1854_v21  ;;  %718 = vmatpush.bf16.msra.mxu2 %v1858_v22  ;;  %v2119_v36 = vld [vmem:[#allocation2 + $0x64] sm:$0xf]  ;;  %v1826_v37 = vor.u32 %v2120_v35, %v1825_v34  ;;  %v1827_v38 = vld [vmem:[#allocation2 + $0x6c] sm:$0xf0]  ;;  %v1833_v39 = vld [vmem:[#allocation2 + $0x68] sm:$0xf] }
  0x1f   : > { %v2121_v40 = vld [vmem:[#allocation2 + $0x70] sm:$0xf0]  ;;  %v1830_v41 = vor.u32 %v2119_v36, %v1827_v38  ;;  %v524_v43 = vsub.f32 1.0, %v523_v33  ;;  %v1813_v44 = vld [vmem:[#allocation2 + $0x48] sm:$0xf] }
  0x20   : > { %v1834_v42 = vor.u32 %v2121_v40, %v1833_v39  ;;  %v2117_v45 = vld [vmem:[#allocation2 + $0x50] sm:$0xf0]  ;;  %v2116_v46 = vld [vmem:[#allocation2 + $0x4c] sm:$0xf]  ;;  %v1815_v48 = vld [vmem:[#allocation2 + $0x54] sm:$0xf0] }
  0x21   : > { %691 = vmatpush.bf16.msra.mxu0 %v1838_v27  ;;  %v1814_v47 = vor.u32 %v2117_v45, %v1813_v44  ;;  %v1821_v49 = vld [vmem:[#allocation2 + $0x50] sm:$0xf]  ;;  %v2118_v50 = vld [vmem:[#allocation2 + $0x58] sm:$0xf0]  ;;  %v1818_v51 = vor.u32 %v2116_v46, %v1815_v48  ;;  %v525_v53 = vmul.f32 %v2544_v23, %v524_v43  ;;  %v2113_v56 = vld [vmem:[#allocation2 + $0x34] sm:$0xf] }
  0x22   : > { %705 = vmatpush.bf16.msra.mxu1 %v1842_v31  ;;  %719 = vmatpush.bf16.msra.mxu2 %v1846_v32  ;;  %v1822_v52 = vor.u32 %v2118_v50, %v1821_v49  ;;  %v1801_v54 = vld [vmem:[#allocation2 + $0x30] sm:$0xf]  ;;  %v2114_v55 = vld [vmem:[#allocation2 + $0x38] sm:$0xf0]  ;;  %v1803_v58 = vld [vmem:[#allocation2 + $0x3c] sm:$0xf0] }
  0x23   : > { %v1802_v57 = vor.u32 %v2114_v55, %v1801_v54  ;;  %v1809_v59 = vld [vmem:[#allocation2 + $0x38] sm:$0xf]  ;;  %v2115_v60 = vld [vmem:[#allocation2 + $0x40] sm:$0xf0]  ;;  %v1806_v61 = vor.u32 %v2113_v56, %v1803_v58  ;;  %v526_v63 = vadd.f32 %v2544_v23, %v525_v53  ;;  %v2110_v4 = vld [vmem:[#allocation2 + $0x1c] sm:$0xf] }
  0x24   : > { %v1810_v62 = vor.u32 %v2115_v60, %v1809_v59  ;;  %v1789_v1 = vld [vmem:[#allocation2 + $0x18] sm:$0xf]  ;;  %v1791_v6 = vld [vmem:[#allocation2 + $0x24] sm:$0xf0]  ;;  %v1797_v7 = vld [vmem:[#allocation2 + $0x20] sm:$0xf] }
  0x25   : > { %520 = vadd.xlane.f32.xlu0 %v517_v3  ;;  %692 = vmatpush.bf16.msra.mxu0 %v1826_v37  ;;  %v2111_v3 = vld [vmem:[#allocation2 + $0x20] sm:$0xf0]  ;;  %v2112_v8 = vld [vmem:[#allocation2 + $0x28] sm:$0xf0]  ;;  %v1794_v9 = vor.u32 %v2110_v4, %v1791_v6  ;;  %v2551_v11 = vsel %vm527_vm0, %v2544_v23, %v526_v63  ;;  %v1777_v12 = vld [vmem:[#allocation2] sm:$0xf] }
  0x26   : > { %706 = vmatpush.bf16.msra.mxu1 %v1830_v41  ;;  %720 = vmatpush.bf16.msra.mxu2 %v1834_v42  ;;  %v1790_v5 = vor.u32 %v2111_v3, %v1789_v1  ;;  %v1798_v10 = vor.u32 %v2112_v8, %v1797_v7  ;;  %v2108_v13 = vld [vmem:[#allocation2 + $0x8] sm:$0xf0]  ;;  %v2107_v14 = vld [vmem:[#allocation2 + $0x4] sm:$0xf]  ;;  %v1779_v16 = vld [vmem:[#allocation2 + $0xc] sm:$0xf0] }
  0x27   : > { %v1778_v15 = vor.u32 %v2108_v13, %v1777_v12  ;;  %v1785_v17 = vld [vmem:[#allocation2 + $0x8] sm:$0xf]  ;;  %v2109_v18 = vld [vmem:[#allocation2 + $0x10] sm:$0xf0]  ;;  %v1782_v20 = vor.u32 %v2107_v14, %v1779_v16  ;;  %v2250_v41 = vld [vmem:[%s2911_s2] ss:$0 sm:$0xff] }
  0x28   : > { %v1786_v21 = vor.u32 %v2109_v18, %v1785_v17  ;;  %v2573_v59 = vld [vmem:[%s391_s19] ss:$0 sm:$0xff] }
  0x29   : > { %693 = vmatpush.bf16.msra.mxu0 %v1814_v47 }
  0x2a   : > { %707 = vmatpush.bf16.msra.mxu1 %v1818_v51  ;;  %721 = vmatpush.bf16.msra.mxu2 %v1822_v52 }
  0x2d   : > { %694 = vmatpush.bf16.msra.mxu0 %v1802_v57 }
  0x2e   : > { %708 = vmatpush.bf16.msra.mxu1 %v1806_v61  ;;  %722 = vmatpush.bf16.msra.mxu2 %v1810_v62 }
  0x31   : > { %695 = vmatpush.bf16.msra.mxu0 %v1790_v5 }
  0x32   : > { %709 = vmatpush.bf16.msra.mxu1 %v1794_v9  ;;  %723 = vmatpush.bf16.msra.mxu2 %v1798_v10 }
  0x35   : > { %696 = vmatpush.bf16.msra.mxu0 %v1778_v15 }
  0x36   : > { %710 = vmatpush.bf16.msra.mxu1 %v1782_v20  ;;  %724 = vmatpush.bf16.msra.mxu2 %v1786_v21 }
  0x90   : > { %v519_v19 = vpop.xlane.xlu0 %518 }
  0x91   : > { %v529_v22 = vmul.f32 %v2551_v11, %v519_v19 }
  0x93   : > { %v531_v24 = vadd.f32 1e-06, %v529_v22 }
  0x95   : > { %2255 = vrsqrt.f32 %v531_v24  ;;  %vm539_vm2 = vweird.f32 %v531_v24 }
  0x98   : > { %v521_v23 = vpop.xlane.xlu0 %520 }
  0x99   : > { %v530_v25 = vmul.f32 %v2551_v11, %v521_v23 }
  0x9b   : > { %v2256_v26 = vpop.eup %2255  ;;  %v532_v27 = vadd.f32 1e-06, %v530_v25 }
  0x9c   : > { %v534_v28 = vmul.f32 %v2256_v26, %v531_v24  ;;  %vm540_vm1 = vweird.f32 %v2256_v26 }
  0x9d   : > { %2257 = vrsqrt.f32 %v532_v27  ;;  %vm541_vm3 = vmor %vm539_vm2, %vm540_vm1  ;;  %vm549_vm5 = vweird.f32 %v532_v27 }
  0x9e   : > { %v535_v29 = vmul.f32 %v2256_v26, %v534_v28 }
  0xa0   : > { %v536_v30 = vmul.f32 0.5, %v535_v29 }
  0xa2   : > { %v537_v31 = vsub.f32 1.5, %v536_v30 }
  0xa3   : > { %v2258_v32 = vpop.eup %2257 }
  0xa4   : > { %v544_v33 = vmul.f32 %v2258_v32, %v532_v27  ;;  %v538_v34 = vmul.f32 %v2256_v26, %v537_v31  ;;  %vm550_vm4 = vweird.f32 %v2258_v32 }
  0xa5   : > { %vm551_vm6 = vmor %vm549_vm5, %vm550_vm4 }
  0xa6   : > { %v545_v35 = vmul.f32 %v2258_v32, %v544_v33  ;;  %v542_v37 = vsel %vm541_vm3, %v2256_v26, %v538_v34 }
  0xa7   : > { %v553_v40 = vmul.f32 %v542_v37, %v2536_v0 }
  0xa8   : > { %v546_v36 = vmul.f32 0.5, %v545_v35 }
  0xa9   : > { %v558_v44 = vmul.f32 %v2250_v41, %v553_v40 }
  0xaa   : > { %v547_v38 = vsub.f32 1.5, %v546_v36 }
  0xac   : > { %v548_v39 = vmul.f32 %v2258_v32, %v547_v38 }
  0xae   : > { %v552_v42 = vsel %vm551_vm6, %v2258_v32, %v548_v39 }
  0xaf   : > { %v554_v43 = vmul.f32 %v552_v42, %v2540_v2 }
  0xb1   : > { %v559_v45 = vmul.f32 %v2250_v41, %v554_v43 }
  0xb3   : > { %v560_v46 = vpack.c.bf16 %v559_v45, %v558_v44 }
  0xb5   : > { %697 = vmatmul.bf16.vlgmr.msra.gmra.mxu0 %v560_v46  ;;  %711 = vmatmul.bf16.vlgmr.msra.gmra.mxu1 %v560_v46 }
  0xb6   : > { %725 = vmatmul.bf16.vlgmr.msra.gmra.mxu2 %v560_v46 }
 0x132   : > { %v712_v47 = vpop.f32.mrf.mxu1  ;;  %v698_v48 = vpop.f32.mrf.mxu0 }
 0x139   : > { %v726_v49 = vpop.f32.mrf.mxu2 }
 0x13a   : > { %v714_v50 = vpop.f32.mrf.mxu1  ;;  %v700_v53 = vpop.f32.mrf.mxu0 }
 0x13b   : > { %v732_v51 = vpack.c.bf16 %v714_v50, %v712_v47  ;;  %v731_v56 = vpack.c.bf16 %v700_v53, %v698_v48 }
 0x13d   : > { %829 = vrot.lane.b32.xlu0 %v732_v51, %s2421_s22  ;;  %v741_v52 = vsel %vm736_vm7, %v732_v51, 0 }
 0x13e   : > { %750 = vmatpush.bf16.xpose.msrb.mxu0 %v741_v52 }
 0x141   : > { %v728_v54 = vpop.f32.mrf.mxu2 }
 0x142   : > { %v2562_v55 = vpack.c.bf16 %v728_v54, %v726_v49 }
 0x144   : > { %818 = vmatpush.bf16.msra.mxu3 %v2562_v55 }
 0x145   : > { %1016 = vrot.lane.b32.xlu0 %v732_v51, %s2422_s23  ;;  %1871 = vmatmul.msk.bf16.vlgmr.msrb.gmra.mxu0 %vm736_vm7, %v731_v56 }
 0x1af   : > { %v830_v57 = vpop.permute.xlu0 %829 }
 0x1b0   : > { %v835_v58 = vsel %vm736_vm7, %v830_v57, 0 }
 0x1b1   : > { %844 = vmatpush.bf16.xpose.msrb.mxu3 %v835_v58 }
 0x1b7   : > { %v1017_v42 = vpop.permute.xlu0 %1016 }
 0x1b8   : > { %v1022_v44 = vsel %vm736_vm7, %v1017_v42, 0 }
 0x1c2   : > { %v752_v60 = vpop.f32.mrf.mxu0 }
 0x1c3   : > { %v753_v61 = vadd.f32 %v2573_v59, %v752_v60 }
 0x1c5   : > { %v758_v62 = vsel %vm757_vm8, %v753_v61, -inf }
 0x1c6   : > { %759 = vmax.xlane.f32.xlu1 %v758_v62 }
 0x1ca   : > { %v754_v63 = vpop.f32.mrf.mxu0 }
 0x1cb   : > { %v755_v1 = vadd.f32 %v2573_v59, %v754_v63 }
 0x1cd   : > { %v761_v3 = vsel %vm757_vm8, %v755_v1, -inf }
 0x1ce   : > { %762 = vmax.xlane.f32.xlu1 %v761_v3 }
 0x1e7   : > { %826 = vrot.lane.b32.xlu1 %v731_v56, %s2421_s22 }
 0x1ef   : > { %1014 = vrot.lane.b32.xlu1 %v731_v56, %s2422_s23 }
 0x239   : > { %v760_v4 = vpop.xlane.xlu1 %759 }
 0x23a   : > { %v764_v5 = vsub.f32 %v753_v61, %v760_v4 }
 0x23c   : > { %v766_v6 = vmul.f32 1.442695, %v764_v5 }
 0x23e   : > { %2259 = vpow2.f32 %v766_v6 }
 0x241   : > { %v763_v7 = vpop.xlane.xlu1 %762 }
 0x242   : > { %v765_v8 = vsub.f32 %v755_v1, %v763_v7 }
 0x244   : > { %v2260_v9 = vpop.eup %2259  ;;  %v768_v10 = vmul.f32 1.442695, %v765_v8 }
 0x245   : > { %v770_v12 = vsel %vm757_vm8, %v2260_v9, 0.0 }
 0x246   : > { %2261 = vpow2.f32 %v768_v10  ;;  %771 = vadd.xlane.f32.xlu2 %v770_v12 }
 0x24c   : > { %v2262_v13 = vpop.eup %2261 }
 0x24d   : > { %v773_v14 = vsel %vm757_vm8, %v2262_v13, 0.0 }
 0x24e   : > { %774 = vadd.xlane.f32.xlu2 %v773_v14 }
 0x259   : > { %v827_v45 = vpop.permute.xlu1 %826 }
 0x261   : > { %v1015_v46 = vpop.permute.xlu1 %1014 }
 0x266   : > { %923 = vrot.lane.b32.xlu2 %v732_v51, %s2423_s26 }
 0x26e   : > { %921 = vrot.lane.b32.xlu2 %v731_v56, %s2423_s26 }
 0x2b9   : > { %v772_v15 = vpop.xlane.xlu2 %771 }
 0x2ba   : > { %2263 = vrcp.f32 %v772_v15  ;;  %v787_v25 = vand.u32 2147483648, %v772_v15  ;;  %vm781_vm10 = vweird.f32 %v772_v15  ;;  %v785_v27 = vand.u32 2147483647, %v772_v15 }
 0x2bc   : > { %v788_v33 = vor.u32 1.1754944e-38, %v787_v25  ;;  %vm786_vm13 = vcmp.eq.f32.partialorder %v785_v27, 8.507059e+37 }
 0x2c0   : > { %v2264_v16 = vpop.eup %2263 }
 0x2c1   : > { %v777_v17 = vmul.f32 %v2264_v16, %v772_v15  ;;  %v775_v18 = vpop.xlane.xlu2 %774  ;;  %vm782_vm9 = vweird.f32 %v2264_v16 }
 0x2c2   : > { %2265 = vrcp.f32 %v775_v18  ;;  %vm783_vm11 = vmor %vm781_vm10, %vm782_vm9  ;;  %v802_v29 = vand.u32 2147483648, %v775_v18  ;;  %v800_v31 = vand.u32 2147483647, %v775_v18  ;;  %vm796_vm14 = vweird.f32 %v775_v18 }
 0x2c3   : > { %v778_v19 = vsub.f32 1.0, %v777_v17 }
 0x2c4   : > { %v803_v35 = vor.u32 1.1754944e-38, %v802_v29  ;;  %vm801_vm0 = vcmp.eq.f32.partialorder %v800_v31, 8.507059e+37 }
 0x2c5   : > { %v779_v20 = vmul.f32 %v2264_v16, %v778_v19 }
 0x2c7   : > { %v780_v22 = vadd.f32 %v2264_v16, %v779_v20 }
 0x2c8   : > { %v2266_v21 = vpop.eup %2265 }
 0x2c9   : > { %v792_v24 = vmul.f32 %v2266_v21, %v775_v18  ;;  %v924_v23 = vpop.permute.xlu2 %923  ;;  %vm797_vm12 = vweird.f32 %v2266_v21  ;;  %v784_v32 = vsel %vm783_vm11, %v2264_v16, %v780_v22 }
 0x2ca   : > { %v929_v26 = vsel %vm736_vm7, %v924_v23, 0  ;;  %vm798_vm15 = vmor %vm796_vm14, %vm797_vm12  ;;  %v789_v36 = vsel %vm786_vm13, %v788_v33, %v784_v32 }
 0x2cb   : > { %v793_v28 = vsub.f32 1.0, %v792_v24  ;;  %938 = vmatpush.bf16.xpose.msrb.mxu1 %v929_v26  ;;  %v790_v40 = vmul.f32 %v2260_v9, %v789_v36 }
 0x2cd   : > { %v794_v30 = vmul.f32 %v2266_v21, %v793_v28 }
 0x2cf   : > { %v795_v34 = vadd.f32 %v2266_v21, %v794_v30 }
 0x2d1   : > { %v922_v37 = vpop.permute.xlu2 %921  ;;  %v799_v38 = vsel %vm798_vm15, %v2266_v21, %v795_v34 }
 0x2d2   : > { %1875 = vmatmul.msk.bf16.vlgmr.msrb.gmra.mxu1 %vm736_vm7, %v922_v37  ;;  %v804_v39 = vsel %vm801_vm0, %v803_v35, %v799_v38 }
 0x2d3   : > { %v805_v41 = vmul.f32 %v2262_v13, %v804_v39 }
 0x2d5   : > { %v806_v43 = vpack.c.bf16 %v805_v41, %v790_v40 }
 0x2d7   : > { %1872 = vmatmul.msk.bf16.vlgmr.msra.gmra.mxu3 %vm757_vm8, %v806_v43 }
 0x2d8   : > { %1031 = vmatpush.bf16.xpose.msra.mxu3 %v1022_v44 }
 0x2e7   : > { %1873 = vmatmul.msk.bf16.vlgmr.msrb.gmra.mxu3 %vm736_vm7, %v827_v45 }
 0x2f7   : > { %1877 = vmatmul.msk.bf16.vlgmr.msra.gmra.mxu3 %vm736_vm7, %v1015_v46 }
 0x34f   : > { %v940_v47 = vpop.f32.mrf.mxu1 }
 0x350   : > { %v941_v48 = vadd.f32 %v2573_v59, %v940_v47 }
 0x352   : > { %v945_v49 = vsel %vm757_vm8, %v941_v48, -inf }
 0x353   : > { %946 = vmax.xlane.f32.xlu1 %v945_v49 }
 0x357   : > { %v942_v56 = vpop.f32.mrf.mxu1 }
 0x358   : > { %v943_v57 = vadd.f32 %v2573_v59, %v942_v56 }
 0x35a   : > { %v2593_v50 = vpop.f32.mrf.mxu3  ;;  %v948_v62 = vsel %vm757_vm8, %v943_v57, -inf }
 0x362   : > { %v2595_v51 = vpop.f32.mrf.mxu3 }
 0x36a   : > { %v846_v52 = vpop.f32.mrf.mxu3 }
 0x36b   : > { %v847_v53 = vadd.f32 %v2573_v59, %v846_v52 }
 0x36d   : > { %v851_v54 = vsel %vm757_vm8, %v847_v53, -inf }
 0x36e   : > { %852 = vmax.xlane.f32.xlu0 %v851_v54 }
 0x372   : > { %v848_v58 = vpop.f32.mrf.mxu3 }
 0x373   : > { %v849_v60 = vadd.f32 %v2573_v59, %v848_v58 }
 0x375   : > { %v854_v61 = vsel %vm757_vm8, %v849_v60, -inf }
 0x376   : > { %855 = vmax.xlane.f32.xlu2 %v854_v61  ;;  %949 = vmax.xlane.f32.xlu0 %v948_v62 }
 0x37a   : > { %v1033_v63 = vpop.f32.mrf.mxu3 }
 0x37b   : > { %v1034_v1 = vadd.f32 %v2573_v59, %v1033_v63 }
 0x37d   : > { %v1038_v3 = vsel %vm757_vm8, %v1034_v1, -inf }
 0x37e   : > { %1039 = vmax.xlane.f32.xlu2 %v1038_v3 }
 0x382   : > { %v1035_v4 = vpop.f32.mrf.mxu3 }
 0x383   : > { %v1036_v5 = vadd.f32 %v2573_v59, %v1035_v4 }
 0x385   : > { %v1041_v6 = vsel %vm757_vm8, %v1036_v5, -inf }
 0x386   : > { %1042 = vmax.xlane.f32.xlu1 %v1041_v6 }
 0x3c6   : > { %v947_v7 = vpop.xlane.xlu1 %946 }
 0x3c7   : > { %v951_v8 = vsub.f32 %v941_v48, %v947_v7 }
 0x3c9   : > { %v953_v9 = vmul.f32 1.442695, %v951_v8 }
 0x3cb   : > { %2267 = vpow2.f32 %v953_v9 }
 0x3d1   : > { %v2607_v10 = vpop.eup %2267 }
 0x3d2   : > { %v957_v12 = vsel %vm757_vm8, %v2607_v10, 0.0 }
 0x3d3   : > { %958 = vadd.xlane.f32.xlu1 %v957_v12 }
 0x3e1   : > { %v853_v13 = vpop.xlane.xlu0 %852 }
 0x3e2   : > { %v857_v19 = vsub.f32 %v847_v53, %v853_v13 }
 0x3e4   : > { %v859_v20 = vmul.f32 1.442695, %v857_v19 }
 0x3e9   : > { %v856_v14 = vpop.xlane.xlu2 %855  ;;  %v950_v15 = vpop.xlane.xlu0 %949 }
 0x3ea   : > { %v858_v16 = vsub.f32 %v849_v60, %v856_v14  ;;  %v952_v17 = vsub.f32 %v943_v57, %v950_v15 }
 0x3ec   : > { %v861_v18 = vmul.f32 1.442695, %v858_v16  ;;  %v955_v59 = vmul.f32 1.442695, %v952_v17 }
 0x3ee   : > { %2269 = vpow2.f32 %v861_v18 }
 0x3ef   : > { %2271 = vpow2.f32 %v955_v59 }
 0x3f0   : > { %2273 = vpow2.f32 %v859_v20 }
 0x3f1   : > { %v1040_v21 = vpop.xlane.xlu2 %1039 }
 0x3f2   : > { %v1044_v22 = vsub.f32 %v1034_v1, %v1040_v21 }
 0x3f4   : > { %v2611_v24 = vpop.eup %2269  ;;  %v1046_v23 = vmul.f32 1.442695, %v1044_v22 }
 0x3f5   : > { %v2613_v25 = vpop.eup %2271  ;;  %v866_v26 = vsel %vm757_vm8, %v2611_v24, 0.0 }
 0x3f6   : > { %2275 = vpow2.f32 %v1046_v23  ;;  %v960_v27 = vsel %vm757_vm8, %v2613_v25, 0.0  ;;  %867 = vadd.xlane.f32.xlu2 %v866_v26  ;;  %v2619_v30 = vpop.eup %2273 }
 0x3f7   : > { %961 = vadd.xlane.f32.xlu0 %v960_v27  ;;  %v863_v34 = vsel %vm757_vm8, %v2619_v30, 0.0 }
 0x3f9   : > { %v1043_v28 = vpop.xlane.xlu1 %1042 }
 0x3fa   : > { %v1045_v29 = vsub.f32 %v1036_v5, %v1043_v28 }
 0x3fc   : > { %v2621_v31 = vpop.eup %2275  ;;  %v1048_v32 = vmul.f32 1.442695, %v1045_v29 }
 0x3fd   : > { %v1050_v33 = vsel %vm757_vm8, %v2621_v31, 0.0 }
 0x3fe   : > { %2277 = vpow2.f32 %v1048_v32  ;;  %1051 = vadd.xlane.f32.xlu2 %v1050_v33 }
 0x3ff   : > { %864 = vadd.xlane.f32.xlu0 %v863_v34 }
 0x404   : > { %v2627_v35 = vpop.eup %2277 }
 0x405   : > { %v1053_v36 = vsel %vm757_vm8, %v2627_v35, 0.0 }
 0x406   : > { %1054 = vadd.xlane.f32.xlu1 %v1053_v36 }
 0x413   : > { %901 = vrot.lane.b32.xlu0 %v2562_v55, %s2421_s22 }
 0x416   : > { %994 = vrot.lane.b32.xlu2 %v2562_v55, %s2423_s26 }
 0x41f   : > { %1087 = vrot.lane.b32.xlu1 %v2562_v55, %s2422_s23 }
 0x446   : > { %v959_v37 = vpop.xlane.xlu1 %958 }
 0x447   : > { %2279 = vrcp.f32 %v959_v37  ;;  %vm968_vm2 = vweird.f32 %v959_v37  ;;  %v974_v55 = vand.u32 2147483648, %v959_v37  ;;  %v972_v56 = vand.u32 2147483647, %v959_v37 }
 0x449   : > { %v975_v63 = vor.u32 1.1754944e-38, %v974_v55  ;;  %vm973_vm5 = vcmp.eq.f32.partialorder %v972_v56, 8.507059e+37 }
 0x44d   : > { %v2280_v38 = vpop.eup %2279 }
 0x44e   : > { %v964_v39 = vmul.f32 %v2280_v38, %v959_v37  ;;  %vm969_vm1 = vweird.f32 %v2280_v38 }
 0x44f   : > { %vm2639_vm3 = vmor %vm968_vm2, %vm969_vm1 }
 0x450   : > { %v965_v40 = vsub.f32 1.0, %v964_v39 }
 0x452   : > { %v966_v43 = vmul.f32 %v2280_v38, %v965_v40 }
 0x454   : > { %v967_v46 = vadd.f32 %v2280_v38, %v966_v43 }
 0x456   : > { %v971_v58 = vsel %vm2639_vm3, %v2280_v38, %v967_v46 }
 0x457   : > { %v976_v9 = vsel %vm973_vm5, %v975_v63, %v971_v58 }
 0x458   : > { %v977_v21 = vmul.f32 %v2607_v10, %v976_v9 }
 0x469   : > { %v868_v41 = vpop.xlane.xlu2 %867 }
 0x46a   : > { %v962_v42 = vpop.xlane.xlu0 %961  ;;  %2281 = vrcp.f32 %v868_v41  ;;  %v895_v15 = vand.u32 2147483648, %v868_v41  ;;  %vm889_vm12 = vweird.f32 %v868_v41  ;;  %v893_v17 = vand.u32 2147483647, %v868_v41 }
 0x46b   : > { %2283 = vrcp.f32 %v962_v42  ;;  %v989_v60 = vand.u32 2147483648, %v962_v42  ;;  %v987_v1 = vand.u32 2147483647, %v962_v42  ;;  %vm983_vm6 = vweird.f32 %v962_v42 }
 0x46c   : > { %v896_v28 = vor.u32 1.1754944e-38, %v895_v15  ;;  %vm894_vm15 = vcmp.eq.f32.partialorder %v893_v17, 8.507059e+37  ;;  %v2134_v15 = vld [vmem:[#allocation4 + $0x18] sm:$0xff]  ;;  %v2132_v17 = vld [vmem:[#allocation4 + $0x8] sm:$0xff] }
 0x46d   : > { %v990_v6 = vor.u32 1.1754944e-38, %v989_v60  ;;  %vm988_vm11 = vcmp.eq.f32.partialorder %v987_v1, 8.507059e+37 }
 0x470   : > { %v2282_v44 = vpop.eup %2281 }
 0x471   : > { %v2284_v45 = vpop.eup %2283  ;;  %v885_v47 = vmul.f32 %v2282_v44, %v868_v41  ;;  %v2637_v48 = vpop.xlane.xlu2 %1051  ;;  %vm890_vm10 = vweird.f32 %v2282_v44 }
 0x472   : > { %v979_v49 = vmul.f32 %v2284_v45, %v962_v42  ;;  %v865_v52 = vpop.xlane.xlu0 %864  ;;  %vm984_vm4 = vweird.f32 %v2284_v45  ;;  %vm2655_vm13 = vmor %vm889_vm12, %vm890_vm10  ;;  %v1065_v55 = vand.u32 2147483647, %v2637_v48 }
 0x473   : > { %v886_v53 = vsub.f32 1.0, %v885_v47  ;;  %2285 = vrcp.f32 %v865_v52  ;;  %vm2646_vm9 = vmor %vm983_vm6, %vm984_vm4  ;;  %v880_v20 = vand.u32 2147483648, %v865_v52  ;;  %v878_v27 = vand.u32 2147483647, %v865_v52 }
 0x474   : > { %v980_v57 = vsub.f32 1.0, %v979_v49  ;;  %2287 = vrcp.f32 %v2637_v48  ;;  %vm874_vm0 = vweird.f32 %v865_v52  ;;  %vm1066_vm12 = vcmp.eq.f32.partialorder %v1065_v55, 8.507059e+37  ;;  %v2165_v55 = vld [vmem:[%s2915_s6 + $0xcc] sm:$0xf0] }
 0x475   : > { %v887_v62 = vmul.f32 %v2282_v44, %v886_v53  ;;  %v881_v37 = vor.u32 1.1754944e-38, %v880_v20  ;;  %vm879_vm2 = vcmp.eq.f32.partialorder %v878_v27, 8.507059e+37 }
 0x476   : > { %v981_v61 = vmul.f32 %v2284_v45, %v980_v57 }
 0x477   : > { %v888_v13 = vadd.f32 %v2282_v44, %v887_v62 }
 0x478   : > { %v982_v3 = vadd.f32 %v2284_v45, %v981_v61 }
 0x479   : > { %v2286_v4 = vpop.eup %2285  ;;  %v995_v7 = vpop.permute.xlu2 %994  ;;  %v892_v23 = vsel %vm2655_vm13, %v2282_v44, %v888_v13  ;;  %v2136_v13 = vld [vmem:[#allocation4 + $0x28] sm:$0xff]  ;;  %vm1136_vm13 = vcmask 785408  }
 0x47a   : > { %v2650_v8 = vpop.xlane.xlu1 %1054  ;;  %v986_v12 = vsel %vm2646_vm9, %v2284_v45, %v982_v3  ;;  %v870_v14 = vmul.f32 %v2286_v4, %v865_v52  ;;  %1007 = vmatpush.bf16.msrb.mxu2 %v995_v7  ;;  %v2288_v16 = vpop.eup %2287  ;;  %vm875_vm14 = vweird.f32 %v2286_v4  ;;  %v897_v36 = vsel %vm894_vm15, %v896_v28, %v892_v23 }
 0x47b   : > { %2289 = vrcp.f32 %v2650_v8  ;;  %v991_v59 = vsel %vm988_vm11, %v990_v6, %v986_v12  ;;  %v1057_v29 = vmul.f32 %v2288_v16, %v2637_v48  ;;  %vm876_vm1 = vmor %vm874_vm0, %vm875_vm14  ;;  %v898_v40 = vmul.f32 %v2611_v24, %v897_v36 }
 0x47c   : > { %v871_v18 = vsub.f32 1.0, %v870_v14  ;;  %v992_v22 = vmul.f32 %v2613_v25, %v991_v59  ;;  %v1082_v49 = vand.u32 2147483648, %v2650_v8  ;;  %vm1062_vm4 = vweird.f32 %v2288_v16  ;;  %v2135_v14 = vld [vmem:[#allocation4 + $0x20] sm:$0xff] }
 0x47d   : > { %v1058_v39 = vsub.f32 1.0, %v1057_v29  ;;  %vm1076_vm5 = vweird.f32 %v2650_v8  ;;  %v1080_v24 = vand.u32 2147483647, %v2650_v8  ;;  %vm1061_vm9 = vweird.f32 %v2637_v48 }
 0x47e   : > { %v872_v26 = vmul.f32 %v2286_v4, %v871_v18  ;;  %v993_v32 = vpack.c.bf16 %v992_v22, %v977_v21  ;;  %vm1063_vm10 = vmor %vm1061_vm9, %vm1062_vm4  ;;  %v1083_v54 = vor.u32 1.1754944e-38, %v1082_v49  ;;  %v2131_v18 = vld [vmem:[#allocation4] sm:$0xff]  ;;  %v2168_v49 = vld [vmem:[%s2915_s6 + $0xec] sm:$0xf] }
 0x47f   : > { %v1059_v46 = vmul.f32 %v2288_v16, %v1058_v39  ;;  %vm1081_vm11 = vcmp.eq.f32.partialorder %v1080_v24, 8.507059e+37 }
 0x480   : > { %v873_v33 = vadd.f32 %v2286_v4, %v872_v26  ;;  %1876 = vmatmul.msk.bf16.vlgmr.msrb.gmra.mxu2 %vm757_vm8, %v993_v32 }
 0x481   : > { %v2290_v34 = vpop.eup %2289  ;;  %v1060_v52 = vadd.f32 %v2288_v16, %v1059_v46 }
 0x482   : > { %v877_v10 = vsel %vm876_vm1, %v2286_v4, %v873_v33  ;;  %v1072_v25 = vmul.f32 %v2290_v34, %v2650_v8  ;;  %vm1077_vm3 = vweird.f32 %v2290_v34 }
 0x483   : > { %v882_v38 = vsel %vm879_vm2, %v881_v37, %v877_v10  ;;  %vm1078_vm6 = vmor %vm1076_vm5, %vm1077_vm3  ;;  %v1064_v56 = vsel %vm1063_vm10, %v2288_v16, %v1060_v52  ;;  %v2133_v16 = vld [vmem:[#allocation4 + $0x10] sm:$0xff]  ;;  %v2035_v52 = vld [vmem:[%s2915_s6 + $0xf8] sm:$0xf0] }
 0x484   : > { %v883_v41 = vmul.f32 %v2619_v30, %v882_v38  ;;  %v1073_v42 = vsub.f32 1.0, %v1072_v25  ;;  %v1067_v30 = vand.u32 2147483648, %v2637_v48  ;;  %v2038_v24 = vor.u32 %v2168_v49, %v2035_v52  ;;  %v1955_v49 = vld [vmem:[%s2915_s6 + $0x58] sm:$0xf0] }
 0x485   : > { %v902_v43 = vpop.permute.xlu0 %901 }
 0x486   : > { %v1074_v44 = vmul.f32 %v2290_v34, %v1073_v42  ;;  %914 = vmatpush.bf16.msra.mxu0 %v902_v43  ;;  %v899_v45 = vpack.c.bf16 %v898_v40, %v883_v41  ;;  %v1068_v57 = vor.u32 1.1754944e-38, %v1067_v30  ;;  %v2025_v41 = vld [vmem:[%s2915_s6 + $0xe0] sm:$0xf]  ;;  %v2167_v42 = vld [vmem:[%s2915_s6 + $0xe4] sm:$0xf] }
 0x487   : > { %v2009_v30 = vld [vmem:[%s2915_s6 + $0xc0] sm:$0xf] }
 0x488   : > { %v1075_v47 = vadd.f32 %v2290_v34, %v1074_v44  ;;  %v1069_v61 = vsel %vm1066_vm12, %v1068_v57, %v1064_v56  ;;  %v2033_v44 = vld [vmem:[%s2915_s6 + $0xe8] sm:$0xf]  ;;  %v2011_v56 = vld [vmem:[%s2915_s6 + $0xd0] sm:$0xf0] }
 0x489   : > { %1874 = vmatmul.msk.bf16.vlgmr.msra.gmra.mxu0 %vm757_vm8, %v899_v45  ;;  %v1070_v63 = vmul.f32 %v2621_v31, %v1069_v61  ;;  %v2137_v31 = vld [vmem:[#allocation4 + $0x30] sm:$0xff]  ;;  %v2170_v45 = vld [vmem:[%s2915_s6 + $0xf4] sm:$0xf0]  ;;  %v2017_v57 = vld [vmem:[%s2915_s6 + $0xc8] sm:$0xf] }
 0x48a   : > { %v1079_v53 = vsel %vm1078_vm6, %v2290_v34, %v1075_v47  ;;  %v2034_v47 = vor.u32 %v2170_v45, %v2033_v44  ;;  %v2150_v44 = vld [vmem:[%s2915_s6 + $0x54] sm:$0xf0] }
 0x48b   : > { %v1084_v58 = vsel %vm1081_vm11, %v1083_v54, %v1079_v53  ;;  %v2163_v53 = vld [vmem:[%s2915_s6 + $0xc4] sm:$0xf]  ;;  %v2010_v54 = vor.u32 %v2165_v55, %v2009_v30  ;;  %v2145_v30 = vld [vmem:[%s2915_s6 + $0x2c] sm:$0xf0] }
 0x48c   : > { %v1085_v62 = vmul.f32 %v2627_v35, %v1084_v58  ;;  %v2138_v35 = vld [vmem:[#allocation4 + $0x38] sm:$0xff]  ;;  %v2143_v55 = vld [vmem:[%s2915_s6 + $0x24] sm:$0xf] }
 0x48d   : > { %1188 = vmatpush.bf16.msra.mxu1 %v2138_v35  ;;  %v2166_v58 = vld [vmem:[%s2915_s6 + $0xd4] sm:$0xf0]  ;;  %v2160_v35 = vld [vmem:[%s2915_s6 + $0xac] sm:$0xf] }
 0x48e   : > { %v1086_v1 = vpack.c.bf16 %v1085_v62, %v1070_v63  ;;  %v2018_v61 = vor.u32 %v2166_v58, %v2017_v57  ;;  %v2164_v62 = vld [vmem:[%s2915_s6 + $0xcc] sm:$0xf]  ;;  %v2019_v63 = vld [vmem:[%s2915_s6 + $0xd8] sm:$0xf0]  ;;  %v2146_v57 = vld [vmem:[%s2915_s6 + $0x34] sm:$0xf0] }
 0x491   : > { %v1088_v60 = vpop.permute.xlu1 %1087  ;;  %1189 = vmatpush.bf16.msra.mxu1 %v2137_v31  ;;  %v2003_v31 = vld [vmem:[%s2915_s6 + $0xb8] sm:$0xf0] }
 0x492   : > { %1100 = vmatpush.bf16.msrb.mxu0 %v1088_v60  ;;  %v2014_v60 = vor.u32 %v2163_v53, %v2011_v56  ;;  %v1937_v56 = vld [vmem:[%s2915_s6 + $0x28] sm:$0xf] }
 0x495   : > { %1190 = vmatpush.bf16.msra.mxu1 %v2136_v13  ;;  %v2006_v13 = vor.u32 %v2160_v35, %v2003_v31  ;;  %v2140_v31 = vld [vmem:[%s2915_s6 + $0xc] sm:$0xf] }
 0x496   : > { %1430 = vmatpush.bf16.msra.mxu0 %v2034_v47  ;;  %v2148_v47 = vld [vmem:[%s2915_s6 + $0x4c] sm:$0xf] }
 0x497   : > { %v1958_v52 = vor.u32 %v2148_v47, %v1955_v49  ;;  %v2174_v47 = vld [vmem:[#allocation6 + $0x18] sm:$0xff] }
 0x498   : > { %v2182_v49 = vld [vmem:[#allocation6 + $0x58] sm:$0xff] }
 0x499   : > { %1878 = vmatmul.msk.bf16.vlgmr.msrb.gmra.mxu0 %vm757_vm8, %v1086_v1  ;;  %1191 = vmatpush.bf16.msra.mxu1 %v2135_v14  ;;  %vm1133_vm8 = vcmask 523264   ;;  %v2022_v1 = vor.u32 %v2164_v62, %v2019_v63  ;;  %v1977_v14 = vld [vmem:[%s2915_s6 + $0x80] sm:$0xf]  ;;  %v1939_v62 = vld [vmem:[%s2915_s6 + $0x38] sm:$0xf0] }
 0x49a   : > { %1431 = vmatpush.bf16.msra.mxu0 %v2018_v61  ;;  %v2144_v61 = vld [vmem:[%s2915_s6 + $0x2c] sm:$0xf] }
 0x49b   : > { %v1942_v63 = vor.u32 %v2144_v61, %v1939_v62 }
 0x49d   : > { %1192 = vmatpush.bf16.msra.mxu1 %v2134_v15  ;;  %v2157_v15 = vld [vmem:[%s2915_s6 + $0x8c] sm:$0xf0] }
 0x4a1   : > { %1193 = vmatpush.bf16.msra.mxu1 %v2133_v16  ;;  %v2155_v16 = vld [vmem:[%s2915_s6 + $0x84] sm:$0xf] }
 0x4a5   : > { %1194 = vmatpush.bf16.msra.mxu1 %v2132_v17  ;;  %v1978_v17 = vor.u32 %v2157_v15, %v1977_v14 }
 0x4a9   : > { %1195 = vmatpush.bf16.msra.mxu1 %v2131_v18  ;;  %v1979_v18 = vld [vmem:[%s2915_s6 + $0x90] sm:$0xf0] }
 0x4ad   : > { %1444 = vmatpush.bf16.msrb.mxu1 %v2038_v24  ;;  %v1929_v24 = vld [vmem:[%s2915_s6 + $0x20] sm:$0xf] }
 0x4ae   : > { %v1930_v53 = vor.u32 %v2145_v30, %v1929_v24  ;;  %v2181_v24 = vld [vmem:[#allocation6 + $0x50] sm:$0xff]  ;;  %v2172_v30 = vld [vmem:[#allocation6 + $0x8] sm:$0xff] }
 0x4b1   : > { %1445 = vmatpush.bf16.msrb.mxu1 %v2022_v1  ;;  %v1913_v1 = vld [vmem:[%s2915_s6] sm:$0xf] }
 0x4b5   : > { %1446 = vmatpush.bf16.msrb.mxu1 %v2006_v13  ;;  %v1923_v13 = vld [vmem:[%s2915_s6 + $0x18] sm:$0xf0] }
 0x4b6   : > { %v1926_v14 = vor.u32 %v2140_v31, %v1923_v13 }
 0x503   : > { %v1009_v3 = vpop.f32.mrf.mxu2 }
 0x506   : > { %v916_v48 = vpop.f32.mrf.mxu0 }
 0x50b   : > { %v1011_v4 = vpop.f32.mrf.mxu2 }
 0x50c   : > { %v2234_v5 = vpack.i.bf16 %v1011_v4, %v1009_v3  ;;  %v1993_v3 = vld [vmem:[%s2915_s6 + $0xa0] sm:$0xf]  ;;  %v2159_v4 = vld [vmem:[%s2915_s6 + $0xa4] sm:$0xf] }
 0x50e   : > { %v918_v6 = vpop.f32.mrf.mxu0  ;;  %2235 = vrot.lane.b32.xlu2 %v2234_v5, %s2423_s26 }
 0x50f   : > { %v2239_v7 = vpack.i.bf16 %v918_v6, %v916_v48  ;;  %v2161_v48 = vld [vmem:[%s2915_s6 + $0xac] sm:$0xf0]  ;;  %v1995_v6 = vld [vmem:[%s2915_s6 + $0xb0] sm:$0xf0] }
 0x510   : > { %v1994_v5 = vor.u32 %v2161_v48, %v1993_v3  ;;  %v2141_v3 = vld [vmem:[%s2915_s6 + $0xc] sm:$0xf0]  ;;  %v2139_v48 = vld [vmem:[%s2915_s6 + $0x4] sm:$0xf] }
 0x511   : > { %2240 = vrot.lane.b32.xlu0 %v2239_v7, %s2422_s23  ;;  %v2001_v7 = vld [vmem:[%s2915_s6 + $0xa8] sm:$0xf] }
 0x516   : > { %v1102_v8 = vpop.f32.mrf.mxu0 }
 0x51e   : > { %v1104_v9 = vpop.f32.mrf.mxu0 }
 0x51f   : > { %v2244_v12 = vpack.i.bf16 %v1104_v9, %v1102_v8  ;;  %v2162_v8 = vld [vmem:[%s2915_s6 + $0xb4] sm:$0xf0]  ;;  %v1998_v9 = vor.u32 %v2159_v4, %v1995_v6  ;;  %v1915_v6 = vld [vmem:[%s2915_s6 + $0x10] sm:$0xf0] }
 0x521   : > { %2245 = vrot.lane.b32.xlu0 %v2244_v12, %s2421_s22  ;;  %v2002_v12 = vor.u32 %v2162_v8, %v2001_v7  ;;  %v1921_v7 = vld [vmem:[%s2915_s6 + $0x8] sm:$0xf]  ;;  %v2142_v8 = vld [vmem:[%s2915_s6 + $0x14] sm:$0xf0] }
 0x522   : > { %v1922_v35 = vor.u32 %v2142_v8, %v1921_v7 }
 0x523   : > { %1432 = vmatpush.bf16.msra.mxu0 %v2002_v12  ;;  %v1918_v12 = vor.u32 %v2139_v48, %v1915_v6 }
 0x568   : > { %v2236_v21 = vpop.permute.xlu2 %2235 }
 0x569   : > { %v2238_v26 = vunpack.i.h.bf16 %v2236_v21  ;;  %v2237_v27 = vunpack.i.l.bf16 %v2236_v21 }
 0x583   : > { %v2241_v59 = vpop.permute.xlu0 %2240 }
 0x584   : > { %v2243_v19 = vunpack.i.h.bf16 %v2241_v59  ;;  %v2242_v20 = vunpack.i.l.bf16 %v2241_v59  ;;  %v1985_v59 = vld [vmem:[%s2915_s6 + $0x88] sm:$0xf] }
 0x586   : > { %v1132_v22 = vsel %vm736_vm7, %v2595_v51, %v2243_v19  ;;  %v1131_v23 = vsel %vm736_vm7, %v2593_v50, %v2242_v20  ;;  %v2158_v19 = vld [vmem:[%s2915_s6 + $0x94] sm:$0xf0]  ;;  %v1982_v20 = vor.u32 %v2155_v16, %v1979_v18 }
 0x587   : > { %v1134_v33 = vsel %vm1133_vm8, %v1131_v23, %v2237_v27  ;;  %v1135_v34 = vsel %vm1133_vm8, %v1132_v22, %v2238_v26  ;;  %v1986_v21 = vor.u32 %v2158_v19, %v1985_v59  ;;  %v2156_v22 = vld [vmem:[%s2915_s6 + $0x8c] sm:$0xf]  ;;  %v1987_v23 = vld [vmem:[%s2915_s6 + $0x98] sm:$0xf0]  ;;  %v1961_v27 = vld [vmem:[%s2915_s6 + $0x60] sm:$0xf] }
 0x588   : > { %v1990_v26 = vor.u32 %v2156_v22, %v1987_v23 }
 0x589   : > { %1433 = vmatpush.bf16.msra.mxu0 %v1986_v21 }
 0x58a   : > { %1447 = vmatpush.bf16.msrb.mxu1 %v1990_v26 }
 0x593   : > { %v2246_v28 = vpop.permute.xlu0 %2245 }
 0x594   : > { %v2248_v29 = vunpack.i.h.bf16 %v2246_v28  ;;  %v2247_v32 = vunpack.i.l.bf16 %v2246_v28  ;;  %v2153_v28 = vld [vmem:[%s2915_s6 + $0x6c] sm:$0xf0] }
 0x596   : > { %v1138_v36 = vsel %vm1136_vm13, %v1135_v34, %v2248_v29  ;;  %v1137_v37 = vsel %vm1136_vm13, %v1134_v33, %v2247_v32  ;;  %v2151_v29 = vld [vmem:[%s2915_s6 + $0x64] sm:$0xf]  ;;  %v1962_v32 = vor.u32 %v2153_v28, %v1961_v27  ;;  %v1963_v33 = vld [vmem:[%s2915_s6 + $0x70] sm:$0xf0]  ;;  %v1969_v34 = vld [vmem:[%s2915_s6 + $0x68] sm:$0xf] }
 0x597   : > { %v1139_v10 = vpack.c.bf16 %v1138_v36, %v1137_v37  ;;  %v2154_v36 = vld [vmem:[%s2915_s6 + $0x74] sm:$0xf0]  ;;  %v1966_v37 = vor.u32 %v2151_v29, %v1963_v33 }
 0x599   : > { %1196 = vmatmul.bf16.vlgmr.msra.gmra.mxu1 %v1139_v10  ;;  %v1970_v10 = vor.u32 %v2154_v36, %v1969_v34 }
 0x59b   : > { %1434 = vmatpush.bf16.msra.mxu0 %v1970_v10 }
 0x616   : > { %v1197_v25 = vpop.f32.mrf.mxu1 }
 0x617   : > { %v2686_v38 = vadd.f32 %v1197_v25, %v2536_v0  ;;  %v2169_v0 = vld [vmem:[%s2915_s6 + $0xec] sm:$0xf0]  ;;  %v2152_v25 = vld [vmem:[%s2915_s6 + $0x6c] sm:$0xf] }
 0x618   : > { %v2026_v43 = vor.u32 %v2169_v0, %v2025_v41  ;;  %v2149_v41 = vld [vmem:[%s2915_s6 + $0x4c] sm:$0xf0]  ;;  %v2147_v0 = vld [vmem:[%s2915_s6 + $0x44] sm:$0xf] }
 0x619   : > { %v1204_v50 = vmul.f32 %v2686_v38, %v2686_v38 }
 0x61a   : > { %1402 = vmatpush.bf16.msra.mxu2 %v2026_v43  ;;  %v1947_v43 = vld [vmem:[%s2915_s6 + $0x50] sm:$0xf0] }
 0x61b   : > { %1206 = vadd.xlane.f32.xlu1 %v1204_v50  ;;  %v1971_v50 = vld [vmem:[%s2915_s6 + $0x78] sm:$0xf0]  ;;  %v1950_v45 = vor.u32 %v2147_v0, %v1947_v43  ;;  %v2185_v43 = vld [vmem:[#allocation6 + $0x70] sm:$0xff] }
 0x61c   : > { %v2186_v0 = vld [vmem:[#allocation6 + $0x78] sm:$0xff] }
 0x61e   : > { %v1199_v51 = vpop.f32.mrf.mxu1  ;;  %1403 = vmatpush.bf16.msra.mxu2 %v2010_v54  ;;  %v1931_v54 = vld [vmem:[%s2915_s6 + $0x30] sm:$0xf0] }
 0x61f   : > { %v2691_v39 = vadd.f32 %v1199_v51, %v2540_v2  ;;  %v2027_v2 = vld [vmem:[%s2915_s6 + $0xf0] sm:$0xf0]  ;;  %v1974_v51 = vor.u32 %v2152_v25, %v1971_v50  ;;  %v1934_v58 = vor.u32 %v2143_v55, %v1931_v54  ;;  %v2180_v55 = vld [vmem:[#allocation6 + $0x48] sm:$0xff] }
 0x620   : > { %v2030_v46 = vor.u32 %v2167_v42, %v2027_v2  ;;  %v1953_v2 = vld [vmem:[%s2915_s6 + $0x48] sm:$0xf] }
 0x621   : > { %v1205_v40 = vmul.f32 %v2691_v39, %v2691_v39  ;;  %1448 = vmatpush.bf16.msrb.mxu1 %v1974_v51 }
 0x622   : > { %1416 = vmatpush.bf16.msrb.mxu3 %v2030_v46  ;;  %1404 = vmatpush.bf16.msra.mxu2 %v1994_v5  ;;  %v1954_v46 = vor.u32 %v2150_v44, %v1953_v2  ;;  %v1914_v5 = vor.u32 %v2141_v3, %v1913_v1  ;;  %v2176_v2 = vld [vmem:[#allocation6 + $0x28] sm:$0xff] }
 0x623   : > { %1208 = vadd.xlane.f32.xlu2 %v1205_v40  ;;  %v1945_v40 = vld [vmem:[%s2915_s6 + $0x40] sm:$0xf]  ;;  %v2184_v44 = vld [vmem:[#allocation6 + $0x68] sm:$0xff] }
 0x624   : > { %v1946_v42 = vor.u32 %v2149_v41, %v1945_v40  ;;  %1435 = vmatpush.bf16.msra.mxu0 %v1954_v46  ;;  %v2178_v41 = vld [vmem:[#allocation6 + $0x38] sm:$0xff]  ;;  %v2183_v46 = vld [vmem:[#allocation6 + $0x60] sm:$0xff] }
 0x625   : > { %1449 = vmatpush.bf16.msrb.mxu1 %v1958_v52  ;;  %v2173_v52 = vld [vmem:[#allocation6 + $0x10] sm:$0xff] }
 0x626   : > { %1417 = vmatpush.bf16.msrb.mxu3 %v2014_v60  ;;  %1405 = vmatpush.bf16.msra.mxu2 %v1978_v17  ;;  %v1938_v60 = vor.u32 %v2146_v57, %v1937_v56  ;;  %v2171_v56 = vld [vmem:[#allocation6] sm:$0xff] }
 0x627   : > { %v2179_v57 = vld [vmem:[#allocation6 + $0x40] sm:$0xff] }
 0x628   : > { %1436 = vmatpush.bf16.msra.mxu0 %v1938_v60 }
 0x629   : > { %1450 = vmatpush.bf16.msrb.mxu1 %v1942_v63 }
 0x62a   : > { %1418 = vmatpush.bf16.msrb.mxu3 %v1998_v9  ;;  %1406 = vmatpush.bf16.msra.mxu2 %v1962_v32 }
 0x62c   : > { %1437 = vmatpush.bf16.msra.mxu0 %v1922_v35 }
 0x62d   : > { %1451 = vmatpush.bf16.msrb.mxu1 %v1926_v14 }
 0x62e   : > { %1419 = vmatpush.bf16.msrb.mxu3 %v1982_v20  ;;  %1407 = vmatpush.bf16.msra.mxu2 %v1946_v42  ;;  %v2177_v42 = vld [vmem:[#allocation6 + $0x30] sm:$0xff] }
 0x632   : > { %1420 = vmatpush.bf16.msrb.mxu3 %v1966_v37  ;;  %1408 = vmatpush.bf16.msra.mxu2 %v1930_v53  ;;  %v2251_v37 = vld [vmem:[%s2914_s5] ss:$0 sm:$0xff] }
 0x636   : > { %1421 = vmatpush.bf16.msrb.mxu3 %v1950_v45  ;;  %1409 = vmatpush.bf16.msra.mxu2 %v1914_v5  ;;  %v2175_v45 = vld [vmem:[#allocation6 + $0x20] sm:$0xff] }
 0x63a   : > { %1422 = vmatpush.bf16.msrb.mxu3 %v1934_v58  ;;  %1596 = vmatpush.bf16.msrb.mxu2 %v2178_v41 }
 0x63e   : > { %1423 = vmatpush.bf16.msrb.mxu3 %v1918_v12  ;;  %1597 = vmatpush.bf16.msrb.mxu2 %v2177_v42 }
 0x642   : > { %1610 = vmatpush.bf16.msra.mxu3 %v2186_v0  ;;  %1598 = vmatpush.bf16.msrb.mxu2 %v2176_v2 }
 0x646   : > { %1611 = vmatpush.bf16.msra.mxu3 %v2185_v43  ;;  %1599 = vmatpush.bf16.msrb.mxu2 %v2175_v45 }
 0x64a   : > { %1612 = vmatpush.bf16.msra.mxu3 %v2184_v44  ;;  %1600 = vmatpush.bf16.msrb.mxu2 %v2174_v47 }
 0x64e   : > { %1613 = vmatpush.bf16.msra.mxu3 %v2183_v46  ;;  %1601 = vmatpush.bf16.msrb.mxu2 %v2173_v52 }
 0x652   : > { %1614 = vmatpush.bf16.msra.mxu3 %v2182_v49  ;;  %1602 = vmatpush.bf16.msrb.mxu2 %v2172_v30 }
 0x656   : > { %1615 = vmatpush.bf16.msra.mxu3 %v2181_v24  ;;  %1603 = vmatpush.bf16.msrb.mxu2 %v2171_v56 }
 0x65a   : > { %1616 = vmatpush.bf16.msra.mxu3 %v2180_v55 }
 0x65e   : > { %1617 = vmatpush.bf16.msra.mxu3 %v2179_v57 }
 0x68e   : > { %v1207_v4 = vpop.xlane.xlu1 %1206 }
 0x68f   : > { %v1210_v9 = vmul.f32 %v1207_v4, %v2551_v11 }
 0x691   : > { %v1212_v15 = vadd.f32 1e-06, %v1210_v9 }
 0x693   : > { %2291 = vrsqrt.f32 %v1212_v15  ;;  %vm1220_vm14 = vweird.f32 %v1212_v15 }
 0x696   : > { %v1209_v16 = vpop.xlane.xlu2 %1208 }
 0x697   : > { %v1211_v17 = vmul.f32 %v1209_v16, %v2551_v11 }
 0x699   : > { %v2292_v18 = vpop.eup %2291  ;;  %v1213_v59 = vadd.f32 1e-06, %v1211_v17 }
 0x69a   : > { %v1215_v19 = vmul.f32 %v2292_v18, %v1212_v15  ;;  %vm1221_vm7 = vweird.f32 %v2292_v18 }
 0x69b   : > { %2293 = vrsqrt.f32 %v1213_v59  ;;  %vm1222_vm15 = vmor %vm1220_vm14, %vm1221_vm7  ;;  %vm1230_vm1 = vweird.f32 %v1213_v59 }
 0x69c   : > { %v1216_v20 = vmul.f32 %v2292_v18, %v1215_v19 }
 0x69e   : > { %v1217_v21 = vmul.f32 0.5, %v1216_v20 }
 0x6a0   : > { %v1218_v22 = vsub.f32 1.5, %v1217_v21 }
 0x6a1   : > { %v2294_v23 = vpop.eup %2293 }
 0x6a2   : > { %v1225_v26 = vmul.f32 %v2294_v23, %v1213_v59  ;;  %v1219_v27 = vmul.f32 %v2292_v18, %v1218_v22  ;;  %vm1231_vm0 = vweird.f32 %v2294_v23 }
 0x6a3   : > { %vm1232_vm2 = vmor %vm1230_vm1, %vm1231_vm0 }
 0x6a4   : > { %v1226_v28 = vmul.f32 %v2294_v23, %v1225_v26  ;;  %v1223_v32 = vsel %vm1222_vm15, %v2292_v18, %v1219_v27 }
 0x6a5   : > { %v1234_v36 = vmul.f32 %v1223_v32, %v2686_v38 }
 0x6a6   : > { %v1227_v29 = vmul.f32 0.5, %v1226_v28 }
 0x6a7   : > { %v1239_v50 = vmul.f32 %v2251_v37, %v1234_v36 }
 0x6a8   : > { %v1228_v33 = vsub.f32 1.5, %v1227_v29 }
 0x6aa   : > { %v1229_v34 = vmul.f32 %v2294_v23, %v1228_v33 }
 0x6ac   : > { %v1233_v10 = vsel %vm1232_vm2, %v2294_v23, %v1229_v34 }
 0x6ad   : > { %v1235_v25 = vmul.f32 %v1233_v10, %v2691_v39 }
 0x6af   : > { %v1240_v51 = vmul.f32 %v2251_v37, %v1235_v25 }
 0x6b1   : > { %v1241_v40 = vpack.c.bf16 %v1240_v51, %v1239_v50 }
 0x6b3   : > { %1410 = vmatmul.bf16.vlgmr.msra.gmra.mxu2 %v1241_v40  ;;  %1424 = vmatmul.bf16.vlgmr.msrb.gmra.mxu3 %v1241_v40 }
 0x6b4   : > { %1438 = vmatmul.bf16.vlgmr.msra.gmra.mxu0 %v1241_v40  ;;  %1452 = vmatmul.bf16.vlgmr.msrb.gmra.mxu1 %v1241_v40 }
 0x731   : > { %v1439_v20 = vpop.f32.mrf.mxu0  ;;  %v1453_v22 = vpop.f32.mrf.mxu1 }
 0x736   : > { %v1411_v53 = vpop.f32.mrf.mxu2  ;;  %v1425_v54 = vpop.f32.mrf.mxu3 }
 0x737   : > { %v1458_v58 = vmul.f32 %v1411_v53, %v1411_v53  ;;  %v1459_v60 = vmul.f32 %v1425_v54, %v1425_v54 }
 0x739   : > { %v1462_v61 = vmul.f32 %v1458_v58, %v1411_v53  ;;  %v1463_v62 = vmul.f32 %v1459_v60, %v1425_v54  ;;  %v1441_v25 = vpop.f32.mrf.mxu0  ;;  %v1455_v40 = vpop.f32.mrf.mxu1 }
 0x73b   : > { %v1466_v63 = vmul.f32 0.044715, %v1462_v61  ;;  %v1467_v1 = vmul.f32 0.044715, %v1463_v62 }
 0x73d   : > { %v1470_v3 = vadd.f32 %v1466_v63, %v1411_v53  ;;  %v1471_v48 = vadd.f32 %v1467_v1, %v1425_v54 }
 0x73e   : > { %v1413_v4 = vpop.f32.mrf.mxu2  ;;  %v1427_v5 = vpop.f32.mrf.mxu3 }
 0x73f   : > { %v1474_v6 = vmul.f32 0.7978846, %v1470_v3  ;;  %v1475_v7 = vmul.f32 0.7978846, %v1471_v48  ;;  %v1460_v8 = vmul.f32 %v1413_v4, %v1413_v4  ;;  %v1461_v9 = vmul.f32 %v1427_v5, %v1427_v5 }
 0x741   : > { %2295 = vtanh.f32 %v1474_v6  ;;  %v1464_v12 = vmul.f32 %v1460_v8, %v1413_v4  ;;  %v1465_v35 = vmul.f32 %v1461_v9, %v1427_v5 }
 0x742   : > { %2297 = vtanh.f32 %v1475_v7 }
 0x743   : > { %v1468_v31 = vmul.f32 0.044715, %v1464_v12  ;;  %v1469_v13 = vmul.f32 0.044715, %v1465_v35 }
 0x745   : > { %v1472_v14 = vadd.f32 %v1468_v31, %v1413_v4  ;;  %v1473_v15 = vadd.f32 %v1469_v13, %v1427_v5 }
 0x747   : > { %v2296_v16 = vpop.eup %2295  ;;  %v1476_v17 = vmul.f32 0.7978846, %v1472_v14  ;;  %v1477_v18 = vmul.f32 0.7978846, %v1473_v15 }
 0x748   : > { %v2298_v59 = vpop.eup %2297  ;;  %v1482_v19 = vadd.f32 1.0, %v2296_v16 }
 0x749   : > { %2299 = vtanh.f32 %v1476_v17  ;;  %v1483_v21 = vadd.f32 1.0, %v2298_v59 }
 0x74a   : > { %2301 = vtanh.f32 %v1477_v18  ;;  %v1486_v23 = vmul.f32 0.5, %v1482_v19 }
 0x74b   : > { %v1487_v27 = vmul.f32 0.5, %v1483_v21 }
 0x74c   : > { %v1490_v33 = vmul.f32 %v1486_v23, %v1411_v53 }
 0x74d   : > { %v1491_v36 = vmul.f32 %v1487_v27, %v1425_v54 }
 0x74e   : > { %v1494_v51 = vmul.f32 %v1490_v33, %v1439_v20 }
 0x74f   : > { %v2300_v26 = vpop.eup %2299  ;;  %v1495_v0 = vmul.f32 %v1491_v36, %v1453_v22 }
 0x750   : > { %v2302_v28 = vpop.eup %2301  ;;  %v1484_v29 = vadd.f32 1.0, %v2300_v26 }
 0x751   : > { %v1485_v32 = vadd.f32 1.0, %v2302_v28 }
 0x752   : > { %v1488_v34 = vmul.f32 0.5, %v1484_v29 }
 0x753   : > { %v1489_v37 = vmul.f32 0.5, %v1485_v32 }
 0x754   : > { %v1492_v10 = vmul.f32 %v1488_v34, %v1413_v4 }
 0x755   : > { %v1493_v50 = vmul.f32 %v1489_v37, %v1427_v5  ;;  %v2252_v5 = vld [vmem:[%s2917_s8] ss:$0 sm:$0xff] }
 0x756   : > { %v1496_v41 = vmul.f32 %v1492_v10, %v1441_v25 }
 0x757   : > { %v1497_v42 = vmul.f32 %v1493_v50, %v1455_v40 }
 0x758   : > { %v1498_v43 = vpack.c.bf16 %v1496_v41, %v1494_v51 }
 0x759   : > { %v1499_v2 = vpack.c.bf16 %v1497_v42, %v1495_v0 }
 0x75a   : > { %1604 = vmatmul.bf16.vlgmr.msrb.gmra.mxu2 %v1498_v43 }
 0x75b   : > { %1618 = vmatmul.bf16.vlgmr.msra.gmra.mxu3 %v1499_v2 }
 0x7dd   : > { %v1605_v44 = vpop.f32.mrf.mxu2 }
 0x7de   : > { %v1619_v45 = vpop.f32.mrf.mxu3 }
 0x7df   : > { %v1620_v46 = vadd.f32 %v1619_v45, %v1605_v44 }
 0x7e1   : > { %v1624_v47 = vadd.f32 %v1620_v46, %v2686_v38 }
 0x7e3   : > { %v1626_v49 = vmul.f32 %v1624_v47, %v1624_v47 }
 0x7e5   : > { %1628 = vadd.xlane.f32.xlu0 %v1626_v49  ;;  %v1607_v52 = vpop.f32.mrf.mxu2 }
 0x7e6   : > { %v1621_v24 = vpop.f32.mrf.mxu3 }
 0x7e7   : > { %v1622_v30 = vadd.f32 %v1621_v24, %v1607_v52 }
 0x7e9   : > { %v1625_v55 = vadd.f32 %v1622_v30, %v2691_v39 }
 0x7eb   : > { %v1627_v53 = vmul.f32 %v1625_v55, %v1625_v55 }
 0x7ed   : > { %1630 = vadd.xlane.f32.xlu1 %v1627_v53 }
 0x858   : > { %v1629_v54 = vpop.xlane.xlu0 %1628 }
 0x859   : > { %v1632_v56 = vmul.f32 %v1629_v54, %v2551_v11 }
 0x85b   : > { %v1634_v57 = vadd.f32 1e-06, %v1632_v56 }
 0x85d   : > { %2303 = vrsqrt.f32 %v1634_v57  ;;  %vm1642_vm4 = vweird.f32 %v1634_v57 }
 0x860   : > { %v1631_v58 = vpop.xlane.xlu1 %1630 }
 0x861   : > { %v1633_v60 = vmul.f32 %v1631_v58, %v2551_v11 }
 0x863   : > { %v2304_v61 = vpop.eup %2303  ;;  %v1635_v62 = vadd.f32 1e-06, %v1633_v60 }
 0x864   : > { %v1637_v38 = vmul.f32 %v2304_v61, %v1634_v57  ;;  %vm1643_vm3 = vweird.f32 %v2304_v61 }
 0x865   : > { %2305 = vrsqrt.f32 %v1635_v62  ;;  %vm1644_vm5 = vmor %vm1642_vm4, %vm1643_vm3  ;;  %vm1652_vm9 = vweird.f32 %v1635_v62 }
 0x866   : > { %v1638_v63 = vmul.f32 %v2304_v61, %v1637_v38 }
 0x868   : > { %v1639_v1 = vmul.f32 0.5, %v1638_v63 }
 0x86a   : > { %v1640_v3 = vsub.f32 1.5, %v1639_v1 }
 0x86b   : > { %v2306_v39 = vpop.eup %2305 }
 0x86c   : > { %v1641_v48 = vmul.f32 %v2304_v61, %v1640_v3  ;;  %v1647_v4 = vmul.f32 %v2306_v39, %v1635_v62  ;;  %vm1653_vm6 = vweird.f32 %v2306_v39 }
 0x86d   : > { %vm1654_vm10 = vmor %vm1652_vm9, %vm1653_vm6 }
 0x86e   : > { %v1645_v6 = vsel %vm1644_vm5, %v2304_v61, %v1641_v48  ;;  %v1648_v11 = vmul.f32 %v2306_v39, %v1647_v4 }
 0x86f   : > { %v1656_v7 = vmul.f32 %v1645_v6, %v1624_v47 }
 0x870   : > { %v1649_v8 = vmul.f32 0.5, %v1648_v11 }
 0x871   : > { %v1661_v9 = vmul.f32 %v2252_v5, %v1656_v7 }
 0x872   : > { %v1650_v12 = vsub.f32 1.5, %v1649_v8 }
 0x873   : > { %1663 = vst [vmem:[%s396_s17] sm:$0xff] %v1661_v9 }
 0x874   : > { %v1651_v35 = vmul.f32 %v2306_v39, %v1650_v12 }
 0x876   : > { %v1655_v31 = vsel %vm1654_vm10, %v2306_v39, %v1651_v35 }
 0x877   : > { %v1657_v13 = vmul.f32 %v1655_v31, %v1625_v55 }
 0x879   : > { %v1662_v14 = vmul.f32 %v2252_v5, %v1657_v13 }
 0x87b   : > { %1664 = vst [vmem:[%s396_s17 + $0x8] sm:$0xff] %v1662_v14 }
 0x87c PF: > { %s21_s30 = sadd.s32 1, %s2411_s30  }
 0x87d   : > { %p18_p7 = scmp.ge.s32.totalorder %s21_s30, 4  }
 0x87f   :  { %20 = sbr.rel (!%p18_p7) target bundleno = 2 (0x2), region = 102 }
 0x884   :  { %1686 = vsyncpa [#allocation3], 1 }
 0x885   :  { %1688 = vsyncpa [#allocation3 + $0x1], 1 }
 0x886   :  { %1689 = vsyncpa [#allocation5], 1 }

// kernel: generator_forward.4
= control target key start
LH: loop header
LB: loop body
LE: loop exit
PB: predicated region body
PF: predicated region fallthrough
CT: control target
= control target key end

     0   :  { %s3821_s0 = inlined_call_operand.vmem [shape: f32[2,8,128], index: 0, kind: input, shape index: {}]   ;;  %s3822_s1 = inlined_call_operand.vmem [shape: f32[2,16,128], index: 1, kind: input, shape index: {}]   ;;  %s3823_s2 = inlined_call_operand.vmem [shape: f32[2,1,16], index: 2, kind: input, shape index: {}]   ;;  %s3824_s3 = inlined_call_operand.vmem [shape: f32[1,128], index: 3, kind: input, shape index: {}]   ;;  %s3825_s4 = inlined_call_operand.vmem [shape: bf16[128,384], index: 4, kind: input, shape index: {}]   ;;  %s3826_s5 = inlined_call_operand.hbm [shape: bf16[128,128], index: 5, kind: input, shape index: {}]   ;;  %s3827_s6 = inlined_call_operand.vmem [shape: f32[1,128], index: 6, kind: input, shape index: {}]   ;;  %s3828_s7 = inlined_call_operand.hbm [shape: bf16[128,128], index: 7, kind: input, shape index: {}]   ;;  %s3829_s8 = inlined_call_operand.hbm [shape: bf16[128,256], index: 8, kind: input, shape index: {}]   ;;  %s3830_s9 = inlined_call_operand.hbm [shape: bf16[128,128], index: 9, kind: input, shape index: {}]   ;;  %s3831_s10 = inlined_call_operand.vmem [shape: f32[1,128], index: 10, kind: input, shape index: {}]   ;;  %s3832_s11 = inlined_call_operand.hbm [shape: bf16[128,512], index: 11, kind: input, shape index: {}]   ;;  %s3833_s12 = inlined_call_operand.hbm [shape: bf16[256,128], index: 12, kind: input, shape index: {}]   ;;  %s3834_s13 = inlined_call_operand.vmem [shape: f32[1,128], index: 13, kind: input, shape index: {}]   ;;  %s3835_s14 = inlined_call_operand.vmem [shape: f32[2,8,128], index: 14, kind: output, shape index: {}]  }
   0x1   :  { %3836 = sst [smem:[#allocation16_spill]] %s3826_s5 }
   0x2   :  { %3837 = sst [smem:[#allocation17_spill]] %s3828_s7 }
   0x3   :  { %3838 = sst [smem:[#allocation18_spill]] %s3829_s8 }
   0x4   :  { %3839 = sst [smem:[#allocation19_spill]] %s3830_s9 }
   0x5   :  { %19 = vsyncpa [#allocation3], 0 }
   0x6   :  { %20 = vsyncpa [#allocation5], 0 }
   0x7   :  { %21 = vsyncpa [#allocation8], 0 }
   0x8   :  { %22 = vsyncpa [#allocation11], 0  ;;  %s3426_s29 = smov 0  }
   0x9 LB: > { %s3432_s30 = sadd.s32 4294967295, %s3332_s29   ;;  %p2401_p0 = scmp.ge.s32.totalorder %s3332_s29, 1  ;;  %s3332_s29 = sphi %s3426_s29, %s28_s29  }
   0xa   : > { %p368_p1 = scmp.lt.s32.totalorder %s3332_s29, 3  ;;  %p3042_p2 = scmp.eq.s32.totalorder %s3432_s30, 0 }
   0xb   : > { %s3840_s7 = sld [smem:[#allocation17_spill]]  ;;  %s3334_s22 = smov [#allocation4]  }
   0xc   : > { %p3440_p3 = pnand %p2401_p0, %p368_p1  ;;  %s3842_s9 = sld [smem:[#allocation19_spill]] }
   0xd   : > { %s404_s23 = sshll.u32 %s3334_s22, 4  ;;  %s3335_s25 = smov [#allocation7]   ;;  %s405_s23 = int_to_ptr.vmem [resolvable:$true] %s404_s23 }
   0xe   : > { %p3023_p4 = pneg %p3440_p3  ;;  %s432_s26 = sshll.u32 %s3335_s25, 4  ;;  %s433_s26 = int_to_ptr.vmem [resolvable:$true] %s432_s26 }
   0xf   : > { %s3844_s5 = sld [smem:[#allocation16_spill]]  ;;  %s3336_s16 = smov 64  }
  0x10   : > { %p3451_p5 = pnand %p3042_p2, %p3023_p4  ;;  %s3337_s19 = smov 4  }
  0x11   : > { %s402_s17 = sshll.u32 %s3840_s7, 4  ;;  %s3338_s20 = smov [#allocation2]   ;;  %s403_s17 = int_to_ptr.hbm [resolvable:$true] %s402_s17 }
  0x12   : > { %s430_s21 = sshll.u32 %s3842_s9, 4  ;;  %s387_s22 = sshll.u32 %s3338_s20, 4  ;;  %s431_s21 = int_to_ptr.hbm [resolvable:$true] %s430_s21  ;;  %s388_s22 = int_to_ptr.vmem [resolvable:$true] %s387_s22 }
  0x13   : > { %3029 = dma.hbm_to_vmem [thread:$0]  (!%p3451_p5), %s403_s17, 1024, %s405_s23, [#allocation5], %s3336_s16, %s3336_s16, %s3337_s19  }
  0x14   : > { %3035 = dma.hbm_to_vmem [thread:$0]  (!%p3451_p5), %s431_s21, 1024, %s433_s26, [#allocation8], %s3336_s16, %s3336_s16, %s3337_s19  }
  0x15   : > { %s385_s15 = sshll.u32 %s3844_s5, 4  ;;  %s3845_s8 = sld [smem:[#allocation18_spill]]  ;;  %s386_s15 = int_to_ptr.hbm [resolvable:$true] %s385_s15 }
  0x16   : > { %3026 = dma.hbm_to_vmem [thread:$0]  (!%p3451_p5), %s386_s15, 1024, %s388_s22, [#allocation3], %s3336_s16, %s3336_s16, %s3337_s19  }
  0x17   : > { %s3339_s17 = smov [#allocation6]   ;;  %s447_s26 = sshll.u32 %s3832_s11, 4  ;;  %s448_s26 = int_to_ptr.hbm [resolvable:$true] %s447_s26 }
  0x18   : > { %s418_s23 = sshll.u32 %s3339_s17, 4  ;;  %s3340_s20 = smov 128   ;;  %s419_s23 = int_to_ptr.vmem [resolvable:$true] %s418_s23 }
  0x19   : > { %s3341_s7 = smov 8   ;;  %s3342_s25 = smov [#allocation9]  }
  0x1a   : > { %s449_s27 = sshll.u32 %s3342_s25, 4  ;;  %s3344_s9 = smov 16   ;;  %s450_s27 = int_to_ptr.vmem [resolvable:$true] %s449_s27 }
  0x1b   : > { %s416_s28 = sshll.u32 %s3845_s8, 4  ;;  %s3343_s8 = smov 256   ;;  %s417_s28 = int_to_ptr.hbm [resolvable:$true] %s416_s28 }
  0x1c   : > { %3032 = dma.hbm_to_vmem [thread:$0]  (!%p3451_p5), %s417_s28, 2048, %s419_s23, [#allocation5], %s3340_s20, %s3340_s20, %s3341_s7  }
  0x1d   : > { %3038 = dma.hbm_to_vmem [thread:$0]  (!%p3451_p5), %s448_s26, 4096, %s450_s27, [#allocation8], %s3343_s8, %s3343_s8, %s3344_s9  }
  0x1e   : > { %s461_s17 = sshll.u32 %s3833_s12, 4  ;;  %s3345_s5 = smov [#allocation10]   ;;  %s462_s17 = int_to_ptr.hbm [resolvable:$true] %s461_s17 }
  0x1f   : > { %s463_s21 = sshll.u32 %s3345_s5, 4  ;;  %503 = sbr.rel (%p3440_p3) target bundleno = 3308 (0xcec), region = 76  ;;  %s464_s21 = int_to_ptr.vmem [resolvable:$true] %s463_s21 }
  0x20   : > { %3041 = dma.hbm_to_vmem [thread:$0]  (!%p3451_p5), %s462_s17, 2048, %s464_s21, [#allocation11], %s3336_s16, %s3336_s16, %s3337_s19  }
  0x24   : > { %3315 = dma.done.wait (%p3042_p2), [#allocation3], 1024  }
  0x25   : > { %3317 = vsyncadd (%p3042_p2), [#allocation3], 4294966272 }
  0x26   : > { %3319 = dma.done.wait (%p3042_p2), [#allocation5], 3072  }
  0x27   : > { %3321 = vsyncadd (%p3042_p2), [#allocation5], 4294964224 }
  0x28   : > { %3323 = dma.done.wait (%p3042_p2), [#allocation8], 5120  }
  0x29   : > { %3325 = vsyncadd (%p3042_p2), [#allocation8], 4294962176 }
  0x2a   : > { %3327 = dma.done.wait (%p3042_p2), [#allocation11], 2048  }
  0x2b   : > { %3329 = vsyncadd (%p3042_p2), [#allocation11], 4294965248  ;;  %p581_p6 = scmp.lt.s32.totalorder %s3432_s30, 1  ;;  %v2506_v1 = vld [vmem:[%s3825_s4 + $0xa8] sm:$0xf]  ;;  %v3346_v27 = vmov 128.0  }
  0x2c   : > { %v2909_v2 = vld [vmem:[%s3825_s4 + $0xb0] sm:$0xf0]  ;;  %v2908_v5 = vld [vmem:[%s3825_s4 + $0xac] sm:$0xf]  ;;  %v2508_v6 = vld [vmem:[%s3825_s4 + $0xb4] sm:$0xf0]  ;;  %3084 = vrcp.f32 %v3346_v27 }
  0x2d   : > { %s3847_s30 = smov (!%p581_p6, %s3432_s30), 1  ;;  %v2507_v4 = vor.u32 %v2909_v2, %v2506_v1  ;;  %v2514_v7 = vld [vmem:[%s3825_s4 + $0xb0] sm:$0xf]  ;;  %v2511_v8 = vor.u32 %v2908_v5, %v2508_v6  ;;  %v2910_v9 = vld [vmem:[%s3825_s4 + $0xb8] sm:$0xf0]  ;;  %vm969_vm4 = vcmask 261120  }
  0x2e   : > { %s2416_s7 = sshll.u32 %s3847_s30, 3  ;;  %v2515_v10 = vor.u32 %v2910_v9, %v2514_v7  ;;  %v2494_v11 = vld [vmem:[%s3825_s4 + $0x90] sm:$0xf]  ;;  %v2906_v12 = vld [vmem:[%s3825_s4 + $0x98] sm:$0xf0]  ;;  %s3347_s21 = smov 96  }
  0x2f   : > { %s584_s18 = scalar_lea.vmem %s3821_s0, %s2416_s7  ;;  %922 = vmatpush.bf16.msra.mxu0 %v2507_v4  ;;  %935 = vmatpush.bf16.msra.mxu1 %v2511_v8  ;;  %v2905_v13 = vld [vmem:[%s3825_s4 + $0x94] sm:$0xf]  ;;  %v2495_v14 = vor.u32 %v2906_v12, %v2494_v11  ;;  %v2496_v15 = vld [vmem:[%s3825_s4 + $0x9c] sm:$0xf0]  ;;  %v2502_v16 = vld [vmem:[%s3825_s4 + $0x98] sm:$0xf]  ;;  %s592_s25 = scalar_lea.vmem %s3823_s2, %s3847_s30 }
  0x30   : > { %v3519_v0 = vld [vmem:[%s584_s18] sm:$0xff]  ;;  %948 = vmatpush.bf16.msra.mxu2 %v2515_v10  ;;  %v2499_v18 = vor.u32 %v2905_v13, %v2496_v15  ;;  %v2482_v20 = vld [vmem:[%s3825_s4 + $0x78] sm:$0xf]  ;;  %v2902_v22 = vld [vmem:[%s3825_s4 + $0x7c] sm:$0xf]  ;;  %vm1019_vm5 = vcmask 1043456  }
  0x31   : > { %v766_v3 = vmul.f32 %v3519_v0, %v3519_v0  ;;  %v2907_v17 = vld [vmem:[%s3825_s4 + $0xa0] sm:$0xf0]  ;;  %v2484_v24 = vld [vmem:[%s3825_s4 + $0x84] sm:$0xf0]  ;;  %v2490_v25 = vld [vmem:[%s3825_s4 + $0x80] sm:$0xf] }
  0x32   : > { %v2503_v19 = vor.u32 %v2907_v17, %v2502_v16  ;;  %v2903_v21 = vld [vmem:[%s3825_s4 + $0x80] sm:$0xf0]  ;;  %v2904_v26 = vld [vmem:[%s3825_s4 + $0x88] sm:$0xf0]  ;;  %v2487_v28 = vor.u32 %v2902_v22, %v2484_v24  ;;  %v2470_v30 = vld [vmem:[%s3825_s4 + $0x60] sm:$0xf]  ;;  %v3085_v39 = vpop.eup %3084 }
  0x33   : > { %767 = vadd.xlane.f32.xlu0 %v766_v3  ;;  %923 = vmatpush.bf16.msra.mxu0 %v2495_v14  ;;  %v2483_v23 = vor.u32 %v2903_v21, %v2482_v20  ;;  %v2491_v29 = vor.u32 %v2904_v26, %v2490_v25  ;;  %v2900_v31 = vld [vmem:[%s3825_s4 + $0x68] sm:$0xf0]  ;;  %v2899_v32 = vld [vmem:[%s3825_s4 + $0x64] sm:$0xf]  ;;  %v2472_v34 = vld [vmem:[%s3825_s4 + $0x6c] sm:$0xf0]  ;;  %vm774_vm0 = vweird.f32 %v3085_v39 }
  0x34   : > { %936 = vmatpush.bf16.msra.mxu1 %v2499_v18  ;;  %949 = vmatpush.bf16.msra.mxu2 %v2503_v19  ;;  %v2471_v33 = vor.u32 %v2900_v31, %v2470_v30  ;;  %v2478_v35 = vld [vmem:[%s3825_s4 + $0x68] sm:$0xf]  ;;  %v2901_v36 = vld [vmem:[%s3825_s4 + $0x70] sm:$0xf0]  ;;  %v2475_v37 = vor.u32 %v2899_v32, %v2472_v34  ;;  %v2896_v42 = vld [vmem:[%s3825_s4 + $0x4c] sm:$0xf] }
  0x35   : > { %v2479_v38 = vor.u32 %v2901_v36, %v2478_v35  ;;  %v2458_v40 = vld [vmem:[%s3825_s4 + $0x48] sm:$0xf]  ;;  %v2897_v41 = vld [vmem:[%s3825_s4 + $0x50] sm:$0xf0]  ;;  %v2460_v44 = vld [vmem:[%s3825_s4 + $0x54] sm:$0xf0] }
  0x36   : > { %v2459_v43 = vor.u32 %v2897_v41, %v2458_v40  ;;  %v2466_v45 = vld [vmem:[%s3825_s4 + $0x50] sm:$0xf]  ;;  %v2898_v46 = vld [vmem:[%s3825_s4 + $0x58] sm:$0xf0]  ;;  %v2463_v47 = vor.u32 %v2896_v42, %v2460_v44  ;;  %v770_v49 = vmul.f32 128.0, %v3085_v39  ;;  %s3348_s8 = smov 64  }
  0x37   : > { %924 = vmatpush.bf16.msra.mxu0 %v2483_v23  ;;  %v2467_v48 = vor.u32 %v2898_v46, %v2466_v45  ;;  %v2446_v50 = vld [vmem:[%s3825_s4 + $0x30] sm:$0xf]  ;;  %v2894_v51 = vld [vmem:[%s3825_s4 + $0x38] sm:$0xf0]  ;;  %v2893_v52 = vld [vmem:[%s3825_s4 + $0x34] sm:$0xf] }
  0x38   : > { %937 = vmatpush.bf16.msra.mxu1 %v2487_v28  ;;  %950 = vmatpush.bf16.msra.mxu2 %v2491_v29  ;;  %v2447_v53 = vor.u32 %v2894_v51, %v2446_v50  ;;  %v2448_v54 = vld [vmem:[%s3825_s4 + $0x3c] sm:$0xf0]  ;;  %v2454_v55 = vld [vmem:[%s3825_s4 + $0x38] sm:$0xf]  ;;  %v2895_v56 = vld [vmem:[%s3825_s4 + $0x40] sm:$0xf0] }
  0x39   : > { %v2451_v57 = vor.u32 %v2893_v52, %v2448_v54  ;;  %v2455_v58 = vor.u32 %v2895_v56, %v2454_v55  ;;  %v771_v59 = vsub.f32 1.0, %v770_v49  ;;  %v2434_v60 = vld [vmem:[%s3825_s4 + $0x18] sm:$0xf]  ;;  %v2891_v61 = vld [vmem:[%s3825_s4 + $0x20] sm:$0xf0]  ;;  %s3349_s9 = smov 32  }
  0x3a   : > { %v2890_v62 = vld [vmem:[%s3825_s4 + $0x1c] sm:$0xf]  ;;  %v2435_v63 = vor.u32 %v2891_v61, %v2434_v60  ;;  %v2436_v1 = vld [vmem:[%s3825_s4 + $0x24] sm:$0xf0]  ;;  %v2442_v2 = vld [vmem:[%s3825_s4 + $0x20] sm:$0xf] }
  0x3b   : > { %925 = vmatpush.bf16.msra.mxu0 %v2471_v33  ;;  %v2892_v3 = vld [vmem:[%s3825_s4 + $0x28] sm:$0xf0]  ;;  %v2439_v4 = vor.u32 %v2890_v62, %v2436_v1  ;;  %v2422_v6 = vld [vmem:[%s3825_s4] sm:$0xf]  ;;  %v2887_v8 = vld [vmem:[%s3825_s4 + $0x4] sm:$0xf]  ;;  %v772_v9 = vmul.f32 %v3085_v39, %v771_v59 }
  0x3c   : > { %938 = vmatpush.bf16.msra.mxu1 %v2475_v37  ;;  %951 = vmatpush.bf16.msra.mxu2 %v2479_v38  ;;  %v2443_v5 = vor.u32 %v2892_v3, %v2442_v2  ;;  %v2888_v7 = vld [vmem:[%s3825_s4 + $0x8] sm:$0xf0]  ;;  %v2424_v11 = vld [vmem:[%s3825_s4 + $0xc] sm:$0xf0]  ;;  %v2430_v12 = vld [vmem:[%s3825_s4 + $0x8] sm:$0xf] }
  0x3d   : > { %v2423_v10 = vor.u32 %v2888_v7, %v2422_v6  ;;  %v2889_v13 = vld [vmem:[%s3825_s4 + $0x10] sm:$0xf0]  ;;  %v2427_v14 = vor.u32 %v2887_v8, %v2424_v11  ;;  %v773_v16 = vadd.f32 %v3085_v39, %v772_v9  ;;  %v3079_v27 = vld [vmem:[%s3824_s3] ss:$0 sm:$0xff]  ;;  %v3350_v50 = vmov -1e+09  }
  0x3e   : > { %v2431_v15 = vor.u32 %v2889_v13, %v2430_v12  ;;  %vm989_vm7 = vcmask 64512   ;;  %s2886_s18 = sshll.u32 %s3847_s30, 4 }
  0x3f   : > { %926 = vmatpush.bf16.msra.mxu0 %v2459_v43  ;;  %v3667_v17 = vsel %vm774_vm0, %v3085_v39, %v773_v16  ;;  %s589_s19 = scalar_lea.vmem %s3822_s1, %s2886_s18  ;;  %s596_s18 = scalar_lea.vmem %s3835_s14, %s2416_s7 }
  0x40   : > { %939 = vmatpush.bf16.msra.mxu1 %v2463_v47  ;;  %952 = vmatpush.bf16.msra.mxu2 %v2467_v48  ;;  %v961_v47 = vlaneseq }
  0x42   : > { %v962_v48 = vshrl.u32 %v961_v47, 7  ;;  %v964_v49 = vand.u32 127, %v961_v47 }
  0x43   : > { %927 = vmatpush.bf16.msra.mxu0 %v2447_v53 }
  0x44   : > { %940 = vmatpush.bf16.msra.mxu1 %v2451_v57  ;;  %953 = vmatpush.bf16.msra.mxu2 %v2455_v58  ;;  %vm965_vm6 = vcmp.le.s32.totalorder %v964_v49, %v962_v48 }
  0x45   : > { %v3686_v51 = vsel %vm965_vm6, 0.0, %v3350_v50 }
  0x47   : > { %928 = vmatpush.bf16.msra.mxu0 %v2435_v63 }
  0x48   : > { %941 = vmatpush.bf16.msra.mxu1 %v2439_v4  ;;  %954 = vmatpush.bf16.msra.mxu2 %v2443_v5 }
  0x4b   : > { %929 = vmatpush.bf16.msra.mxu0 %v2423_v10 }
  0x4c   : > { %942 = vmatpush.bf16.msra.mxu1 %v2427_v14  ;;  %955 = vmatpush.bf16.msra.mxu2 %v2431_v15 }
  0xa6   : > { %v768_v18 = vpop.xlane.xlu0 %767 }
  0xa7   : > { %v776_v19 = vmul.f32 %v3667_v17, %v768_v18 }
  0xa9   : > { %v777_v20 = vadd.f32 1e-06, %v776_v19 }
  0xab   : > { %3086 = vrsqrt.f32 %v777_v20  ;;  %vm784_vm2 = vweird.f32 %v777_v20 }
  0xb1   : > { %v3087_v21 = vpop.eup %3086 }
  0xb2   : > { %v779_v22 = vmul.f32 %v3087_v21, %v777_v20  ;;  %vm785_vm1 = vweird.f32 %v3087_v21 }
  0xb3   : > { %vm786_vm3 = vmor %vm784_vm2, %vm785_vm1 }
  0xb4   : > { %v780_v23 = vmul.f32 %v3087_v21, %v779_v22 }
  0xb6   : > { %v781_v24 = vmul.f32 0.5, %v780_v23 }
  0xb8   : > { %v782_v25 = vsub.f32 1.5, %v781_v24 }
  0xba   : > { %v783_v26 = vmul.f32 %v3087_v21, %v782_v25 }
  0xbc   : > { %v787_v28 = vsel %vm786_vm3, %v3087_v21, %v783_v26 }
  0xbd   : > { %v788_v29 = vmul.f32 %v787_v28, %v3519_v0 }
  0xbf   : > { %v792_v30 = vmul.f32 %v3079_v27, %v788_v29 }
  0xc1   : > { %v793_v31 = vpack.c.bf16 %v792_v30, %v792_v30 }
  0xc3   : > { %930 = vmatmul.bf16.vlgmr.msra.gmra.mxu0 %v793_v31  ;;  %943 = vmatmul.bf16.vlgmr.msra.gmra.mxu1 %v793_v31 }
  0xc4   : > { %956 = vmatmul.bf16.vlgmr.msra.gmra.mxu2 %v793_v31 }
 0x140   : > { %v931_v32 = vpop.f32.mrf.mxu0  ;;  %v944_v33 = vpop.f32.mrf.mxu1 }
 0x141   : > { %v967_v34 = vpack.c.bf16 %v931_v32, %v931_v32  ;;  %v968_v35 = vpack.c.bf16 %v944_v33, %v944_v33 }
 0x143   : > { %1037 = vrot.lane.b32.xlu2 %v967_v34, %s3347_s21  ;;  %v974_v36 = vsel %vm969_vm4, %v968_v35, 0 }
 0x144   : > { %983 = vmatpush.bf16.xpose.msrb.mxu0 %v974_v36 }
 0x147   : > { %v957_v37 = vpop.f32.mrf.mxu2 }
 0x148   : > { %v3676_v38 = vpack.c.bf16 %v957_v37, %v957_v37  ;;  %v933_v39 = vpop.f32.mrf.mxu0  ;;  %v946_v40 = vpop.f32.mrf.mxu1 }
 0x14a   : > { %v1021_v41 = vsel %vm1019_vm5, %v3676_v38, 0 }
 0x14b   : > { %1030 = vmatpush.bf16.msra.mxu3 %v1021_v41  ;;  %1110 = vrot.lane.b32.xlu2 %v968_v35, %s3348_s8 }
 0x14c   : > { %2516 = vmatmul.msk.bf16.vlgmr.msrb.gmra.mxu0 %vm969_vm4, %v967_v34 }
 0x14f   : > { %v959_v42 = vpop.f32.mrf.mxu2 }
 0x153   : > { %1108 = vrot.lane.b32.xlu2 %v967_v34, %s3348_s8 }
 0x15b   : > { %1177 = vrot.lane.b32.xlu2 %v967_v34, %s3349_s9 }
 0x19d   : > { %v1038_v43 = vpop.permute.xlu2 %1037 }
 0x1a5   : > { %v1111_v44 = vpop.permute.xlu2 %1110 }
 0x1a6   : > { %v1116_v45 = vsel %vm969_vm4, %v1111_v44, 0 }
 0x1a7   : > { %1125 = vmatpush.bf16.xpose.msrb.mxu1 %v1116_v45 }
 0x1ad   : > { %v1109_v46 = vpop.permute.xlu2 %1108 }
 0x1ae   : > { %2520 = vmatmul.msk.bf16.vlgmr.msrb.gmra.mxu1 %vm969_vm4, %v1109_v46 }
 0x1b5   : > { %v1178_v20 = vpop.permute.xlu2 %1177 }
 0x1c9   : > { %v985_v52 = vpop.f32.mrf.mxu0 }
 0x1ca   : > { %v986_v53 = vadd.f32 %v985_v52, %v3686_v51 }
 0x1cc   : > { %v990_v54 = vsel %vm989_vm7, %v986_v53, -inf }
 0x1cd   : > { %991 = vmax.xlane.f32.xlu0 %v990_v54 }
 0x1d1   : > { %v987_v55 = vpop.f32.mrf.mxu0 }
 0x1e1   : > { %1179 = vrot.lane.b32.xlu0 %v968_v35, %s3349_s9 }
 0x22b   : > { %v1127_v56 = vpop.f32.mrf.mxu1 }
 0x22c   : > { %v1128_v63 = vadd.f32 %v1127_v56, %v3686_v51 }
 0x22e   : > { %v1131_v1 = vsel %vm989_vm7, %v1128_v63, -inf }
 0x233   : > { %v1129_v57 = vpop.f32.mrf.mxu1 }
 0x240   : > { %v992_v58 = vpop.xlane.xlu0 %991 }
 0x241   : > { %v993_v59 = vsub.f32 %v986_v53, %v992_v58 }
 0x243   : > { %v994_v60 = vmul.f32 1.442695, %v993_v59 }
 0x245   : > { %3088 = vpow2.f32 %v994_v60 }
 0x24b   : > { %v3089_v61 = vpop.eup %3088 }
 0x24c   : > { %v996_v62 = vsel %vm989_vm7, %v3089_v61, 0.0 }
 0x24d   : > { %997 = vadd.xlane.f32.xlu1 %v996_v62 }
 0x253   : > { %v1180_v15 = vpop.permute.xlu0 %1179 }
 0x254   : > { %v1185_v19 = vsel %vm969_vm4, %v1180_v15, 0 }
 0x266   : > { %1040 = vrot.lane.b32.xlu1 %v968_v35, %s3347_s21 }
 0x290   : > { %1132 = vmax.xlane.f32.xlu1 %v1131_v1 }
 0x2c0   : > { %v998_v2 = vpop.xlane.xlu1 %997 }
 0x2c1   : > { %3090 = vrcp.f32 %v998_v2  ;;  %v1010_v6 = vand.u32 2147483648, %v998_v2  ;;  %v1008_v8 = vand.u32 2147483647, %v998_v2  ;;  %vm1004_vm9 = vweird.f32 %v998_v2 }
 0x2c3   : > { %v1011_v10 = vor.u32 1.1754944e-38, %v1010_v6  ;;  %vm1009_vm11 = vcmp.eq.f32.partialorder %v1008_v8, 8.507059e+37 }
 0x2c7   : > { %v3091_v3 = vpop.eup %3090 }
 0x2c8   : > { %v1000_v4 = vmul.f32 %v3091_v3, %v998_v2  ;;  %vm1005_vm8 = vweird.f32 %v3091_v3 }
 0x2c9   : > { %vm1006_vm10 = vmor %vm1004_vm9, %vm1005_vm8 }
 0x2ca   : > { %v1001_v5 = vsub.f32 1.0, %v1000_v4 }
 0x2cc   : > { %v1002_v7 = vmul.f32 %v3091_v3, %v1001_v5 }
 0x2ce   : > { %v1003_v9 = vadd.f32 %v3091_v3, %v1002_v7 }
 0x2d0   : > { %v1007_v11 = vsel %vm1006_vm10, %v3091_v3, %v1003_v9 }
 0x2d1   : > { %v1012_v12 = vsel %vm1009_vm11, %v1011_v10, %v1007_v11 }
 0x2d2   : > { %v1013_v13 = vmul.f32 %v3089_v61, %v1012_v12 }
 0x2d4   : > { %v1014_v14 = vpack.c.bf16 %v1013_v13, %v1013_v13 }
 0x2d6   : > { %2517 = vmatmul.msk.bf16.vlgmr.msra.gmra.mxu3 %vm989_vm7, %v1014_v14 }
 0x2d8   : > { %v1041_v16 = vpop.permute.xlu1 %1040 }
 0x2d9   : > { %v1046_v18 = vsel %vm969_vm4, %v1041_v16, 0 }
 0x2da   : > { %1055 = vmatpush.bf16.xpose.msrb.mxu3 %v1046_v18 }
 0x2e2   : > { %1194 = vmatpush.bf16.xpose.msra.mxu3 %v1185_v19 }
 0x2e6   : > { %2518 = vmatmul.msk.bf16.vlgmr.msrb.gmra.mxu3 %vm969_vm4, %v1038_v43 }
 0x2f6   : > { %2522 = vmatmul.msk.bf16.vlgmr.msra.gmra.mxu3 %vm969_vm4, %v1178_v20 }
 0x303   : > { %v1133_v21 = vpop.xlane.xlu1 %1132 }
 0x304   : > { %v1134_v22 = vsub.f32 %v1128_v63, %v1133_v21 }
 0x306   : > { %v1135_v23 = vmul.f32 1.442695, %v1134_v22 }
 0x308   : > { %3092 = vpow2.f32 %v1135_v23 }
 0x30e   : > { %v3093_v24 = vpop.eup %3092 }
 0x30f   : > { %v1137_v25 = vsel %vm989_vm7, %v3093_v24, 0.0 }
 0x310   : > { %1138 = vadd.xlane.f32.xlu1 %v1137_v25 }
 0x329   : > { %1156 = vrot.lane.b32.xlu1 %v3676_v38, %s3348_s8 }
 0x359   : > { %v3703_v26 = vpop.f32.mrf.mxu3 }
 0x361   : > { %v1034_v27 = vpop.f32.mrf.mxu3 }
 0x369   : > { %v1057_v28 = vpop.f32.mrf.mxu3 }
 0x36a   : > { %v1058_v29 = vadd.f32 %v1057_v28, %v3686_v51 }
 0x36c   : > { %v1061_v30 = vsel %vm989_vm7, %v1058_v29, -inf }
 0x36d   : > { %1062 = vmax.xlane.f32.xlu2 %v1061_v30 }
 0x371   : > { %v1059_v31 = vpop.f32.mrf.mxu3 }
 0x379   : > { %v1196_v32 = vpop.f32.mrf.mxu3 }
 0x37a   : > { %v1197_v33 = vadd.f32 %v1196_v32, %v3686_v51 }
 0x37c   : > { %v1200_v34 = vsel %vm989_vm7, %v1197_v33, -inf }
 0x37d   : > { %1201 = vmax.xlane.f32.xlu0 %v1200_v34 }
 0x381   : > { %v1198_v35 = vpop.f32.mrf.mxu3 }
 0x383   : > { %v1139_v36 = vpop.xlane.xlu1 %1138 }
 0x384   : > { %3094 = vrcp.f32 %v1139_v36  ;;  %v1151_v43 = vand.u32 2147483648, %v1139_v36  ;;  %vm1145_vm13 = vweird.f32 %v1139_v36  ;;  %v1149_v44 = vand.u32 2147483647, %v1139_v36 }
 0x386   : > { %v1152_v46 = vor.u32 1.1754944e-38, %v1151_v43  ;;  %vm1150_vm15 = vcmp.eq.f32.partialorder %v1149_v44, 8.507059e+37  ;;  %v2912_v43 = vld [vmem:[#allocation2 + $0x8] sm:$0xff]  ;;  %v2911_v44 = vld [vmem:[#allocation2] sm:$0xff] }
 0x38a   : > { %v3095_v37 = vpop.eup %3094 }
 0x38b   : > { %v1141_v39 = vmul.f32 %v3095_v37, %v1139_v36  ;;  %vm1146_vm12 = vweird.f32 %v3095_v37  ;;  %v2918_v36 = vld [vmem:[#allocation2 + $0x38] sm:$0xff] }
 0x38c   : > { %vm1147_vm14 = vmor %vm1145_vm13, %vm1146_vm12  ;;  %1312 = vmatpush.bf16.msra.mxu1 %v2918_v36  ;;  %v3080_v36 = vld [vmem:[%s3827_s6] ss:$0 sm:$0xff] }
 0x38d   : > { %v1142_v40 = vsub.f32 1.0, %v1141_v39  ;;  %v2916_v39 = vld [vmem:[#allocation2 + $0x28] sm:$0xff] }
 0x38f   : > { %v1143_v41 = vmul.f32 %v3095_v37, %v1142_v40  ;;  %v2915_v40 = vld [vmem:[#allocation2 + $0x20] sm:$0xff] }
 0x391   : > { %v1144_v42 = vadd.f32 %v3095_v37, %v1143_v41  ;;  %v2914_v41 = vld [vmem:[#allocation2 + $0x18] sm:$0xff] }
 0x393   : > { %v1148_v45 = vsel %vm1147_vm14, %v3095_v37, %v1144_v42  ;;  %v2917_v37 = vld [vmem:[#allocation2 + $0x30] sm:$0xff]  ;;  %vm1541_vm14 = vcmask 130048  }
 0x394   : > { %v1153_v47 = vsel %vm1150_vm15, %v1152_v46, %v1148_v45  ;;  %1313 = vmatpush.bf16.msra.mxu1 %v2917_v37  ;;  %v2913_v42 = vld [vmem:[#allocation2 + $0x10] sm:$0xff] }
 0x395   : > { %v1154_v48 = vmul.f32 %v3093_v24, %v1153_v47 }
 0x397   : > { %v1155_v51 = vpack.c.bf16 %v1154_v48, %v1154_v48 }
 0x398   : > { %1314 = vmatpush.bf16.msra.mxu1 %v2916_v39 }
 0x39b   : > { %v1157_v49 = vpop.permute.xlu1 %1156 }
 0x39c   : > { %v1162_v50 = vsel %vm1019_vm5, %v1157_v49, 0  ;;  %1315 = vmatpush.bf16.msra.mxu1 %v2915_v40 }
 0x39d   : > { %1171 = vmatpush.bf16.msrb.mxu2 %v1162_v50 }
 0x3a0   : > { %2521 = vmatmul.msk.bf16.vlgmr.msrb.gmra.mxu2 %vm989_vm7, %v1155_v51  ;;  %1316 = vmatpush.bf16.msra.mxu1 %v2914_v41 }
 0x3a4   : > { %1317 = vmatpush.bf16.msra.mxu1 %v2913_v42 }
 0x3a8   : > { %1318 = vmatpush.bf16.msra.mxu1 %v2912_v43 }
 0x3ac   : > { %1319 = vmatpush.bf16.msra.mxu1 %v2911_v44 }
 0x3e0   : > { %v1063_v52 = vpop.xlane.xlu2 %1062 }
 0x3e1   : > { %v1064_v53 = vsub.f32 %v1058_v29, %v1063_v52  ;;  %v2646_v52 = vld [vmem:[#allocation6 + $0x70] sm:$0xf] }
 0x3e3   : > { %v1065_v54 = vmul.f32 1.442695, %v1064_v53  ;;  %v2942_v53 = vld [vmem:[#allocation6 + $0x74] sm:$0xf0] }
 0x3e5   : > { %3096 = vpow2.f32 %v1065_v54  ;;  %v2638_v54 = vld [vmem:[#allocation6 + $0x60] sm:$0xf] }
 0x3eb   : > { %v3097_v55 = vpop.eup %3096 }
 0x3ec   : > { %v1067_v56 = vsel %vm989_vm7, %v3097_v55, 0.0 }
 0x3ed   : > { %1068 = vadd.xlane.f32.xlu2 %v1067_v56  ;;  %v2940_v56 = vld [vmem:[#allocation6 + $0x64] sm:$0xf0] }
 0x3f0   : > { %v1202_v57 = vpop.xlane.xlu0 %1201 }
 0x3f1   : > { %v1203_v58 = vsub.f32 %v1197_v33, %v1202_v57  ;;  %v2639_v57 = vor.u32 %v2940_v56, %v2638_v54  ;;  %v2648_v54 = vld [vmem:[#allocation6 + $0x78] sm:$0xf0] }
 0x3f3   : > { %v1204_v59 = vmul.f32 1.442695, %v1203_v58  ;;  %v2630_v58 = vld [vmem:[#allocation6 + $0x50] sm:$0xf] }
 0x3f5   : > { %3098 = vpow2.f32 %v1204_v59  ;;  %v2938_v59 = vld [vmem:[#allocation6 + $0x54] sm:$0xf0] }
 0x3fb   : > { %v3099_v60 = vpop.eup %3098 }
 0x3fc   : > { %v1206_v61 = vsel %vm989_vm7, %v3099_v60, 0.0 }
 0x3fd   : > { %1207 = vadd.xlane.f32.xlu0 %v1206_v61  ;;  %v2622_v61 = vld [vmem:[#allocation6 + $0x40] sm:$0xf] }
 0x405   : > { %1087 = vrot.lane.b32.xlu2 %v3676_v38, %s3347_s21 }
 0x411   : > { %1225 = vrot.lane.b32.xlu0 %v3676_v38, %s3349_s9 }
 0x423   : > { %v1173_v62 = vpop.f32.mrf.mxu2 }
 0x424   : > { %1251 = vrot.lane.b32.xlu0 %v1173_v62, %s3348_s8  ;;  %v2936_v62 = vld [vmem:[#allocation6 + $0x44] sm:$0xf0] }
 0x42b   : > { %v1175_v63 = vpop.f32.mrf.mxu2 }
 0x42c   : > { %v2623_v63 = vor.u32 %v2936_v62, %v2622_v61  ;;  %v2935_v61 = vld [vmem:[#allocation6 + $0x44] sm:$0xf]  ;;  %v2624_v62 = vld [vmem:[#allocation6 + $0x48] sm:$0xf0] }
 0x460   : > { %v1069_v1 = vpop.xlane.xlu2 %1068 }
 0x461   : > { %3100 = vrcp.f32 %v1069_v1  ;;  %v1081_v7 = vand.u32 2147483648, %v1069_v1  ;;  %v1079_v9 = vand.u32 2147483647, %v1069_v1  ;;  %vm1075_vm1 = vweird.f32 %v1069_v1 }
 0x463   : > { %v1082_v38 = vor.u32 1.1754944e-38, %v1081_v7  ;;  %vm1080_vm3 = vcmp.eq.f32.partialorder %v1079_v9, 8.507059e+37  ;;  %v2598_v7 = vld [vmem:[#allocation6 + $0x10] sm:$0xf] }
 0x467   : > { %v3101_v2 = vpop.eup %3100 }
 0x468   : > { %v1071_v3 = vmul.f32 %v3101_v2, %v1069_v1  ;;  %v1088_v4 = vpop.permute.xlu2 %1087  ;;  %vm1076_vm0 = vweird.f32 %v3101_v2  ;;  %v2614_v1 = vld [vmem:[#allocation6 + $0x30] sm:$0xf] }
 0x469   : > { %v1093_v5 = vsel %vm1019_vm5, %v1088_v4, 0  ;;  %vm1077_vm2 = vmor %vm1075_vm1, %vm1076_vm0  ;;  %v2606_v4 = vld [vmem:[#allocation6 + $0x20] sm:$0xf] }
 0x46a   : > { %v1072_v6 = vsub.f32 1.0, %v1071_v3  ;;  %1102 = vmatpush.bf16.msra.mxu0 %v1093_v5  ;;  %v2932_v5 = vld [vmem:[#allocation6 + $0x24] sm:$0xf0] }
 0x46c   : > { %v1073_v8 = vmul.f32 %v3101_v2, %v1072_v6  ;;  %v2607_v6 = vor.u32 %v2932_v5, %v2606_v4  ;;  %v3081_v5 = vld [vmem:[%s592_s25] ss:$0 sm:$0xff] }
 0x46e   : > { %v1074_v10 = vadd.f32 %v3101_v2, %v1073_v8  ;;  %v2930_v8 = vld [vmem:[#allocation6 + $0x14] sm:$0xf0] }
 0x46f   : > { %v2599_v9 = vor.u32 %v2930_v8, %v2598_v7 }
 0x470   : > { %v1078_v11 = vsel %vm1077_vm2, %v3101_v2, %v1074_v10  ;;  %v1208_v12 = vpop.xlane.xlu0 %1207  ;;  %v2934_v2 = vld [vmem:[#allocation6 + $0x34] sm:$0xf0] }
 0x471   : > { %v1083_v13 = vsel %vm1080_vm3, %v1082_v38, %v1078_v11  ;;  %3102 = vrcp.f32 %v1208_v12  ;;  %v1220_v20 = vand.u32 2147483648, %v1208_v12  ;;  %v1218_v22 = vand.u32 2147483647, %v1208_v12  ;;  %v2590_v38 = vld [vmem:[#allocation6] sm:$0xf] }
 0x472   : > { %v1084_v14 = vmul.f32 %v3097_v55, %v1083_v13  ;;  %vm1214_vm8 = vweird.f32 %v1208_v12  ;;  %v2647_v55 = vor.u32 %v2942_v53, %v2646_v52  ;;  %v2615_v3 = vor.u32 %v2934_v2, %v2614_v1  ;;  %v2928_v11 = vld [vmem:[#allocation6 + $0x4] sm:$0xf0]  ;;  %v2941_v53 = vld [vmem:[#allocation6 + $0x74] sm:$0xf] }
 0x473   : > { %v1221_v24 = vor.u32 1.1754944e-38, %v1220_v20  ;;  %vm1219_vm10 = vcmp.eq.f32.partialorder %v1218_v22, 8.507059e+37  ;;  %v2925_v20 = vld [vmem:[#allocation4 + $0x30] sm:$0xff]  ;;  %v2922_v22 = vld [vmem:[#allocation4 + $0x18] sm:$0xff]  ;;  %v2651_v56 = vor.u32 %v2941_v53, %v2648_v54 }
 0x474   : > { %v1085_v15 = vpack.c.bf16 %v1084_v14, %v1084_v14  ;;  %1489 = vmatpush.bf16.msrb.mxu3 %v2647_v55  ;;  %v2591_v14 = vor.u32 %v2928_v11, %v2590_v38  ;;  %v2939_v55 = vld [vmem:[#allocation6 + $0x64] sm:$0xf]  ;;  %v2933_v38 = vld [vmem:[#allocation6 + $0x34] sm:$0xf]  ;;  %v2616_v11 = vld [vmem:[#allocation6 + $0x38] sm:$0xf0] }
 0x476   : > { %2519 = vmatmul.msk.bf16.vlgmr.msra.gmra.mxu0 %vm989_vm7, %v1085_v15  ;;  %v599_v15 = vld [vmem:[%s589_s19] sm:$0xff] }
 0x477   : > { %v3103_v16 = vpop.eup %3102 }
 0x478   : > { %v1210_v18 = vmul.f32 %v3103_v16, %v1208_v12  ;;  %vm1215_vm6 = vweird.f32 %v3103_v16  ;;  %1490 = vmatpush.bf16.msrb.mxu3 %v2639_v57  ;;  %v2640_v57 = vld [vmem:[#allocation6 + $0x68] sm:$0xf0] }
 0x479   : > { %vm1216_vm9 = vmor %vm1214_vm8, %vm1215_vm6 }
 0x47a   : > { %v1211_v19 = vsub.f32 1.0, %v1210_v18 }
 0x47c   : > { %v1212_v21 = vmul.f32 %v3103_v16, %v1211_v19 }
 0x47e   : > { %v1213_v23 = vadd.f32 %v3103_v16, %v1212_v21  ;;  %v2924_v21 = vld [vmem:[#allocation4 + $0x28] sm:$0xff] }
 0x480   : > { %v1217_v25 = vsel %vm1216_vm9, %v3103_v16, %v1213_v23  ;;  %v600_v16 = vld [vmem:[%s589_s19 + $0x8] sm:$0xff]  ;;  %v2921_v23 = vld [vmem:[#allocation4 + $0x10] sm:$0xff] }
 0x481   : > { %v1222_v27 = vsel %vm1219_vm10, %v1221_v24, %v1217_v25  ;;  %v3737_v18 = vpack.c.bf16 %v600_v16, %v599_v15  ;;  %v2920_v24 = vld [vmem:[#allocation4 + $0x8] sm:$0xff]  ;;  %v2919_v25 = vld [vmem:[#allocation4] sm:$0xff] }
 0x482   : > { %v1223_v28 = vmul.f32 %v3099_v60, %v1222_v27  ;;  %v2631_v60 = vor.u32 %v2938_v59, %v2630_v58  ;;  %v2643_v58 = vor.u32 %v2939_v55, %v2640_v57  ;;  %v2937_v59 = vld [vmem:[#allocation6 + $0x54] sm:$0xf]  ;;  %v2608_v15 = vld [vmem:[#allocation6 + $0x28] sm:$0xf0] }
 0x483   : > { %v1226_v29 = vpop.permute.xlu0 %1225 }
 0x484   : > { %v1231_v30 = vsel %vm1019_vm5, %v1226_v29, 0  ;;  %v1224_v31 = vpack.c.bf16 %v1223_v28, %v1223_v28  ;;  %vm1259_vm5 = vcmask 523264   ;;  %1491 = vmatpush.bf16.msrb.mxu3 %v2631_v60 }
 0x485   : > { %1240 = vmatpush.bf16.msrb.mxu0 %v1231_v30 }
 0x488   : > { %2523 = vmatmul.msk.bf16.vlgmr.msrb.gmra.mxu0 %vm989_vm7, %v1224_v31  ;;  %vm1261_vm7 = vcmask 785408   ;;  %1492 = vmatpush.bf16.msrb.mxu3 %v2623_v63  ;;  %v2627_v63 = vor.u32 %v2935_v61, %v2624_v62 }
 0x489   : > { %1503 = vmatpush.bf16.msra.mxu0 %v2651_v56 }
 0x48c   : > { %1493 = vmatpush.bf16.msrb.mxu3 %v2615_v3 }
 0x48d   : > { %1504 = vmatpush.bf16.msra.mxu0 %v2643_v58 }
 0x490   : > { %1494 = vmatpush.bf16.msrb.mxu3 %v2607_v6 }
 0x494   : > { %1495 = vmatpush.bf16.msrb.mxu3 %v2599_v9 }
 0x496   : > { %v1252_v47 = vpop.permute.xlu0 %1251 }
 0x498   : > { %1496 = vmatpush.bf16.msrb.mxu3 %v2591_v14  ;;  %v2931_v14 = vld [vmem:[#allocation6 + $0x24] sm:$0xf] }
 0x499   : > { %v2611_v16 = vor.u32 %v2931_v14, %v2608_v15 }
 0x49b   : > { %1497 = vmatmul.bf16.vlgmr.msrb.gmra.mxu3 %v3737_v18 }
 0x4f3   : > { %v1104_v32 = vpop.f32.mrf.mxu0 }
 0x4f4   : > { %1247 = vrot.lane.b32.xlu2 %v1104_v32, %s3349_s9 }
 0x4fb   : > { %v1106_v33 = vpop.f32.mrf.mxu0 }
 0x505   : > { %v1242_v34 = vpop.f32.mrf.mxu0 }
 0x506   : > { %1255 = vrot.lane.b32.xlu1 %v1242_v34, %s3347_s21 }
 0x50d   : > { %v1244_v35 = vpop.f32.mrf.mxu0 }
 0x51e   : > { %v1498_v37 = vpop.f32.mrf.mxu3 }
 0x526   : > { %v1500_v43 = vpop.f32.mrf.mxu3 }
 0x527   : > { %v1518_v44 = vpack.c.bf16 %v1500_v43, %v1498_v37 }
 0x529   : > { %1588 = vrot.lane.b32.xlu0 %v1518_v44, %s3347_s21 }
 0x531   : > { %1656 = vrot.lane.b32.xlu0 %v1518_v44, %s3348_s8 }
 0x54e   : > { %v1248_v45 = vpop.permute.xlu2 %1247 }
 0x54f   : > { %v1258_v46 = vsel %vm969_vm4, %v3703_v26, %v1248_v45  ;;  %v2926_v26 = vld [vmem:[#allocation4 + $0x38] sm:$0xff]  ;;  %v1526_v45 = vsel %vm969_vm4, %v1518_v44, 0 }
 0x550   : > { %v1260_v49 = vsel %vm1259_vm5, %v1258_v46, %v1252_v47  ;;  %1395 = vmatpush.bf16.msra.mxu2 %v2926_v26  ;;  %1535 = vmatpush.bf16.xpose.msrb.mxu1 %v1526_v45  ;;  %v2632_v26 = vld [vmem:[#allocation6 + $0x58] sm:$0xf0] }
 0x551   : > { %v2635_v60 = vor.u32 %v2937_v59, %v2632_v26 }
 0x553   : > { %1505 = vmatpush.bf16.msra.mxu0 %v2635_v60 }
 0x554   : > { %1396 = vmatpush.bf16.msra.mxu2 %v2925_v20  ;;  %v2600_v20 = vld [vmem:[#allocation6 + $0x18] sm:$0xf0] }
 0x557   : > { %1506 = vmatpush.bf16.msra.mxu0 %v2627_v63 }
 0x558   : > { %1397 = vmatpush.bf16.msra.mxu2 %v2924_v21 }
 0x578   : > { %v1256_v48 = vpop.permute.xlu1 %1255 }
 0x579   : > { %v1262_v50 = vsel %vm1261_vm7, %v1260_v49, %v1256_v48 }
 0x57a   : > { %v1263_v51 = vpack.c.bf16 %v1262_v50, %v1262_v50 }
 0x57c   : > { %1320 = vmatmul.bf16.vlgmr.msra.gmra.mxu1 %v1263_v51 }
 0x59b   : > { %v1589_v46 = vpop.permute.xlu0 %1588 }
 0x59c   : > { %v1594_v47 = vsel %vm969_vm4, %v1589_v46, 0 }
 0x59d   : > { %1603 = vmatpush.bf16.xpose.msra.mxu3 %v1594_v47 }
 0x5a3   : > { %v1657_v48 = vpop.permute.xlu0 %1656 }
 0x5a4   : > { %v1662_v49 = vsel %vm969_vm4, %v1657_v48, 0 }
 0x5a5   : > { %1671 = vmatpush.bf16.xpose.msra.mxu1 %v1662_v49 }
 0x5f9   : > { %v1321_v10 = vpop.f32.mrf.mxu1 }
 0x5fa   : > { %v3733_v12 = vadd.f32 %v1321_v10, %v3519_v0  ;;  %v2923_v0 = vld [vmem:[#allocation4 + $0x20] sm:$0xff] }
 0x5fb   : > { %1398 = vmatpush.bf16.msra.mxu2 %v2923_v0  ;;  %v2927_v0 = vld [vmem:[#allocation6 + $0x4] sm:$0xf] }
 0x5fc   : > { %v1326_v13 = vmul.f32 %v3733_v12, %v3733_v12 }
 0x5fe   : > { %1327 = vadd.xlane.f32.xlu2 %v1326_v13  ;;  %v2619_v13 = vor.u32 %v2933_v38, %v2616_v11 }
 0x5ff   : > { %1399 = vmatpush.bf16.msra.mxu2 %v2922_v22  ;;  %v2592_v22 = vld [vmem:[#allocation6 + $0x8] sm:$0xf0] }
 0x600   : > { %1507 = vmatpush.bf16.msra.mxu0 %v2619_v13 }
 0x601   : > { %v1323_v19 = vpop.f32.mrf.mxu1 }
 0x602   : > { %v2929_v19 = vld [vmem:[#allocation6 + $0x14] sm:$0xf] }
 0x603   : > { %1400 = vmatpush.bf16.msra.mxu2 %v2921_v23  ;;  %v2603_v21 = vor.u32 %v2929_v19, %v2600_v20  ;;  %v2595_v23 = vor.u32 %v2927_v0, %v2592_v22 }
 0x604   : > { %1508 = vmatpush.bf16.msra.mxu0 %v2611_v16 }
 0x607   : > { %1401 = vmatpush.bf16.msra.mxu2 %v2920_v24 }
 0x608   : > { %1509 = vmatpush.bf16.msra.mxu0 %v2603_v21 }
 0x60b   : > { %1402 = vmatpush.bf16.msra.mxu2 %v2919_v25 }
 0x60c   : > { %1510 = vmatpush.bf16.msra.mxu0 %v2595_v23 }
 0x60f   : > { %1511 = vmatmul.bf16.vlgmr.msra.gmra.mxu0 %v3737_v18 }
 0x671   : > { %v1328_v27 = vpop.xlane.xlu2 %1327 }
 0x672   : > { %v1329_v28 = vmul.f32 %v1328_v27, %v3667_v17 }
 0x674   : > { %v1330_v29 = vadd.f32 1e-06, %v1329_v28 }
 0x676   : > { %3104 = vrsqrt.f32 %v1330_v29  ;;  %vm1337_vm12 = vweird.f32 %v1330_v29 }
 0x67c   : > { %v3105_v30 = vpop.eup %3104 }
 0x67d   : > { %v1332_v31 = vmul.f32 %v3105_v30, %v1330_v29  ;;  %vm1338_vm11 = vweird.f32 %v3105_v30 }
 0x67e   : > { %vm1339_vm13 = vmor %vm1337_vm12, %vm1338_vm11 }
 0x67f   : > { %v1333_v32 = vmul.f32 %v3105_v30, %v1332_v31 }
 0x681   : > { %v1334_v33 = vmul.f32 0.5, %v1333_v32 }
 0x683   : > { %v1335_v34 = vsub.f32 1.5, %v1334_v33 }
 0x685   : > { %v1336_v35 = vmul.f32 %v3105_v30, %v1335_v34 }
 0x687   : > { %v1340_v39 = vsel %vm1339_vm13, %v3105_v30, %v1336_v35 }
 0x688   : > { %v1341_v40 = vmul.f32 %v1340_v39, %v3733_v12 }
 0x68a   : > { %v1345_v41 = vmul.f32 %v3080_v36, %v1341_v40 }
 0x68c   : > { %v1346_v42 = vpack.c.bf16 %v1345_v41, %v1345_v41 }
 0x68e   : > { %1403 = vmatmul.bf16.vlgmr.msra.gmra.mxu2 %v1346_v42  ;;  %v1512_v42 = vpop.f32.mrf.mxu0 }
 0x696   : > { %v1514_v43 = vpop.f32.mrf.mxu0 }
 0x697   : > { %v1567_v45 = vpack.c.bf16 %v1514_v43, %v1512_v42 }
 0x699   : > { %1578 = vmatpush.bf16.msrb.mxu2 %v1567_v45 }
 0x711   : > { %v1404_v50 = vpop.f32.mrf.mxu2 }
 0x712   : > { %v1517_v51 = vpack.c.bf16 %v1404_v50, %v1404_v50 }
 0x714   : > { %1654 = vrot.lane.b32.xlu0 %v1517_v51, %s3348_s8  ;;  %1585 = vrot.lane.b32.xlu1 %v1517_v51, %s3347_s21 }
 0x715   : > { %2652 = vmatmul.msk.bf16.vlgmr.msrb.gmra.mxu1 %vm969_vm4, %v1517_v51 }
 0x719   : > { %v1406_v52 = vpop.f32.mrf.mxu2 }
 0x71c   : > { %1723 = vrot.lane.b32.xlu1 %v1518_v44, %s3349_s9 }
 0x724   : > { %1721 = vrot.lane.b32.xlu1 %v1517_v51, %s3349_s9 }
 0x786   : > { %v1586_v1 = vpop.permute.xlu1 %1585  ;;  %v1655_v2 = vpop.permute.xlu0 %1654 }
 0x787   : > { %2654 = vmatmul.msk.bf16.vlgmr.msra.gmra.mxu3 %vm969_vm4, %v1586_v1  ;;  %2656 = vmatmul.msk.bf16.vlgmr.msra.gmra.mxu1 %vm969_vm4, %v1655_v2 }
 0x78e   : > { %v1724_v3 = vpop.permute.xlu1 %1723 }
 0x78f   : > { %v1729_v4 = vsel %vm969_vm4, %v1724_v3, 0 }
 0x790   : > { %1738 = vmatpush.bf16.xpose.msrb.mxu3 %v1729_v4 }
 0x792   : > { %v1537_v6 = vpop.f32.mrf.mxu1 }
 0x793   : > { %v1538_v7 = vadd.f32 %v3081_v5, %v1537_v6 }
 0x795   : > { %v1542_v8 = vsel %vm1541_vm14, %v1538_v7, -inf }
 0x796   : > { %1543 = vmax.xlane.f32.xlu0 %v1542_v8  ;;  %v1722_v9 = vpop.permute.xlu1 %1721 }
 0x797   : > { %2658 = vmatmul.msk.bf16.vlgmr.msrb.gmra.mxu3 %vm969_vm4, %v1722_v9 }
 0x79a   : > { %v1539_v10 = vpop.f32.mrf.mxu1 }
 0x804   : > { %v1673_v24 = vpop.f32.mrf.mxu1 }
 0x805   : > { %v1674_v25 = vadd.f32 %v3081_v5, %v1673_v24 }
 0x807   : > { %v1677_v27 = vsel %vm1541_vm14, %v1674_v25, -inf }
 0x808   : > { %1678 = vmax.xlane.f32.xlu2 %v1677_v27 }
 0x809   : > { %v1544_v32 = vpop.xlane.xlu0 %1543 }
 0x80a   : > { %v1605_v28 = vpop.f32.mrf.mxu3  ;;  %v1545_v34 = vsub.f32 %v1538_v7, %v1544_v32 }
 0x80b   : > { %v1606_v29 = vadd.f32 %v3081_v5, %v1605_v28 }
 0x80c   : > { %v1675_v30 = vpop.f32.mrf.mxu1  ;;  %v1546_v35 = vmul.f32 1.442695, %v1545_v34 }
 0x80d   : > { %v1609_v31 = vsel %vm1541_vm14, %v1606_v29, -inf }
 0x80e   : > { %1610 = vmax.xlane.f32.xlu1 %v1609_v31  ;;  %3106 = vpow2.f32 %v1546_v35 }
 0x812   : > { %v1607_v33 = vpop.f32.mrf.mxu3 }
 0x814   : > { %v3107_v39 = vpop.eup %3106 }
 0x815   : > { %v1548_v41 = vsel %vm1541_vm14, %v3107_v39, 0.0 }
 0x81a   : > { %v1740_v36 = vpop.f32.mrf.mxu3 }
 0x81b   : > { %v1741_v37 = vadd.f32 %v3081_v5, %v1740_v36 }
 0x81d   : > { %v1744_v18 = vsel %vm1541_vm14, %v1741_v37, -inf }
 0x81e   : > { %1745 = vmax.xlane.f32.xlu2 %v1744_v18 }
 0x822   : > { %v1742_v40 = vpop.f32.mrf.mxu3 }
 0x826   : > { %1549 = vadd.xlane.f32.xlu2 %v1548_v41 }
 0x87b   : > { %v1679_v44 = vpop.xlane.xlu2 %1678 }
 0x87c   : > { %v1680_v46 = vsub.f32 %v1674_v25, %v1679_v44 }
 0x87e   : > { %v1681_v47 = vmul.f32 1.442695, %v1680_v46 }
 0x880   : > { %3108 = vpow2.f32 %v1681_v47 }
 0x881   : > { %v1611_v48 = vpop.xlane.xlu1 %1610 }
 0x882   : > { %v1612_v49 = vsub.f32 %v1606_v29, %v1611_v48 }
 0x884   : > { %v1613_v50 = vmul.f32 1.442695, %v1612_v49 }
 0x886   : > { %v3109_v51 = vpop.eup %3108  ;;  %3110 = vpow2.f32 %v1613_v50 }
 0x887   : > { %v1683_v52 = vsel %vm1541_vm14, %v3109_v51, 0.0 }
 0x888   : > { %1684 = vadd.xlane.f32.xlu0 %v1683_v52 }
 0x88c   : > { %v3775_v53 = vpop.eup %3110 }
 0x88d   : > { %v1615_v54 = vsel %vm1541_vm14, %v3775_v53, 0.0 }
 0x88e   : > { %1616 = vadd.xlane.f32.xlu2 %v1615_v54 }
 0x891   : > { %v1746_v55 = vpop.xlane.xlu2 %1745 }
 0x892   : > { %v1747_v56 = vsub.f32 %v1741_v37, %v1746_v55 }
 0x894   : > { %v1748_v57 = vmul.f32 1.442695, %v1747_v56 }
 0x896   : > { %3112 = vpow2.f32 %v1748_v57 }
 0x899   : > { %v1550_v58 = vpop.xlane.xlu2 %1549 }
 0x89a   : > { %3114 = vrcp.f32 %v1550_v58  ;;  %v1562_v63 = vand.u32 2147483648, %v1550_v58  ;;  %v1560_v2 = vand.u32 2147483647, %v1550_v58  ;;  %vm1556_vm0 = vweird.f32 %v1550_v58 }
 0x89c   : > { %v3779_v59 = vpop.eup %3112  ;;  %1702 = vrot.lane.b32.xlu0 %v1567_v45, %s3348_s8  ;;  %v1563_v4 = vor.u32 1.1754944e-38, %v1562_v63  ;;  %vm1561_vm2 = vcmp.eq.f32.partialorder %v1560_v2, 8.507059e+37  ;;  %v2947_v63 = vld [vmem:[#allocation7 + $0x20] sm:$0xff]  ;;  %v2945_v2 = vld [vmem:[#allocation7 + $0x10] sm:$0xff] }
 0x89d   : > { %v1750_v26 = vsel %vm1541_vm14, %v3779_v59, 0.0 }
 0x89e   : > { %1751 = vadd.xlane.f32.xlu1 %v1750_v26 }
 0x8a0   : > { %v3115_v60 = vpop.eup %3114 }
 0x8a1   : > { %v1552_v61 = vmul.f32 %v3115_v60, %v1550_v58  ;;  %vm1557_vm15 = vweird.f32 %v3115_v60 }
 0x8a2   : > { %vm1558_vm1 = vmor %vm1556_vm0, %vm1557_vm15 }
 0x8a3   : > { %v1553_v62 = vsub.f32 1.0, %v1552_v61  ;;  %v2949_v61 = vld [vmem:[#allocation7 + $0x30] sm:$0xff] }
 0x8a5   : > { %v1554_v1 = vmul.f32 %v3115_v60, %v1553_v62  ;;  %v2948_v62 = vld [vmem:[#allocation7 + $0x28] sm:$0xff] }
 0x8a6   : > { %1635 = vrot.lane.b32.xlu2 %v1567_v45, %s3347_s21 }
 0x8a7   : > { %v1555_v3 = vadd.f32 %v3115_v60, %v1554_v1  ;;  %v2946_v1 = vld [vmem:[#allocation7 + $0x18] sm:$0xff] }
 0x8a9   : > { %v1559_v5 = vsel %vm1558_vm1, %v3115_v60, %v1555_v3  ;;  %v2944_v3 = vld [vmem:[#allocation7 + $0x8] sm:$0xff] }
 0x8aa   : > { %v1564_v6 = vsel %vm1561_vm2, %v1563_v4, %v1559_v5  ;;  %v2943_v4 = vld [vmem:[#allocation7] sm:$0xff] }
 0x8ab   : > { %v1565_v7 = vmul.f32 %v3107_v39, %v1564_v6 }
 0x8ad   : > { %v1566_v8 = vpack.c.bf16 %v1565_v7, %v1565_v7 }
 0x8af   : > { %2653 = vmatmul.msk.bf16.vlgmr.msrb.gmra.mxu2 %vm1541_vm14, %v1566_v8 }
 0x8b7   : > { %1769 = vrot.lane.b32.xlu1 %v1567_v45, %s3349_s9 }
 0x8fb   : > { %v1685_v9 = vpop.xlane.xlu0 %1684 }
 0x8fc   : > { %3116 = vrcp.f32 %v1685_v9  ;;  %v1697_v14 = vand.u32 2147483648, %v1685_v9  ;;  %v1695_v16 = vand.u32 2147483647, %v1685_v9  ;;  %vm1691_vm6 = vweird.f32 %v1685_v9 }
 0x8fe   : > { %v1698_v22 = vor.u32 1.1754944e-38, %v1697_v14  ;;  %vm1696_vm9 = vcmp.eq.f32.partialorder %v1695_v16, 8.507059e+37  ;;  %v2979_v14 = vld [vmem:[#allocation9 + $0xe4] sm:$0xf]  ;;  %v2808_v16 = vld [vmem:[#allocation9 + $0xf0] sm:$0xf0] }
 0x901   : > { %v1617_v10 = vpop.xlane.xlu2 %1616 }
 0x902   : > { %v3117_v38 = vpop.eup %3116  ;;  %3118 = vrcp.f32 %v1617_v10  ;;  %v1629_v27 = vand.u32 2147483648, %v1617_v10  ;;  %v1627_v30 = vand.u32 2147483647, %v1617_v10  ;;  %vm1623_vm11 = vweird.f32 %v1617_v10 }
 0x903   : > { %v1687_v11 = vmul.f32 %v3117_v38, %v1685_v9  ;;  %vm1692_vm3 = vweird.f32 %v3117_v38 }
 0x904   : > { %vm1693_vm8 = vmor %vm1691_vm6, %vm1692_vm3  ;;  %v1630_v34 = vor.u32 1.1754944e-38, %v1629_v27  ;;  %vm1628_vm13 = vcmp.eq.f32.partialorder %v1627_v30, 8.507059e+37  ;;  %v2790_v30 = vld [vmem:[#allocation9 + $0xc0] sm:$0xf] }
 0x905   : > { %v1688_v13 = vsub.f32 1.0, %v1687_v11  ;;  %v2806_v11 = vld [vmem:[#allocation9 + $0xe0] sm:$0xf] }
 0x907   : > { %v1689_v15 = vmul.f32 %v3117_v38, %v1688_v13  ;;  %v2981_v13 = vld [vmem:[#allocation9 + $0xec] sm:$0xf0] }
 0x908   : > { %v3119_v19 = vpop.eup %3118 }
 0x909   : > { %v1690_v20 = vadd.f32 %v3117_v38, %v1689_v15  ;;  %v1619_v21 = vmul.f32 %v3119_v19, %v1617_v10  ;;  %v1636_v0 = vpop.permute.xlu2 %1635  ;;  %vm1624_vm10 = vweird.f32 %v3119_v19  ;;  %v2807_v15 = vor.u32 %v2981_v13, %v2806_v11  ;;  %v2726_v13 = vld [vmem:[#allocation9 + $0x40] sm:$0xf] }
 0x90a   : > { %1648 = vmatpush.bf16.msrb.mxu0 %v1636_v0  ;;  %vm1625_vm12 = vmor %vm1623_vm11, %vm1624_vm10 }
 0x90b   : > { %v1694_v23 = vsel %vm1693_vm8, %v3117_v38, %v1690_v20  ;;  %v1620_v24 = vsub.f32 1.0, %v1619_v21  ;;  %v2982_v20 = vld [vmem:[#allocation9 + $0xf4] sm:$0xf0]  ;;  %v2811_v21 = vor.u32 %v2979_v14, %v2808_v16  ;;  %v2961_v14 = vld [vmem:[#allocation9 + $0x4c] sm:$0xf0] }
 0x90c   : > { %v1699_v25 = vsel %vm1696_vm9, %v1698_v22, %v1694_v23  ;;  %v2980_v22 = vld [vmem:[#allocation9 + $0xec] sm:$0xf]  ;;  %v2816_v23 = vld [vmem:[#allocation9 + $0xf8] sm:$0xf0]  ;;  %v2727_v16 = vor.u32 %v2961_v14, %v2726_v13 }
 0x90d   : > { %v1700_v28 = vmul.f32 %v3109_v51, %v1699_v25  ;;  %v1621_v29 = vmul.f32 %v3119_v19, %v1620_v24  ;;  %v2819_v24 = vor.u32 %v2980_v22, %v2816_v23  ;;  %2060 = vmatpush.bf16.msra.mxu3 %v2811_v21  ;;  %v2962_v21 = vld [vmem:[#allocation9 + $0x54] sm:$0xf0]  ;;  %v2960_v23 = vld [vmem:[#allocation9 + $0x4c] sm:$0xf] }
 0x90e   : > { %v1703_v31 = vpop.permute.xlu0 %1702  ;;  %v2984_v13 = vld [vmem:[#allocation10 + $0x8] sm:$0xff] }
 0x90f   : > { %v1622_v32 = vadd.f32 %v3119_v19, %v1621_v29  ;;  %1715 = vmatpush.bf16.msra.mxu2 %v1703_v31  ;;  %v1701_v33 = vpack.c.bf16 %v1700_v28, %v1700_v28  ;;  %v2977_v31 = vld [vmem:[#allocation9 + $0xcc] sm:$0xf0]  ;;  %v2992_v14 = vld [vmem:[#allocation10 + $0x48] sm:$0xff] }
 0x911   : > { %v1626_v35 = vsel %vm1625_vm12, %v3119_v19, %v1622_v32  ;;  %v1752_v36 = vpop.xlane.xlu1 %1751  ;;  %v2814_v19 = vld [vmem:[#allocation9 + $0xe8] sm:$0xf]  ;;  %v2975_v32 = vld [vmem:[#allocation9 + $0xc4] sm:$0xf] }
 0x912   : > { %v1631_v37 = vsel %vm1628_vm13, %v1630_v34, %v1626_v35  ;;  %3120 = vrcp.f32 %v1752_v36  ;;  %2657 = vmatmul.msk.bf16.vlgmr.msra.gmra.mxu2 %vm1541_vm14, %v1701_v33  ;;  %v1764_v44 = vand.u32 2147483648, %v1752_v36  ;;  %vm1758_vm0 = vweird.f32 %v1752_v36  ;;  %v2792_v34 = vld [vmem:[#allocation9 + $0xd0] sm:$0xf0]  ;;  %v2798_v35 = vld [vmem:[#allocation9 + $0xc8] sm:$0xf] }
 0x913   : > { %v1632_v18 = vmul.f32 %v3775_v53, %v1631_v37  ;;  %v1762_v46 = vand.u32 2147483647, %v1752_v36  ;;  %v2815_v0 = vor.u32 %v2982_v20, %v2814_v19  ;;  %2047 = vmatpush.bf16.msrb.mxu2 %v2807_v15  ;;  %v2791_v33 = vor.u32 %v2977_v31, %v2790_v30  ;;  %v2959_v15 = vld [vmem:[#allocation9 + $0x44] sm:$0xf]  ;;  %v2728_v19 = vld [vmem:[#allocation9 + $0x50] sm:$0xf0] }
 0x914   : > { %v1765_v48 = vor.u32 1.1754944e-38, %v1764_v44  ;;  %v2795_v37 = vor.u32 %v2975_v32, %v2792_v34  ;;  %v2734_v20 = vld [vmem:[#allocation9 + $0x48] sm:$0xf]  ;;  %v2955_v30 = vld [vmem:[#allocation9 + $0x24] sm:$0xf] }
 0x915   : > { %v1633_v39 = vpack.c.bf16 %v1632_v18, %v1632_v18  ;;  %vm1763_vm2 = vcmp.eq.f32.partialorder %v1762_v46, 8.507059e+37  ;;  %v2782_v46 = vld [vmem:[#allocation9 + $0xa8] sm:$0xf]  ;;  %v2735_v22 = vor.u32 %v2962_v21, %v2734_v20  ;;  %v2712_v32 = vld [vmem:[#allocation9 + $0x30] sm:$0xf0] }
 0x916   : > { %2061 = vmatpush.bf16.msra.mxu3 %v2795_v37  ;;  %v2958_v34 = vld [vmem:[#allocation9 + $0x34] sm:$0xf0]  ;;  %v2956_v37 = vld [vmem:[#allocation9 + $0x2c] sm:$0xf] }
 0x917   : > { %2655 = vmatmul.msk.bf16.vlgmr.msrb.gmra.mxu0 %vm1541_vm14, %v1633_v39  ;;  %v2976_v39 = vld [vmem:[#allocation9 + $0xcc] sm:$0xf]  ;;  %2048 = vmatpush.bf16.msrb.mxu2 %v2791_v33  ;;  %v2718_v33 = vld [vmem:[#allocation9 + $0x28] sm:$0xf] }
 0x918   : > { %v3121_v40 = vpop.eup %3120 }
 0x919   : > { %v1754_v41 = vmul.f32 %v3121_v40, %v1752_v36  ;;  %vm1759_vm15 = vweird.f32 %v3121_v40  ;;  %v2978_v36 = vld [vmem:[#allocation9 + $0xd4] sm:$0xf0] }
 0x91a   : > { %vm1760_vm1 = vmor %vm1758_vm0, %vm1759_vm15  ;;  %v2799_v18 = vor.u32 %v2978_v36, %v2798_v35  ;;  %v2715_v35 = vor.u32 %v2955_v30, %v2712_v32  ;;  %v2719_v36 = vor.u32 %v2958_v34, %v2718_v33 }
 0x91b   : > { %v1755_v42 = vsub.f32 1.0, %v1754_v41 }
 0x91d   : > { %v1756_v43 = vmul.f32 %v3121_v40, %v1755_v42  ;;  %v2973_v42 = vld [vmem:[#allocation9 + $0xac] sm:$0xf0] }
 0x91f   : > { %v1757_v45 = vadd.f32 %v3121_v40, %v1756_v43  ;;  %v2971_v43 = vld [vmem:[#allocation9 + $0xa4] sm:$0xf] }
 0x921   : > { %v1761_v47 = vsel %vm1760_vm1, %v3121_v40, %v1757_v45  ;;  %v2800_v40 = vld [vmem:[#allocation9 + $0xd8] sm:$0xf0]  ;;  %v2776_v45 = vld [vmem:[#allocation9 + $0xb0] sm:$0xf0] }
 0x922   : > { %v1766_v49 = vsel %vm1763_vm2, %v1765_v48, %v1761_v47  ;;  %v2803_v41 = vor.u32 %v2976_v39, %v2800_v40  ;;  %v2974_v47 = vld [vmem:[#allocation9 + $0xb4] sm:$0xf0]  ;;  %v2779_v48 = vor.u32 %v2971_v43, %v2776_v45  ;;  %v2694_v40 = vld [vmem:[#allocation9] sm:$0xf]  ;;  %v2696_v43 = vld [vmem:[#allocation9 + $0x10] sm:$0xf0] }
 0x923   : > { %v1767_v50 = vmul.f32 %v3779_v59, %v1766_v49  ;;  %v2950_v59 = vld [vmem:[#allocation7 + $0x38] sm:$0xff]  ;;  %v2783_v49 = vor.u32 %v2974_v47, %v2782_v46 }
 0x924   : > { %1852 = vmatpush.bf16.msrb.mxu1 %v2950_v59  ;;  %2062 = vmatpush.bf16.msra.mxu3 %v2779_v48  ;;  %v2954_v45 = vld [vmem:[#allocation9 + $0x14] sm:$0xf0]  ;;  %v2952_v48 = vld [vmem:[#allocation9 + $0xc] sm:$0xf] }
 0x925   : > { %v1768_v52 = vpack.c.bf16 %v1767_v50, %v1767_v50  ;;  %v2972_v50 = vld [vmem:[#allocation9 + $0xac] sm:$0xf] }
 0x928   : > { %1853 = vmatpush.bf16.msrb.mxu1 %v2949_v61  ;;  %v2968_v61 = vld [vmem:[#allocation9 + $0x8c] sm:$0xf] }
 0x929   : > { %v1770_v51 = vpop.permute.xlu1 %1769 }
 0x92a   : > { %1782 = vmatpush.bf16.msra.mxu0 %v1770_v51  ;;  %v2784_v51 = vld [vmem:[#allocation9 + $0xb8] sm:$0xf0] }
 0x92c   : > { %1854 = vmatpush.bf16.msrb.mxu1 %v2948_v62  ;;  %v2768_v62 = vld [vmem:[#allocation9 + $0x98] sm:$0xf0] }
 0x92d   : > { %2659 = vmatmul.msk.bf16.vlgmr.msra.gmra.mxu0 %vm1541_vm14, %v1768_v52  ;;  %v2787_v52 = vor.u32 %v2972_v50, %v2784_v51 }
 0x92e   : > { %2073 = vmatpush.bf16.msrb.mxu0 %v2815_v0  ;;  %v2731_v0 = vor.u32 %v2959_v15, %v2728_v19  ;;  %v2983_v15 = vld [vmem:[#allocation10] sm:$0xff] }
 0x930   : > { %1855 = vmatpush.bf16.msrb.mxu1 %v2947_v63  ;;  %v2771_v63 = vor.u32 %v2968_v61, %v2768_v62 }
 0x932   : > { %v1580_v53 = vpop.f32.mrf.mxu2  ;;  %2074 = vmatpush.bf16.msrb.mxu0 %v2799_v18  ;;  %v2720_v18 = vld [vmem:[#allocation9 + $0x38] sm:$0xf0] }
 0x933   : > { %v2723_v39 = vor.u32 %v2956_v37, %v2720_v18 }
 0x934   : > { %1856 = vmatpush.bf16.msrb.mxu1 %v2946_v1  ;;  %v2742_v1 = vld [vmem:[#allocation9 + $0x60] sm:$0xf] }
 0x936   : > { %2075 = vmatpush.bf16.msrb.mxu0 %v2783_v49  ;;  %v2704_v49 = vld [vmem:[#allocation9 + $0x18] sm:$0xf0] }
 0x937   : > { %v2707_v50 = vor.u32 %v2952_v48, %v2704_v49 }
 0x938   : > { %1857 = vmatpush.bf16.msrb.mxu1 %v2945_v2  ;;  %v2965_v2 = vld [vmem:[#allocation9 + $0x6c] sm:$0xf0] }
 0x93a   : > { %v1582_v54 = vpop.f32.mrf.mxu2 }
 0x93b   : > { %v2969_v54 = vld [vmem:[#allocation9 + $0x8c] sm:$0xf0] }
 0x93c   : > { %1858 = vmatpush.bf16.msrb.mxu1 %v2944_v3  ;;  %v2963_v3 = vld [vmem:[#allocation9 + $0x64] sm:$0xf] }
 0x940   : > { %1859 = vmatpush.bf16.msrb.mxu1 %v2943_v4  ;;  %v2743_v4 = vor.u32 %v2965_v2, %v2742_v1  ;;  %v2990_v1 = vld [vmem:[#allocation10 + $0x38] sm:$0xff] }
 0x941   : > { %v2998_v2 = vld [vmem:[#allocation10 + $0x78] sm:$0xff] }
 0x944   : > { %2086 = vmatpush.bf16.msra.mxu1 %v2819_v24  ;;  %v2736_v24 = vld [vmem:[#allocation9 + $0x58] sm:$0xf0] }
 0x948   : > { %2087 = vmatpush.bf16.msra.mxu1 %v2803_v41  ;;  %v2953_v41 = vld [vmem:[#allocation9 + $0xc] sm:$0xf0] }
 0x94c   : > { %2088 = vmatpush.bf16.msra.mxu1 %v2787_v52 }
 0x950   : > { %2089 = vmatpush.bf16.msra.mxu1 %v2771_v63 }
 0x994   : > { %v1650_v55 = vpop.f32.mrf.mxu0 }
 0x995   : > { %1789 = vrot.lane.b32.xlu0 %v1650_v55, %s3349_s9  ;;  %v1717_v56 = vpop.f32.mrf.mxu2  ;;  %v2967_v55 = vld [vmem:[#allocation9 + $0x84] sm:$0xf] }
 0x996   : > { %1793 = vrot.lane.b32.xlu2 %v1717_v56, %s3348_s8 }
 0x99c   : > { %v1652_v57 = vpop.f32.mrf.mxu0 }
 0x99d   : > { %v1719_v58 = vpop.f32.mrf.mxu2  ;;  %v2760_v57 = vld [vmem:[#allocation9 + $0x90] sm:$0xf0] }
 0x99e   : > { %v2766_v58 = vld [vmem:[#allocation9 + $0x88] sm:$0xf] }
 0x9aa   : > { %v1784_v26 = vpop.f32.mrf.mxu0 }
 0x9ab   : > { %1797 = vrot.lane.b32.xlu1 %v1784_v26, %s3347_s21  ;;  %v2970_v26 = vld [vmem:[#allocation9 + $0x94] sm:$0xf0] }
 0x9ac   : > { %v2767_v59 = vor.u32 %v2970_v26, %v2766_v58 }
 0x9ae   : > { %2076 = vmatpush.bf16.msrb.mxu0 %v2767_v59 }
 0x9b2   : > { %v1786_v60 = vpop.f32.mrf.mxu0 }
 0x9b3   : > { %v2763_v60 = vor.u32 %v2967_v55, %v2760_v57 }
 0x9b5   : > { %2063 = vmatpush.bf16.msra.mxu3 %v2763_v60  ;;  %v3082_v60 = vld [vmem:[%s3831_s10] ss:$0 sm:$0xff] }
 0x9f0   : > { %v1794_v7 = vpop.permute.xlu2 %1793 }
 0xa07   : > { %v1790_v5 = vpop.permute.xlu0 %1789 }
 0xa08   : > { %v1800_v6 = vsel %vm969_vm4, %v1580_v53, %v1790_v5  ;;  %v2758_v53 = vld [vmem:[#allocation9 + $0x80] sm:$0xf]  ;;  %v2744_v5 = vld [vmem:[#allocation9 + $0x70] sm:$0xf0] }
 0xa09   : > { %v1801_v9 = vsel %vm1259_vm5, %v1800_v6, %v1794_v7  ;;  %v2759_v56 = vor.u32 %v2969_v54, %v2758_v53  ;;  %v2750_v6 = vld [vmem:[#allocation9 + $0x68] sm:$0xf]  ;;  %v2966_v7 = vld [vmem:[#allocation9 + $0x74] sm:$0xf0] }
 0xa1d   : > { %v1798_v8 = vpop.permute.xlu1 %1797 }
 0xa1e   : > { %v1802_v10 = vsel %vm1261_vm7, %v1801_v9, %v1798_v8  ;;  %v2747_v8 = vor.u32 %v2963_v3, %v2744_v5  ;;  %v2751_v9 = vor.u32 %v2966_v7, %v2750_v6  ;;  %v2989_v3 = vld [vmem:[#allocation10 + $0x30] sm:$0xff]  ;;  %v2988_v5 = vld [vmem:[#allocation10 + $0x28] sm:$0xff]  ;;  %v2987_v7 = vld [vmem:[#allocation10 + $0x20] sm:$0xff] }
 0xa1f   : > { %v1803_v38 = vpack.c.bf16 %v1802_v10, %v1802_v10  ;;  %v2964_v10 = vld [vmem:[#allocation9 + $0x6c] sm:$0xf] }
 0xa20   : > { %2064 = vmatpush.bf16.msra.mxu3 %v2747_v8  ;;  %2077 = vmatpush.bf16.msrb.mxu0 %v2751_v9  ;;  %v2996_v6 = vld [vmem:[#allocation10 + $0x68] sm:$0xff]  ;;  %v2995_v8 = vld [vmem:[#allocation10 + $0x60] sm:$0xff]  ;;  %v2986_v9 = vld [vmem:[#allocation10 + $0x18] sm:$0xff] }
 0xa21   : > { %1860 = vmatmul.bf16.vlgmr.msrb.gmra.mxu1 %v1803_v38  ;;  %v2752_v38 = vld [vmem:[#allocation9 + $0x78] sm:$0xf0] }
 0xa22   : > { %v2755_v11 = vor.u32 %v2964_v10, %v2752_v38  ;;  %v2994_v10 = vld [vmem:[#allocation10 + $0x58] sm:$0xff]  ;;  %v2985_v38 = vld [vmem:[#allocation10 + $0x10] sm:$0xff] }
 0xa24   : > { %2090 = vmatpush.bf16.msra.mxu1 %v2755_v11  ;;  %2065 = vmatpush.bf16.msra.mxu3 %v2731_v0  ;;  %v2993_v11 = vld [vmem:[#allocation10 + $0x50] sm:$0xff] }
 0xa25   : > { %2078 = vmatpush.bf16.msrb.mxu0 %v2735_v22 }
 0xa28   : > { %2066 = vmatpush.bf16.msra.mxu3 %v2715_v35 }
 0xa29   : > { %2079 = vmatpush.bf16.msrb.mxu0 %v2719_v36 }
 0xa9e   : > { %v1861_v25 = vpop.f32.mrf.mxu1 }
 0xa9f   : > { %v3799_v27 = vadd.f32 %v1861_v25, %v3733_v12  ;;  %v2774_v12 = vld [vmem:[#allocation9 + $0xa0] sm:$0xf]  ;;  %v2739_v25 = vor.u32 %v2960_v23, %v2736_v24 }
 0xaa0   : > { %v2775_v44 = vor.u32 %v2973_v42, %v2774_v12  ;;  %v2951_v12 = vld [vmem:[#allocation9 + $0x4] sm:$0xf]  ;;  %v2695_v42 = vor.u32 %v2953_v41, %v2694_v40 }
 0xaa1   : > { %v1866_v28 = vmul.f32 %v3799_v27, %v3799_v27  ;;  %2091 = vmatpush.bf16.msra.mxu1 %v2739_v25  ;;  %v2699_v46 = vor.u32 %v2951_v12, %v2696_v43 }
 0xaa2   : > { %2049 = vmatpush.bf16.msrb.mxu2 %v2775_v44  ;;  %v2702_v44 = vld [vmem:[#allocation9 + $0x8] sm:$0xf] }
 0xaa3   : > { %1867 = vadd.xlane.f32.xlu0 %v1866_v28  ;;  %v2710_v28 = vld [vmem:[#allocation9 + $0x20] sm:$0xf]  ;;  %v2703_v47 = vor.u32 %v2954_v45, %v2702_v44  ;;  %2067 = vmatpush.bf16.msra.mxu3 %v2699_v46 }
 0xaa5   : > { %2092 = vmatpush.bf16.msra.mxu1 %v2723_v39  ;;  %2080 = vmatpush.bf16.msrb.mxu0 %v2703_v47 }
 0xaa6   : > { %v1863_v29 = vpop.f32.mrf.mxu1  ;;  %2050 = vmatpush.bf16.msrb.mxu2 %v2759_v56 }
 0xaa7   : > { %v2957_v29 = vld [vmem:[#allocation9 + $0x2c] sm:$0xf0]  ;;  %2230 = vmatpush.bf16.msrb.mxu3 %v2998_v2 }
 0xaa8   : > { %v2711_v31 = vor.u32 %v2957_v29, %v2710_v28 }
 0xaa9   : > { %2093 = vmatpush.bf16.msra.mxu1 %v2707_v50 }
 0xaaa   : > { %2051 = vmatpush.bf16.msrb.mxu2 %v2743_v4  ;;  %v2997_v4 = vld [vmem:[#allocation10 + $0x70] sm:$0xff] }
 0xaab   : > { %2231 = vmatpush.bf16.msrb.mxu3 %v2997_v4 }
 0xaae   : > { %2052 = vmatpush.bf16.msrb.mxu2 %v2727_v16  ;;  %v2991_v16 = vld [vmem:[#allocation10 + $0x40] sm:$0xff] }
 0xaaf   : > { %2232 = vmatpush.bf16.msrb.mxu3 %v2996_v6 }
 0xab2   : > { %2053 = vmatpush.bf16.msrb.mxu2 %v2711_v31 }
 0xab3   : > { %2233 = vmatpush.bf16.msrb.mxu3 %v2995_v8 }
 0xab6   : > { %2054 = vmatpush.bf16.msrb.mxu2 %v2695_v42 }
 0xab7   : > { %2234 = vmatpush.bf16.msrb.mxu3 %v2994_v10 }
 0xaba   : > { %2217 = vmatpush.bf16.msra.mxu2 %v2990_v1 }
 0xabb   : > { %2235 = vmatpush.bf16.msrb.mxu3 %v2993_v11 }
 0xabe   : > { %2218 = vmatpush.bf16.msra.mxu2 %v2989_v3 }
 0xabf   : > { %2236 = vmatpush.bf16.msrb.mxu3 %v2992_v14 }
 0xac2   : > { %2219 = vmatpush.bf16.msra.mxu2 %v2988_v5 }
 0xac3   : > { %2237 = vmatpush.bf16.msrb.mxu3 %v2991_v16 }
 0xac6   : > { %2220 = vmatpush.bf16.msra.mxu2 %v2987_v7 }
 0xaca   : > { %2221 = vmatpush.bf16.msra.mxu2 %v2986_v9 }
 0xace   : > { %2222 = vmatpush.bf16.msra.mxu2 %v2985_v38 }
 0xad2   : > { %2223 = vmatpush.bf16.msra.mxu2 %v2984_v13 }
 0xad6   : > { %2224 = vmatpush.bf16.msra.mxu2 %v2983_v15 }
 0xb16   : > { %v1868_v51 = vpop.xlane.xlu0 %1867 }
 0xb17   : > { %v1869_v52 = vmul.f32 %v1868_v51, %v3667_v17 }
 0xb19   : > { %v1870_v53 = vadd.f32 1e-06, %v1869_v52 }
 0xb1b   : > { %3122 = vrsqrt.f32 %v1870_v53  ;;  %vm1877_vm5 = vweird.f32 %v1870_v53 }
 0xb21   : > { %v3123_v54 = vpop.eup %3122 }
 0xb22   : > { %v1872_v55 = vmul.f32 %v3123_v54, %v1870_v53  ;;  %vm1878_vm4 = vweird.f32 %v3123_v54 }
 0xb23   : > { %vm1879_vm7 = vmor %vm1877_vm5, %vm1878_vm4 }
 0xb24   : > { %v1873_v56 = vmul.f32 %v3123_v54, %v1872_v55 }
 0xb26   : > { %v1874_v57 = vmul.f32 0.5, %v1873_v56 }
 0xb28   : > { %v1875_v58 = vsub.f32 1.5, %v1874_v57 }
 0xb2a   : > { %v1876_v26 = vmul.f32 %v3123_v54, %v1875_v58 }
 0xb2c   : > { %v1880_v59 = vsel %vm1879_vm7, %v3123_v54, %v1876_v26 }
 0xb2d   : > { %v1881_v61 = vmul.f32 %v1880_v59, %v3799_v27 }
 0xb2f   : > { %v1885_v62 = vmul.f32 %v3082_v60, %v1881_v61 }
 0xb31   : > { %v1886_v63 = vpack.c.bf16 %v1885_v62, %v1885_v62 }
 0xb33   : > { %2055 = vmatmul.bf16.vlgmr.msrb.gmra.mxu2 %v1886_v63  ;;  %2068 = vmatmul.bf16.vlgmr.msra.gmra.mxu3 %v1886_v63 }
 0xb34   : > { %2081 = vmatmul.bf16.vlgmr.msrb.gmra.mxu0 %v1886_v63  ;;  %2094 = vmatmul.bf16.vlgmr.msra.gmra.mxu1 %v1886_v63 }
 0xbb1   : > { %v2082_v19 = vpop.f32.mrf.mxu0  ;;  %v2095_v20 = vpop.f32.mrf.mxu1 }
 0xbb6   : > { %v2056_v21 = vpop.f32.mrf.mxu2  ;;  %v2069_v0 = vpop.f32.mrf.mxu3 }
 0xbb7   : > { %v2099_v22 = vmul.f32 %v2056_v21, %v2056_v21  ;;  %v2100_v23 = vmul.f32 %v2069_v0, %v2069_v0 }
 0xbb9   : > { %v2101_v24 = vmul.f32 %v2099_v22, %v2056_v21  ;;  %v2102_v25 = vmul.f32 %v2100_v23, %v2069_v0  ;;  %v2084_v28 = vpop.f32.mrf.mxu0  ;;  %v2097_v29 = vpop.f32.mrf.mxu1 }
 0xbbb   : > { %v2103_v30 = vmul.f32 0.044715, %v2101_v24  ;;  %v2104_v31 = vmul.f32 0.044715, %v2102_v25 }
 0xbbd   : > { %v2105_v32 = vadd.f32 %v2103_v30, %v2056_v21  ;;  %v2106_v33 = vadd.f32 %v2104_v31, %v2069_v0 }
 0xbbe   : > { %v2058_v34 = vpop.f32.mrf.mxu2  ;;  %v2071_v35 = vpop.f32.mrf.mxu3 }
 0xbbf   : > { %v2107_v36 = vmul.f32 0.7978846, %v2105_v32  ;;  %v2108_v37 = vmul.f32 0.7978846, %v2106_v33 }
 0xbc1   : > { %3124 = vtanh.f32 %v2107_v36 }
 0xbc2   : > { %3126 = vtanh.f32 %v2108_v37 }
 0xbc7   : > { %v3125_v18 = vpop.eup %3124 }
 0xbc8   : > { %v3127_v39 = vpop.eup %3126  ;;  %v2111_v40 = vadd.f32 1.0, %v3125_v18 }
 0xbc9   : > { %v2112_v41 = vadd.f32 1.0, %v3127_v39 }
 0xbca   : > { %v2113_v12 = vmul.f32 0.5, %v2111_v40 }
 0xbcb   : > { %v2114_v42 = vmul.f32 0.5, %v2112_v41 }
 0xbcc   : > { %v2115_v43 = vmul.f32 %v2113_v12, %v2056_v21 }
 0xbcd   : > { %v2116_v44 = vmul.f32 %v2114_v42, %v2069_v0 }
 0xbce   : > { %v2117_v45 = vmul.f32 %v2115_v43, %v2082_v19 }
 0xbcf   : > { %v2118_v46 = vmul.f32 %v2116_v44, %v2095_v20 }
 0xbd0   : > { %v2119_v47 = vpack.c.bf16 %v2117_v45, %v2117_v45 }
 0xbd1   : > { %v2120_v48 = vpack.c.bf16 %v2118_v46, %v2118_v46 }
 0xbd2   : > { %2225 = vmatmul.bf16.vlgmr.msra.gmra.mxu2 %v2119_v47 }
 0xbd3   : > { %2238 = vmatmul.bf16.vlgmr.msrb.gmra.mxu3 %v2120_v48 }
 0xc55   : > { %v2226_v49 = vpop.f32.mrf.mxu2 }
 0xc56   : > { %v2239_v50 = vpop.f32.mrf.mxu3 }
 0xc57   : > { %v2240_v51 = vadd.f32 %v2239_v50, %v2226_v49 }
 0xc59   : > { %v2243_v52 = vadd.f32 %v2240_v51, %v3799_v27  ;;  %v3083_v27 = vld [vmem:[%s3834_s13] ss:$0 sm:$0xff] }
 0xc5b   : > { %v2244_v53 = vmul.f32 %v2243_v52, %v2243_v52 }
 0xc5d   : > { %2245 = vadd.xlane.f32.xlu2 %v2244_v53  ;;  %v2228_v54 = vpop.f32.mrf.mxu2 }
 0xc5e   : > { %v2241_v55 = vpop.f32.mrf.mxu3 }
 0xcd0   : > { %v2246_v56 = vpop.xlane.xlu2 %2245 }
 0xcd1   : > { %v2247_v57 = vmul.f32 %v2246_v56, %v3667_v17 }
 0xcd3   : > { %v2248_v58 = vadd.f32 1e-06, %v2247_v57 }
 0xcd5   : > { %3128 = vrsqrt.f32 %v2248_v58  ;;  %vm2255_vm3 = vweird.f32 %v2248_v58 }
 0xcdb   : > { %v3129_v26 = vpop.eup %3128 }
 0xcdc   : > { %v2250_v60 = vmul.f32 %v3129_v26, %v2248_v58  ;;  %vm2256_vm14 = vweird.f32 %v3129_v26 }
 0xcdd   : > { %vm2257_vm6 = vmor %vm2255_vm3, %vm2256_vm14 }
 0xcde   : > { %v2251_v59 = vmul.f32 %v3129_v26, %v2250_v60 }
 0xce0   : > { %v2252_v61 = vmul.f32 0.5, %v2251_v59 }
 0xce2   : > { %v2253_v62 = vsub.f32 1.5, %v2252_v61 }
 0xce4   : > { %v2254_v63 = vmul.f32 %v3129_v26, %v2253_v62 }
 0xce6   : > { %v2258_v1 = vsel %vm2257_vm6, %v3129_v26, %v2254_v63 }
 0xce7   : > { %v2259_v2 = vmul.f32 %v2258_v1, %v2243_v52 }
 0xce9   : > { %v2263_v17 = vmul.f32 %v3083_v27, %v2259_v2 }
 0xceb   : > { %2264 = vst [vmem:[%s596_s18] sm:$0xff] %v2263_v17 }
 0xcec PF: > { %s28_s29 = sadd.s32 1, %s3332_s29  }
 0xced   : > { %p25_p7 = scmp.ge.s32.totalorder %s28_s29, 4  }
 0xcef   :  { %27 = sbr.rel (!%p25_p7) target bundleno = 9 (0x9), region = 137 }
 0xcf4   :  { %2284 = vsyncpa [#allocation3], 1 }
 0xcf5   :  { %2286 = vsyncpa [#allocation3 + $0x1], 1 }
 0xcf6   :  { %2287 = vsyncpa [#allocation5], 1 }
 0xcf7   :  { %2288 = vsyncpa [#allocation8], 1 }
 0xcf8   :  { %2289 = vsyncpa [#allocation11], 1 }

</bundles_post_ra>
